<compile_context>
chip_gen: v6e
topology: v6e:2x2x1
jax: 0.10.0
libtpu: 0.0.40
codegen_flags: <defaults>
</compile_context>

<pallas_src>
import functools

import jax
import jax.numpy as jnp
from jax.experimental import pallas as pl
from jax.experimental.pallas import tpu as pltpu

# ---- small Mixtral-like config ----
BATCH = 2
SEQ = 8
HIDDEN = 64
N_HEADS = 4
N_KV_HEADS = 2
HEAD_DIM = HIDDEN // N_HEADS          # 16
REP = N_HEADS // N_KV_HEADS           # 2
QD = N_HEADS * HEAD_DIM               # 64
KD = N_KV_HEADS * HEAD_DIM            # 32
INTERMEDIATE = 128
N_EXPERTS = 4
TOP_K = 2
N_LAYERS = 2
ROPE_THETA = 1e6
RMS_EPS = 1e-5
NEG_INF = -1e30


# ---------------- fused whole-forward Pallas kernel ----------------

def _mixtral_fwd_kernel(x_ref, cos_ref, sin_ref, wqkv_ref, wo_ref, wg_ref,
                        w13_ref, w2_ref, fnorm_ref, o_ref, *, batch, seq):
    f32 = jnp.float32
    bf16 = jnp.bfloat16
    scale = 1.0 / (HEAD_DIM ** 0.5)
    half = HEAD_DIM // 2

    cos = cos_ref[...]                         # (S, D) f32
    sin = sin_ref[...]

    def rope(x):                               # x: (S, D) f32, rows = seq pos
        rot = jnp.concatenate([-x[:, half:], x[:, :half]], axis=-1)
        return x * cos + rot * sin

    # causal mask (S, S): key position <= query position
    row = jax.lax.broadcasted_iota(jnp.int32, (seq, seq), 0)
    col = jax.lax.broadcasted_iota(jnp.int32, (seq, seq), 1)
    causal = col <= row

    h = x_ref[...]                             # (T, H) f32, T = B*S

    for l in range(N_LAYERS):
        # ---------------- self-attention block ----------------
        residual = h
        # RMSNorm (ln1 folded into wqkv rows at init)
        var = jnp.mean(h * h, axis=-1, keepdims=True)
        hn = (h * jax.lax.rsqrt(var + RMS_EPS)).astype(bf16)
        # fused Q|K|V projection: one lane-dense (T,64)@(64,128) MXU pass
        qkv = jnp.dot(hn, wqkv_ref[l], preferred_element_type=f32)   # (T, 128) f32

        # causal GQA attention, fully unrolled over (batch, kv-head, rep);
        # query head hh = g*REP + r uses kv head g (HF repeat_kv order).
        attn_batches = []
        for b in range(batch):
            r0 = b * seq
            head_outs = []
            for g in range(N_KV_HEADS):
                kc = QD + g * HEAD_DIM
                vc = QD + KD + g * HEAD_DIM
                k_g = rope(qkv[r0:r0 + seq, kc:kc + HEAD_DIM]).astype(bf16)  # (S,D)
                v_g = qkv[r0:r0 + seq, vc:vc + HEAD_DIM].astype(bf16)        # (S,D)
                for r in range(REP):
                    hh = g * REP + r
                    qc = hh * HEAD_DIM
                    q_h = rope(qkv[r0:r0 + seq, qc:qc + HEAD_DIM]).astype(bf16)
                    # q @ k^T without materialising a transpose
                    s = jax.lax.dot_general(
                        q_h, k_g, (((1,), (1,)), ((), ())),
                        preferred_element_type=f32) * scale          # (S, S) f32
                    s = jnp.where(causal, s, NEG_INF)
                    m = jnp.max(s, axis=-1, keepdims=True)
                    p = jnp.exp(s - m)
                    p = p / jnp.sum(p, axis=-1, keepdims=True)       # exact div
                    head_outs.append(
                        jnp.dot(p.astype(bf16), v_g, preferred_element_type=f32))
            attn_batches.append(jnp.concatenate(head_outs, axis=-1))  # (S, QD)
        attn2d = jnp.concatenate(attn_batches, axis=0).astype(bf16)   # (T, QD)

        # ---------------- o-proj + residual ----------------
        h = residual + jnp.dot(attn2d, wo_ref[l], preferred_element_type=f32)

        # ---------------- post-attention RMSNorm (ln2 folded) ----------------
        var = jnp.mean(h * h, axis=-1, keepdims=True)
        hn2 = h * jax.lax.rsqrt(var + RMS_EPS)                        # (T, H) f32
        hn2_b = hn2.astype(bf16)

        # ---------------- router: f32 gate -> softmax -> top-k ----------------
        logits = jnp.dot(hn2, wg_ref[l], preferred_element_type=f32)  # (T, E) f32
        m = jnp.max(logits, axis=-1, keepdims=True)
        ex = jnp.exp(logits - m)
        probs = ex / jnp.sum(ex, axis=-1, keepdims=True)
        t_dim, e_dim = probs.shape
        lane = jax.lax.broadcasted_iota(jnp.int32, (t_dim, e_dim), 1)
        keep = None
        for e in range(N_EXPERTS):
            pe = probs[:, e:e + 1]                                    # (T, 1)
            beats = (probs > pe) | ((probs == pe) & (lane < e))
            rank_e = jnp.sum(beats.astype(jnp.int32), axis=-1, keepdims=True)
            kc2 = (rank_e < TOP_K) & (lane == e)
            keep = kc2 if keep is None else (keep | kc2)
        w = jnp.where(keep, probs, 0.0)
        routing = w / jnp.sum(w, axis=-1, keepdims=True)              # (T, E) f32

        # ---------------- sparse MoE experts (unrolled, VMEM-resident) -------
        moe = jnp.zeros_like(h)
        for e in range(N_EXPERTS):
            # fused gate|up projection: one (T,64)@(64,256) MXU pass
            gu = jnp.dot(hn2_b, w13_ref[l, e], preferred_element_type=f32)
            act = jax.nn.silu(gu[:, :INTERMEDIATE]) * gu[:, INTERMEDIATE:]
            act = (act * routing[:, e:e + 1]).astype(bf16)
            moe = moe + jnp.dot(act, w2_ref[l, e], preferred_element_type=f32)
        h = h + moe

    # ---------------- final RMSNorm ----------------
    var = jnp.mean(h * h, axis=-1, keepdims=True)
    o_ref[...] = h * jax.lax.rsqrt(var + RMS_EPS) * fnorm_ref[...]


# ---------------- wrapper ----------------

def mixtral_forward(inputs_embeds, weights):
    B, S, H = inputs_embeds.shape
    T = B * S
    cos, sin = rope_cos_sin(S, HEAD_DIM, ROPE_THETA)          # (S, D) f32
    x2d = inputs_embeds.reshape(T, H).astype(jnp.float32)

    vmem = pl.BlockSpec(memory_space=pltpu.MemorySpace.VMEM)  # whole array in VMEM
    out2d = pl.pallas_call(
        functools.partial(_mixtral_fwd_kernel, batch=B, seq=S),
        out_shape=jax.ShapeDtypeStruct((T, H), jnp.float32),
        in_specs=[vmem] * 9,
        out_specs=vmem,
    )(x2d, cos, sin,
      weights["wqkv"], weights["wo"], weights["wg"],
      weights["w13"], weights["w2"], weights["final_norm"])
    return out2d.reshape(B, S, H)


# ---------------- params / RoPE tables (JAX, outside the kernel) ----------------

def rope_cos_sin(seq_len, dim, theta):
    inv_freq = 1.0 / (theta ** (jnp.arange(0, dim, 2, dtype=jnp.float32) / dim))
    pos = jnp.arange(seq_len, dtype=jnp.float32)
    freqs = pos[:, None] * inv_freq[None, :]                  # (S, D/2)
    emb = jnp.concatenate([freqs, freqs], axis=-1)            # (S, D)
    return jnp.cos(emb), jnp.sin(emb)


def init_params(key):
    scale = 0.05

    def rnd(k, shape):
        return scale * jax.random.normal(k, shape, dtype=jnp.float32)

    wqkv_l, wo_l, wg_l, w13_l, w2_l = [], [], [], [], []
    for _ in range(N_LAYERS):
        key, *ks = jax.random.split(key, 9)
        ln1 = jnp.ones((HIDDEN,), jnp.float32)   # RMSNorm weights (folded below)
        ln2 = jnp.ones((HIDDEN,), jnp.float32)
        wq = rnd(ks[0], (HIDDEN, N_HEADS * HEAD_DIM))
        wk = rnd(ks[1], (HIDDEN, N_KV_HEADS * HEAD_DIM))
        wv = rnd(ks[2], (HIDDEN, N_KV_HEADS * HEAD_DIM))
        w1 = rnd(ks[5], (N_EXPERTS, HIDDEN, INTERMEDIATE))
        w3 = rnd(ks[6], (N_EXPERTS, HIDDEN, INTERMEDIATE))
        # fold ln1 into the fused Q|K|V weight, ln2 into the router gate and
        # into each expert's input rows (diag(ln) commutes into the matmul).
        qkv_f = jnp.concatenate([wq, wk, wv], axis=1) * ln1[:, None]
        wqkv_l.append(qkv_f.astype(jnp.bfloat16))
        wo_l.append(rnd(ks[3], (N_HEADS * HEAD_DIM, HIDDEN)).astype(jnp.bfloat16))
        wg_l.append(rnd(ks[4], (HIDDEN, N_EXPERTS)) * ln2[:, None])   # f32 gate
        w13 = jnp.concatenate([w1, w3], axis=2) * ln2[None, :, None]
        w13_l.append(w13.astype(jnp.bfloat16))
        w2_l.append(rnd(ks[7], (N_EXPERTS, INTERMEDIATE, HIDDEN)).astype(jnp.bfloat16))

    return dict(
        wqkv=jnp.stack(wqkv_l),                 # (L, H, 128) bf16
        wo=jnp.stack(wo_l),                     # (L, 64, H)  bf16
        wg=jnp.stack(wg_l),                     # (L, H, E)   f32
        w13=jnp.stack(w13_l),                   # (L, E, H, 2I) bf16
        w2=jnp.stack(w2_l),                     # (L, E, I, H)  bf16
        final_norm=jnp.ones((1, HIDDEN), jnp.float32),
    )


if __name__ == "__main__":
    key = jax.random.PRNGKey(0)
    k_in, k_par = jax.random.split(key)
    x = jax.random.normal(k_in, (BATCH, SEQ, HIDDEN), dtype=jnp.float32)
    weights = init_params(k_par)

    fwd = jax.jit(lambda e: mixtral_forward(e, weights))
    out = jax.block_until_ready(fwd(x))

    assert out.shape == (BATCH, SEQ, HIDDEN)
    assert bool(jnp.all(jnp.isfinite(out)))
    print("KERNEL_OK")
</pallas_src>

<mosaic_0001>
module attributes {stable_mosaic.version = 11 : i64} {
  func.func @_mixtral_fwd_kernel(%arg0: memref<16x64xf32, #tpu.memory_space<vmem>>, %arg1: memref<8x16xf32, #tpu.memory_space<vmem>>, %arg2: memref<8x16xf32, #tpu.memory_space<vmem>>, %arg3: memref<2x64x128xbf16, #tpu.memory_space<vmem>>, %arg4: memref<2x64x64xbf16, #tpu.memory_space<vmem>>, %arg5: memref<2x64x4xf32, #tpu.memory_space<vmem>>, %arg6: memref<2x4x64x256xbf16, #tpu.memory_space<vmem>>, %arg7: memref<2x4x128x64xbf16, #tpu.memory_space<vmem>>, %arg8: memref<1x64xf32, #tpu.memory_space<vmem>>, %arg9: memref<16x64xf32, #tpu.memory_space<vmem>>) attributes {dimension_semantics = [], scalar_prefetch = 0 : i64, scratch_operands = 0 : i64, tpu.core_type = #tpu.core_type<tc>} {
    %c0 = arith.constant 0 : index
    %c0_0 = arith.constant 0 : index
    %0 = vector.load %arg1[%c0, %c0_0] : memref<8x16xf32, #tpu.memory_space<vmem>>, vector<8x16xf32>
    %c0_1 = arith.constant 0 : index
    %c0_2 = arith.constant 0 : index
    %1 = vector.load %arg2[%c0_1, %c0_2] : memref<8x16xf32, #tpu.memory_space<vmem>>, vector<8x16xf32>
    %2 = tpu.iota {dimensions = array<i32: 0>} : vector<8x8xi32>
    %3 = tpu.iota {dimensions = array<i32: 1>} : vector<8x8xi32>
    %4 = arith.cmpi sle, %3, %2 : vector<8x8xi32>
    %c0_3 = arith.constant 0 : index
    %c0_4 = arith.constant 0 : index
    %5 = vector.load %arg0[%c0_3, %c0_4] : memref<16x64xf32, #tpu.memory_space<vmem>>, vector<16x64xf32>
    %6 = arith.mulf %5, %5 : vector<16x64xf32>
    %cst = arith.constant dense<0.000000e+00> : vector<16xf32>
    %7 = vector.multi_reduction <add>, %6, %cst [1] : vector<16x64xf32> to vector<16xf32>
    %8 = vector.shape_cast %7 : vector<16xf32> to vector<16x1xf32>
    %cst_5 = arith.constant 6.400000e+01 : f32
    %9 = vector.broadcast %cst_5 : f32 to vector<16x1xf32>
    %10 = arith.divf %8, %9 : vector<16x1xf32>
    %cst_6 = arith.constant 9.99999974E-6 : f32
    %11 = vector.broadcast %cst_6 : f32 to vector<16x1xf32>
    %12 = arith.addf %10, %11 : vector<16x1xf32>
    %13 = math.rsqrt %12 : vector<16x1xf32>
    %14 = vector.broadcast %13 : vector<16x1xf32> to vector<16x64xf32>
    %15 = arith.mulf %5, %14 : vector<16x64xf32>
    %16 = arith.truncf %15 : vector<16x64xf32> to vector<16x64xbf16>
    %c0_7 = arith.constant 0 : index
    %c0_8 = arith.constant 0 : index
    %c0_9 = arith.constant 0 : index
    %17 = vector.load %arg3[%c0_7, %c0_8, %c0_9] : memref<2x64x128xbf16, #tpu.memory_space<vmem>>, vector<1x64x128xbf16>
    %18 = vector.shape_cast %17 : vector<1x64x128xbf16> to vector<64x128xbf16>
    %cst_10 = arith.constant dense<0.000000e+00> : vector<16x128xf32>
    %19 = tpu.matmul %16, %18, %cst_10 {dimension_numbers = #tpu.dot_dimension_numbers<[1], [0], [0], [1], [0, 0, 1, 1], [], []>} : vector<16x64xbf16>, vector<64x128xbf16>, vector<16x128xf32> -> vector<16x128xf32>
    %20 = vector.extract_strided_slice %19 {offsets = [0, 64], sizes = [8, 16], strides = [1, 1]} : vector<16x128xf32> to vector<8x16xf32>
    %21 = vector.extract_strided_slice %20 {offsets = [0, 8], sizes = [8, 8], strides = [1, 1]} : vector<8x16xf32> to vector<8x8xf32>
    %cst_11 = arith.constant 0.000000e+00 : f32
    %22 = vector.broadcast %cst_11 : f32 to vector<8x8xf32>
    %23 = arith.subf %22, %21 : vector<8x8xf32>
    %24 = vector.extract_strided_slice %20 {offsets = [0, 0], sizes = [8, 8], strides = [1, 1]} : vector<8x16xf32> to vector<8x8xf32>
    %25 = tpu.concatenate %23, %24 in 1 : vector<8x8xf32>, vector<8x8xf32> -> vector<8x16xf32>
    %26 = arith.mulf %20, %0 : vector<8x16xf32>
    %27 = arith.mulf %25, %1 : vector<8x16xf32>
    %28 = arith.addf %26, %27 : vector<8x16xf32>
    %29 = arith.truncf %28 : vector<8x16xf32> to vector<8x16xbf16>
    %30 = vector.extract_strided_slice %19 {offsets = [0, 96], sizes = [8, 16], strides = [1, 1]} : vector<16x128xf32> to vector<8x16xf32>
    %31 = arith.truncf %30 : vector<8x16xf32> to vector<8x16xbf16>
    %32 = vector.extract_strided_slice %19 {offsets = [0, 0], sizes = [8, 16], strides = [1, 1]} : vector<16x128xf32> to vector<8x16xf32>
    %33 = vector.extract_strided_slice %32 {offsets = [0, 8], sizes = [8, 8], strides = [1, 1]} : vector<8x16xf32> to vector<8x8xf32>
    %cst_12 = arith.constant 0.000000e+00 : f32
    %34 = vector.broadcast %cst_12 : f32 to vector<8x8xf32>
    %35 = arith.subf %34, %33 : vector<8x8xf32>
    %36 = vector.extract_strided_slice %32 {offsets = [0, 0], sizes = [8, 8], strides = [1, 1]} : vector<8x16xf32> to vector<8x8xf32>
    %37 = tpu.concatenate %35, %36 in 1 : vector<8x8xf32>, vector<8x8xf32> -> vector<8x16xf32>
    %38 = arith.mulf %32, %0 : vector<8x16xf32>
    %39 = arith.mulf %37, %1 : vector<8x16xf32>
    %40 = arith.addf %38, %39 : vector<8x16xf32>
    %41 = arith.truncf %40 : vector<8x16xf32> to vector<8x16xbf16>
    %cst_13 = arith.constant dense<0.000000e+00> : vector<8x8xf32>
    %42 = tpu.matmul %41, %29, %cst_13 {dimension_numbers = #tpu.dot_dimension_numbers<[1], [1], [0], [0], [0, 0, 1, 0], [], []>} : vector<8x16xbf16>, vector<8x16xbf16>, vector<8x8xf32> -> vector<8x8xf32>
    %cst_14 = arith.constant 2.500000e-01 : f32
    %43 = vector.broadcast %cst_14 : f32 to vector<8x8xf32>
    %44 = arith.mulf %42, %43 : vector<8x8xf32>
    %cst_15 = arith.constant -1.000000e+30 : f32
    %45 = vector.broadcast %cst_15 : f32 to vector<8x8xf32>
    %46 = arith.select %4, %44, %45 : vector<8x8xi1>, vector<8x8xf32>
    %cst_16 = arith.constant dense<0xFF800000> : vector<8xf32>
    %47 = vector.multi_reduction <maximumf>, %46, %cst_16 [1] : vector<8x8xf32> to vector<8xf32>
    %48 = vector.shape_cast %47 : vector<8xf32> to vector<8x1xf32>
    %49 = vector.broadcast %48 : vector<8x1xf32> to vector<8x8xf32>
    %50 = arith.subf %46, %49 : vector<8x8xf32>
    %51 = math.exp %50 : vector<8x8xf32>
    %cst_17 = arith.constant dense<0.000000e+00> : vector<8xf32>
    %52 = vector.multi_reduction <add>, %51, %cst_17 [1] : vector<8x8xf32> to vector<8xf32>
    %53 = vector.shape_cast %52 : vector<8xf32> to vector<8x1xf32>
    %54 = vector.broadcast %53 : vector<8x1xf32> to vector<8x8xf32>
    %55 = arith.divf %51, %54 : vector<8x8xf32>
    %56 = arith.truncf %55 : vector<8x8xf32> to vector<8x8xbf16>
    %cst_18 = arith.constant dense<0.000000e+00> : vector<8x16xf32>
    %57 = tpu.matmul %56, %31, %cst_18 {dimension_numbers = #tpu.dot_dimension_numbers<[1], [0], [0], [1], [0, 0, 1, 1], [], []>} : vector<8x8xbf16>, vector<8x16xbf16>, vector<8x16xf32> -> vector<8x16xf32>
    %58 = vector.extract_strided_slice %19 {offsets = [0, 16], sizes = [8, 16], strides = [1, 1]} : vector<16x128xf32> to vector<8x16xf32>
    %59 = vector.extract_strided_slice %58 {offsets = [0, 8], sizes = [8, 8], strides = [1, 1]} : vector<8x16xf32> to vector<8x8xf32>
    %cst_19 = arith.constant 0.000000e+00 : f32
    %60 = vector.broadcast %cst_19 : f32 to vector<8x8xf32>
    %61 = arith.subf %60, %59 : vector<8x8xf32>
    %62 = vector.extract_strided_slice %58 {offsets = [0, 0], sizes = [8, 8], strides = [1, 1]} : vector<8x16xf32> to vector<8x8xf32>
    %63 = tpu.concatenate %61, %62 in 1 : vector<8x8xf32>, vector<8x8xf32> -> vector<8x16xf32>
    %64 = arith.mulf %58, %0 : vector<8x16xf32>
    %65 = arith.mulf %63, %1 : vector<8x16xf32>
    %66 = arith.addf %64, %65 : vector<8x16xf32>
    %67 = arith.truncf %66 : vector<8x16xf32> to vector<8x16xbf16>
    %cst_20 = arith.constant dense<0.000000e+00> : vector<8x8xf32>
    %68 = tpu.matmul %67, %29, %cst_20 {dimension_numbers = #tpu.dot_dimension_numbers<[1], [1], [0], [0], [0, 0, 1, 0], [], []>} : vector<8x16xbf16>, vector<8x16xbf16>, vector<8x8xf32> -> vector<8x8xf32>
    %cst_21 = arith.constant 2.500000e-01 : f32
    %69 = vector.broadcast %cst_21 : f32 to vector<8x8xf32>
    %70 = arith.mulf %68, %69 : vector<8x8xf32>
    %cst_22 = arith.constant -1.000000e+30 : f32
    %71 = vector.broadcast %cst_22 : f32 to vector<8x8xf32>
    %72 = arith.select %4, %70, %71 : vector<8x8xi1>, vector<8x8xf32>
    %cst_23 = arith.constant dense<0xFF800000> : vector<8xf32>
    %73 = vector.multi_reduction <maximumf>, %72, %cst_23 [1] : vector<8x8xf32> to vector<8xf32>
    %74 = vector.shape_cast %73 : vector<8xf32> to vector<8x1xf32>
    %75 = vector.broadcast %74 : vector<8x1xf32> to vector<8x8xf32>
    %76 = arith.subf %72, %75 : vector<8x8xf32>
    %77 = math.exp %76 : vector<8x8xf32>
    %cst_24 = arith.constant dense<0.000000e+00> : vector<8xf32>
    %78 = vector.multi_reduction <add>, %77, %cst_24 [1] : vector<8x8xf32> to vector<8xf32>
    %79 = vector.shape_cast %78 : vector<8xf32> to vector<8x1xf32>
    %80 = vector.broadcast %79 : vector<8x1xf32> to vector<8x8xf32>
    %81 = arith.divf %77, %80 : vector<8x8xf32>
    %82 = arith.truncf %81 : vector<8x8xf32> to vector<8x8xbf16>
    %cst_25 = arith.constant dense<0.000000e+00> : vector<8x16xf32>
    %83 = tpu.matmul %82, %31, %cst_25 {dimension_numbers = #tpu.dot_dimension_numbers<[1], [0], [0], [1], [0, 0, 1, 1], [], []>} : vector<8x8xbf16>, vector<8x16xbf16>, vector<8x16xf32> -> vector<8x16xf32>
    %84 = vector.extract_strided_slice %19 {offsets = [0, 80], sizes = [8, 16], strides = [1, 1]} : vector<16x128xf32> to vector<8x16xf32>
    %85 = vector.extract_strided_slice %84 {offsets = [0, 8], sizes = [8, 8], strides = [1, 1]} : vector<8x16xf32> to vector<8x8xf32>
    %cst_26 = arith.constant 0.000000e+00 : f32
    %86 = vector.broadcast %cst_26 : f32 to vector<8x8xf32>
    %87 = arith.subf %86, %85 : vector<8x8xf32>
    %88 = vector.extract_strided_slice %84 {offsets = [0, 0], sizes = [8, 8], strides = [1, 1]} : vector<8x16xf32> to vector<8x8xf32>
    %89 = tpu.concatenate %87, %88 in 1 : vector<8x8xf32>, vector<8x8xf32> -> vector<8x16xf32>
    %90 = arith.mulf %84, %0 : vector<8x16xf32>
    %91 = arith.mulf %89, %1 : vector<8x16xf32>
    %92 = arith.addf %90, %91 : vector<8x16xf32>
    %93 = arith.truncf %92 : vector<8x16xf32> to vector<8x16xbf16>
    %94 = vector.extract_strided_slice %19 {offsets = [0, 112], sizes = [8, 16], strides = [1, 1]} : vector<16x128xf32> to vector<8x16xf32>
    %95 = arith.truncf %94 : vector<8x16xf32> to vector<8x16xbf16>
    %96 = vector.extract_strided_slice %19 {offsets = [0, 32], sizes = [8, 16], strides = [1, 1]} : vector<16x128xf32> to vector<8x16xf32>
    %97 = vector.extract_strided_slice %96 {offsets = [0, 8], sizes = [8, 8], strides = [1, 1]} : vector<8x16xf32> to vector<8x8xf32>
    %cst_27 = arith.constant 0.000000e+00 : f32
    %98 = vector.broadcast %cst_27 : f32 to vector<8x8xf32>
    %99 = arith.subf %98, %97 : vector<8x8xf32>
    %100 = vector.extract_strided_slice %96 {offsets = [0, 0], sizes = [8, 8], strides = [1, 1]} : vector<8x16xf32> to vector<8x8xf32>
    %101 = tpu.concatenate %99, %100 in 1 : vector<8x8xf32>, vector<8x8xf32> -> vector<8x16xf32>
    %102 = arith.mulf %96, %0 : vector<8x16xf32>
    %103 = arith.mulf %101, %1 : vector<8x16xf32>
    %104 = arith.addf %102, %103 : vector<8x16xf32>
    %105 = arith.truncf %104 : vector<8x16xf32> to vector<8x16xbf16>
    %cst_28 = arith.constant dense<0.000000e+00> : vector<8x8xf32>
    %106 = tpu.matmul %105, %93, %cst_28 {dimension_numbers = #tpu.dot_dimension_numbers<[1], [1], [0], [0], [0, 0, 1, 0], [], []>} : vector<8x16xbf16>, vector<8x16xbf16>, vector<8x8xf32> -> vector<8x8xf32>
    %cst_29 = arith.constant 2.500000e-01 : f32
    %107 = vector.broadcast %cst_29 : f32 to vector<8x8xf32>
    %108 = arith.mulf %106, %107 : vector<8x8xf32>
    %cst_30 = arith.constant -1.000000e+30 : f32
    %109 = vector.broadcast %cst_30 : f32 to vector<8x8xf32>
    %110 = arith.select %4, %108, %109 : vector<8x8xi1>, vector<8x8xf32>
    %cst_31 = arith.constant dense<0xFF800000> : vector<8xf32>
    %111 = vector.multi_reduction <maximumf>, %110, %cst_31 [1] : vector<8x8xf32> to vector<8xf32>
    %112 = vector.shape_cast %111 : vector<8xf32> to vector<8x1xf32>
    %113 = vector.broadcast %112 : vector<8x1xf32> to vector<8x8xf32>
    %114 = arith.subf %110, %113 : vector<8x8xf32>
    %115 = math.exp %114 : vector<8x8xf32>
    %cst_32 = arith.constant dense<0.000000e+00> : vector<8xf32>
    %116 = vector.multi_reduction <add>, %115, %cst_32 [1] : vector<8x8xf32> to vector<8xf32>
    %117 = vector.shape_cast %116 : vector<8xf32> to vector<8x1xf32>
    %118 = vector.broadcast %117 : vector<8x1xf32> to vector<8x8xf32>
    %119 = arith.divf %115, %118 : vector<8x8xf32>
    %120 = arith.truncf %119 : vector<8x8xf32> to vector<8x8xbf16>
    %cst_33 = arith.constant dense<0.000000e+00> : vector<8x16xf32>
    %121 = tpu.matmul %120, %95, %cst_33 {dimension_numbers = #tpu.dot_dimension_numbers<[1], [0], [0], [1], [0, 0, 1, 1], [], []>} : vector<8x8xbf16>, vector<8x16xbf16>, vector<8x16xf32> -> vector<8x16xf32>
    %122 = vector.extract_strided_slice %19 {offsets = [0, 48], sizes = [8, 16], strides = [1, 1]} : vector<16x128xf32> to vector<8x16xf32>
    %123 = vector.extract_strided_slice %122 {offsets = [0, 8], sizes = [8, 8], strides = [1, 1]} : vector<8x16xf32> to vector<8x8xf32>
    %cst_34 = arith.constant 0.000000e+00 : f32
    %124 = vector.broadcast %cst_34 : f32 to vector<8x8xf32>
    %125 = arith.subf %124, %123 : vector<8x8xf32>
    %126 = vector.extract_strided_slice %122 {offsets = [0, 0], sizes = [8, 8], strides = [1, 1]} : vector<8x16xf32> to vector<8x8xf32>
    %127 = tpu.concatenate %125, %126 in 1 : vector<8x8xf32>, vector<8x8xf32> -> vector<8x16xf32>
    %128 = arith.mulf %122, %0 : vector<8x16xf32>
    %129 = arith.mulf %127, %1 : vector<8x16xf32>
    %130 = arith.addf %128, %129 : vector<8x16xf32>
    %131 = arith.truncf %130 : vector<8x16xf32> to vector<8x16xbf16>
    %cst_35 = arith.constant dense<0.000000e+00> : vector<8x8xf32>
    %132 = tpu.matmul %131, %93, %cst_35 {dimension_numbers = #tpu.dot_dimension_numbers<[1], [1], [0], [0], [0, 0, 1, 0], [], []>} : vector<8x16xbf16>, vector<8x16xbf16>, vector<8x8xf32> -> vector<8x8xf32>
    %cst_36 = arith.constant 2.500000e-01 : f32
    %133 = vector.broadcast %cst_36 : f32 to vector<8x8xf32>
    %134 = arith.mulf %132, %133 : vector<8x8xf32>
    %cst_37 = arith.constant -1.000000e+30 : f32
    %135 = vector.broadcast %cst_37 : f32 to vector<8x8xf32>
    %136 = arith.select %4, %134, %135 : vector<8x8xi1>, vector<8x8xf32>
    %cst_38 = arith.constant dense<0xFF800000> : vector<8xf32>
    %137 = vector.multi_reduction <maximumf>, %136, %cst_38 [1] : vector<8x8xf32> to vector<8xf32>
    %138 = vector.shape_cast %137 : vector<8xf32> to vector<8x1xf32>
    %139 = vector.broadcast %138 : vector<8x1xf32> to vector<8x8xf32>
    %140 = arith.subf %136, %139 : vector<8x8xf32>
    %141 = math.exp %140 : vector<8x8xf32>
    %cst_39 = arith.constant dense<0.000000e+00> : vector<8xf32>
    %142 = vector.multi_reduction <add>, %141, %cst_39 [1] : vector<8x8xf32> to vector<8xf32>
    %143 = vector.shape_cast %142 : vector<8xf32> to vector<8x1xf32>
    %144 = vector.broadcast %143 : vector<8x1xf32> to vector<8x8xf32>
    %145 = arith.divf %141, %144 : vector<8x8xf32>
    %146 = arith.truncf %145 : vector<8x8xf32> to vector<8x8xbf16>
    %cst_40 = arith.constant dense<0.000000e+00> : vector<8x16xf32>
    %147 = tpu.matmul %146, %95, %cst_40 {dimension_numbers = #tpu.dot_dimension_numbers<[1], [0], [0], [1], [0, 0, 1, 1], [], []>} : vector<8x8xbf16>, vector<8x16xbf16>, vector<8x16xf32> -> vector<8x16xf32>
    %148 = tpu.concatenate %57, %83, %121, %147 in 1 : vector<8x16xf32>, vector<8x16xf32>, vector<8x16xf32>, vector<8x16xf32> -> vector<8x64xf32>
    %149 = vector.extract_strided_slice %19 {offsets = [8, 64], sizes = [8, 16], strides = [1, 1]} : vector<16x128xf32> to vector<8x16xf32>
    %150 = vector.extract_strided_slice %149 {offsets = [0, 8], sizes = [8, 8], strides = [1, 1]} : vector<8x16xf32> to vector<8x8xf32>
    %cst_41 = arith.constant 0.000000e+00 : f32
    %151 = vector.broadcast %cst_41 : f32 to vector<8x8xf32>
    %152 = arith.subf %151, %150 : vector<8x8xf32>
    %153 = vector.extract_strided_slice %149 {offsets = [0, 0], sizes = [8, 8], strides = [1, 1]} : vector<8x16xf32> to vector<8x8xf32>
    %154 = tpu.concatenate %152, %153 in 1 : vector<8x8xf32>, vector<8x8xf32> -> vector<8x16xf32>
    %155 = arith.mulf %149, %0 : vector<8x16xf32>
    %156 = arith.mulf %154, %1 : vector<8x16xf32>
    %157 = arith.addf %155, %156 : vector<8x16xf32>
    %158 = arith.truncf %157 : vector<8x16xf32> to vector<8x16xbf16>
    %159 = vector.extract_strided_slice %19 {offsets = [8, 96], sizes = [8, 16], strides = [1, 1]} : vector<16x128xf32> to vector<8x16xf32>
    %160 = arith.truncf %159 : vector<8x16xf32> to vector<8x16xbf16>
    %161 = vector.extract_strided_slice %19 {offsets = [8, 0], sizes = [8, 16], strides = [1, 1]} : vector<16x128xf32> to vector<8x16xf32>
    %162 = vector.extract_strided_slice %161 {offsets = [0, 8], sizes = [8, 8], strides = [1, 1]} : vector<8x16xf32> to vector<8x8xf32>
    %cst_42 = arith.constant 0.000000e+00 : f32
    %163 = vector.broadcast %cst_42 : f32 to vector<8x8xf32>
    %164 = arith.subf %163, %162 : vector<8x8xf32>
    %165 = vector.extract_strided_slice %161 {offsets = [0, 0], sizes = [8, 8], strides = [1, 1]} : vector<8x16xf32> to vector<8x8xf32>
    %166 = tpu.concatenate %164, %165 in 1 : vector<8x8xf32>, vector<8x8xf32> -> vector<8x16xf32>
    %167 = arith.mulf %161, %0 : vector<8x16xf32>
    %168 = arith.mulf %166, %1 : vector<8x16xf32>
    %169 = arith.addf %167, %168 : vector<8x16xf32>
    %170 = arith.truncf %169 : vector<8x16xf32> to vector<8x16xbf16>
    %cst_43 = arith.constant dense<0.000000e+00> : vector<8x8xf32>
    %171 = tpu.matmul %170, %158, %cst_43 {dimension_numbers = #tpu.dot_dimension_numbers<[1], [1], [0], [0], [0, 0, 1, 0], [], []>} : vector<8x16xbf16>, vector<8x16xbf16>, vector<8x8xf32> -> vector<8x8xf32>
    %cst_44 = arith.constant 2.500000e-01 : f32
    %172 = vector.broadcast %cst_44 : f32 to vector<8x8xf32>
    %173 = arith.mulf %171, %172 : vector<8x8xf32>
    %cst_45 = arith.constant -1.000000e+30 : f32
    %174 = vector.broadcast %cst_45 : f32 to vector<8x8xf32>
    %175 = arith.select %4, %173, %174 : vector<8x8xi1>, vector<8x8xf32>
    %cst_46 = arith.constant dense<0xFF800000> : vector<8xf32>
    %176 = vector.multi_reduction <maximumf>, %175, %cst_46 [1] : vector<8x8xf32> to vector<8xf32>
    %177 = vector.shape_cast %176 : vector<8xf32> to vector<8x1xf32>
    %178 = vector.broadcast %177 : vector<8x1xf32> to vector<8x8xf32>
    %179 = arith.subf %175, %178 : vector<8x8xf32>
    %180 = math.exp %179 : vector<8x8xf32>
    %cst_47 = arith.constant dense<0.000000e+00> : vector<8xf32>
    %181 = vector.multi_reduction <add>, %180, %cst_47 [1] : vector<8x8xf32> to vector<8xf32>
    %182 = vector.shape_cast %181 : vector<8xf32> to vector<8x1xf32>
    %183 = vector.broadcast %182 : vector<8x1xf32> to vector<8x8xf32>
    %184 = arith.divf %180, %183 : vector<8x8xf32>
    %185 = arith.truncf %184 : vector<8x8xf32> to vector<8x8xbf16>
    %cst_48 = arith.constant dense<0.000000e+00> : vector<8x16xf32>
    %186 = tpu.matmul %185, %160, %cst_48 {dimension_numbers = #tpu.dot_dimension_numbers<[1], [0], [0], [1], [0, 0, 1, 1], [], []>} : vector<8x8xbf16>, vector<8x16xbf16>, vector<8x16xf32> -> vector<8x16xf32>
    %187 = vector.extract_strided_slice %19 {offsets = [8, 16], sizes = [8, 16], strides = [1, 1]} : vector<16x128xf32> to vector<8x16xf32>
    %188 = vector.extract_strided_slice %187 {offsets = [0, 8], sizes = [8, 8], strides = [1, 1]} : vector<8x16xf32> to vector<8x8xf32>
    %cst_49 = arith.constant 0.000000e+00 : f32
    %189 = vector.broadcast %cst_49 : f32 to vector<8x8xf32>
    %190 = arith.subf %189, %188 : vector<8x8xf32>
    %191 = vector.extract_strided_slice %187 {offsets = [0, 0], sizes = [8, 8], strides = [1, 1]} : vector<8x16xf32> to vector<8x8xf32>
    %192 = tpu.concatenate %190, %191 in 1 : vector<8x8xf32>, vector<8x8xf32> -> vector<8x16xf32>
    %193 = arith.mulf %187, %0 : vector<8x16xf32>
    %194 = arith.mulf %192, %1 : vector<8x16xf32>
    %195 = arith.addf %193, %194 : vector<8x16xf32>
    %196 = arith.truncf %195 : vector<8x16xf32> to vector<8x16xbf16>
    %cst_50 = arith.constant dense<0.000000e+00> : vector<8x8xf32>
    %197 = tpu.matmul %196, %158, %cst_50 {dimension_numbers = #tpu.dot_dimension_numbers<[1], [1], [0], [0], [0, 0, 1, 0], [], []>} : vector<8x16xbf16>, vector<8x16xbf16>, vector<8x8xf32> -> vector<8x8xf32>
    %cst_51 = arith.constant 2.500000e-01 : f32
    %198 = vector.broadcast %cst_51 : f32 to vector<8x8xf32>
    %199 = arith.mulf %197, %198 : vector<8x8xf32>
    %cst_52 = arith.constant -1.000000e+30 : f32
    %200 = vector.broadcast %cst_52 : f32 to vector<8x8xf32>
    %201 = arith.select %4, %199, %200 : vector<8x8xi1>, vector<8x8xf32>
    %cst_53 = arith.constant dense<0xFF800000> : vector<8xf32>
    %202 = vector.multi_reduction <maximumf>, %201, %cst_53 [1] : vector<8x8xf32> to vector<8xf32>
    %203 = vector.shape_cast %202 : vector<8xf32> to vector<8x1xf32>
    %204 = vector.broadcast %203 : vector<8x1xf32> to vector<8x8xf32>
    %205 = arith.subf %201, %204 : vector<8x8xf32>
    %206 = math.exp %205 : vector<8x8xf32>
    %cst_54 = arith.constant dense<0.000000e+00> : vector<8xf32>
    %207 = vector.multi_reduction <add>, %206, %cst_54 [1] : vector<8x8xf32> to vector<8xf32>
    %208 = vector.shape_cast %207 : vector<8xf32> to vector<8x1xf32>
    %209 = vector.broadcast %208 : vector<8x1xf32> to vector<8x8xf32>
    %210 = arith.divf %206, %209 : vector<8x8xf32>
    %211 = arith.truncf %210 : vector<8x8xf32> to vector<8x8xbf16>
    %cst_55 = arith.constant dense<0.000000e+00> : vector<8x16xf32>
    %212 = tpu.matmul %211, %160, %cst_55 {dimension_numbers = #tpu.dot_dimension_numbers<[1], [0], [0], [1], [0, 0, 1, 1], [], []>} : vector<8x8xbf16>, vector<8x16xbf16>, vector<8x16xf32> -> vector<8x16xf32>
    %213 = vector.extract_strided_slice %19 {offsets = [8, 80], sizes = [8, 16], strides = [1, 1]} : vector<16x128xf32> to vector<8x16xf32>
    %214 = vector.extract_strided_slice %213 {offsets = [0, 8], sizes = [8, 8], strides = [1, 1]} : vector<8x16xf32> to vector<8x8xf32>
    %cst_56 = arith.constant 0.000000e+00 : f32
    %215 = vector.broadcast %cst_56 : f32 to vector<8x8xf32>
    %216 = arith.subf %215, %214 : vector<8x8xf32>
    %217 = vector.extract_strided_slice %213 {offsets = [0, 0], sizes = [8, 8], strides = [1, 1]} : vector<8x16xf32> to vector<8x8xf32>
    %218 = tpu.concatenate %216, %217 in 1 : vector<8x8xf32>, vector<8x8xf32> -> vector<8x16xf32>
    %219 = arith.mulf %213, %0 : vector<8x16xf32>
    %220 = arith.mulf %218, %1 : vector<8x16xf32>
    %221 = arith.addf %219, %220 : vector<8x16xf32>
    %222 = arith.truncf %221 : vector<8x16xf32> to vector<8x16xbf16>
    %223 = vector.extract_strided_slice %19 {offsets = [8, 112], sizes = [8, 16], strides = [1, 1]} : vector<16x128xf32> to vector<8x16xf32>
    %224 = arith.truncf %223 : vector<8x16xf32> to vector<8x16xbf16>
    %225 = vector.extract_strided_slice %19 {offsets = [8, 32], sizes = [8, 16], strides = [1, 1]} : vector<16x128xf32> to vector<8x16xf32>
    %226 = vector.extract_strided_slice %225 {offsets = [0, 8], sizes = [8, 8], strides = [1, 1]} : vector<8x16xf32> to vector<8x8xf32>
    %cst_57 = arith.constant 0.000000e+00 : f32
    %227 = vector.broadcast %cst_57 : f32 to vector<8x8xf32>
    %228 = arith.subf %227, %226 : vector<8x8xf32>
    %229 = vector.extract_strided_slice %225 {offsets = [0, 0], sizes = [8, 8], strides = [1, 1]} : vector<8x16xf32> to vector<8x8xf32>
    %230 = tpu.concatenate %228, %229 in 1 : vector<8x8xf32>, vector<8x8xf32> -> vector<8x16xf32>
    %231 = arith.mulf %225, %0 : vector<8x16xf32>
    %232 = arith.mulf %230, %1 : vector<8x16xf32>
    %233 = arith.addf %231, %232 : vector<8x16xf32>
    %234 = arith.truncf %233 : vector<8x16xf32> to vector<8x16xbf16>
    %cst_58 = arith.constant dense<0.000000e+00> : vector<8x8xf32>
    %235 = tpu.matmul %234, %222, %cst_58 {dimension_numbers = #tpu.dot_dimension_numbers<[1], [1], [0], [0], [0, 0, 1, 0], [], []>} : vector<8x16xbf16>, vector<8x16xbf16>, vector<8x8xf32> -> vector<8x8xf32>
    %cst_59 = arith.constant 2.500000e-01 : f32
    %236 = vector.broadcast %cst_59 : f32 to vector<8x8xf32>
    %237 = arith.mulf %235, %236 : vector<8x8xf32>
    %cst_60 = arith.constant -1.000000e+30 : f32
    %238 = vector.broadcast %cst_60 : f32 to vector<8x8xf32>
    %239 = arith.select %4, %237, %238 : vector<8x8xi1>, vector<8x8xf32>
    %cst_61 = arith.constant dense<0xFF800000> : vector<8xf32>
    %240 = vector.multi_reduction <maximumf>, %239, %cst_61 [1] : vector<8x8xf32> to vector<8xf32>
    %241 = vector.shape_cast %240 : vector<8xf32> to vector<8x1xf32>
    %242 = vector.broadcast %241 : vector<8x1xf32> to vector<8x8xf32>
    %243 = arith.subf %239, %242 : vector<8x8xf32>
    %244 = math.exp %243 : vector<8x8xf32>
    %cst_62 = arith.constant dense<0.000000e+00> : vector<8xf32>
    %245 = vector.multi_reduction <add>, %244, %cst_62 [1] : vector<8x8xf32> to vector<8xf32>
    %246 = vector.shape_cast %245 : vector<8xf32> to vector<8x1xf32>
    %247 = vector.broadcast %246 : vector<8x1xf32> to vector<8x8xf32>
    %248 = arith.divf %244, %247 : vector<8x8xf32>
    %249 = arith.truncf %248 : vector<8x8xf32> to vector<8x8xbf16>
    %cst_63 = arith.constant dense<0.000000e+00> : vector<8x16xf32>
    %250 = tpu.matmul %249, %224, %cst_63 {dimension_numbers = #tpu.dot_dimension_numbers<[1], [0], [0], [1], [0, 0, 1, 1], [], []>} : vector<8x8xbf16>, vector<8x16xbf16>, vector<8x16xf32> -> vector<8x16xf32>
    %251 = vector.extract_strided_slice %19 {offsets = [8, 48], sizes = [8, 16], strides = [1, 1]} : vector<16x128xf32> to vector<8x16xf32>
    %252 = vector.extract_strided_slice %251 {offsets = [0, 8], sizes = [8, 8], strides = [1, 1]} : vector<8x16xf32> to vector<8x8xf32>
    %cst_64 = arith.constant 0.000000e+00 : f32
    %253 = vector.broadcast %cst_64 : f32 to vector<8x8xf32>
    %254 = arith.subf %253, %252 : vector<8x8xf32>
    %255 = vector.extract_strided_slice %251 {offsets = [0, 0], sizes = [8, 8], strides = [1, 1]} : vector<8x16xf32> to vector<8x8xf32>
    %256 = tpu.concatenate %254, %255 in 1 : vector<8x8xf32>, vector<8x8xf32> -> vector<8x16xf32>
    %257 = arith.mulf %251, %0 : vector<8x16xf32>
    %258 = arith.mulf %256, %1 : vector<8x16xf32>
    %259 = arith.addf %257, %258 : vector<8x16xf32>
    %260 = arith.truncf %259 : vector<8x16xf32> to vector<8x16xbf16>
    %cst_65 = arith.constant dense<0.000000e+00> : vector<8x8xf32>
    %261 = tpu.matmul %260, %222, %cst_65 {dimension_numbers = #tpu.dot_dimension_numbers<[1], [1], [0], [0], [0, 0, 1, 0], [], []>} : vector<8x16xbf16>, vector<8x16xbf16>, vector<8x8xf32> -> vector<8x8xf32>
    %cst_66 = arith.constant 2.500000e-01 : f32
    %262 = vector.broadcast %cst_66 : f32 to vector<8x8xf32>
    %263 = arith.mulf %261, %262 : vector<8x8xf32>
    %cst_67 = arith.constant -1.000000e+30 : f32
    %264 = vector.broadcast %cst_67 : f32 to vector<8x8xf32>
    %265 = arith.select %4, %263, %264 : vector<8x8xi1>, vector<8x8xf32>
    %cst_68 = arith.constant dense<0xFF800000> : vector<8xf32>
    %266 = vector.multi_reduction <maximumf>, %265, %cst_68 [1] : vector<8x8xf32> to vector<8xf32>
    %267 = vector.shape_cast %266 : vector<8xf32> to vector<8x1xf32>
    %268 = vector.broadcast %267 : vector<8x1xf32> to vector<8x8xf32>
    %269 = arith.subf %265, %268 : vector<8x8xf32>
    %270 = math.exp %269 : vector<8x8xf32>
    %cst_69 = arith.constant dense<0.000000e+00> : vector<8xf32>
    %271 = vector.multi_reduction <add>, %270, %cst_69 [1] : vector<8x8xf32> to vector<8xf32>
    %272 = vector.shape_cast %271 : vector<8xf32> to vector<8x1xf32>
    %273 = vector.broadcast %272 : vector<8x1xf32> to vector<8x8xf32>
    %274 = arith.divf %270, %273 : vector<8x8xf32>
    %275 = arith.truncf %274 : vector<8x8xf32> to vector<8x8xbf16>
    %cst_70 = arith.constant dense<0.000000e+00> : vector<8x16xf32>
    %276 = tpu.matmul %275, %224, %cst_70 {dimension_numbers = #tpu.dot_dimension_numbers<[1], [0], [0], [1], [0, 0, 1, 1], [], []>} : vector<8x8xbf16>, vector<8x16xbf16>, vector<8x16xf32> -> vector<8x16xf32>
    %277 = tpu.concatenate %186, %212, %250, %276 in 1 : vector<8x16xf32>, vector<8x16xf32>, vector<8x16xf32>, vector<8x16xf32> -> vector<8x64xf32>
    %278 = tpu.concatenate %148, %277 in 0 : vector<8x64xf32>, vector<8x64xf32> -> vector<16x64xf32>
    %279 = arith.truncf %278 : vector<16x64xf32> to vector<16x64xbf16>
    %c0_71 = arith.constant 0 : index
    %c0_72 = arith.constant 0 : index
    %c0_73 = arith.constant 0 : index
    %280 = vector.load %arg4[%c0_71, %c0_72, %c0_73] : memref<2x64x64xbf16, #tpu.memory_space<vmem>>, vector<1x64x64xbf16>
    %281 = vector.shape_cast %280 : vector<1x64x64xbf16> to vector<64x64xbf16>
    %cst_74 = arith.constant dense<0.000000e+00> : vector<16x64xf32>
    %282 = tpu.matmul %279, %281, %cst_74 {dimension_numbers = #tpu.dot_dimension_numbers<[1], [0], [0], [1], [0, 0, 1, 1], [], []>} : vector<16x64xbf16>, vector<64x64xbf16>, vector<16x64xf32> -> vector<16x64xf32>
    %283 = arith.addf %5, %282 : vector<16x64xf32>
    %284 = arith.mulf %283, %283 : vector<16x64xf32>
    %cst_75 = arith.constant dense<0.000000e+00> : vector<16xf32>
    %285 = vector.multi_reduction <add>, %284, %cst_75 [1] : vector<16x64xf32> to vector<16xf32>
    %286 = vector.shape_cast %285 : vector<16xf32> to vector<16x1xf32>
    %cst_76 = arith.constant 6.400000e+01 : f32
    %287 = vector.broadcast %cst_76 : f32 to vector<16x1xf32>
    %288 = arith.divf %286, %287 : vector<16x1xf32>
    %cst_77 = arith.constant 9.99999974E-6 : f32
    %289 = vector.broadcast %cst_77 : f32 to vector<16x1xf32>
    %290 = arith.addf %288, %289 : vector<16x1xf32>
    %291 = math.rsqrt %290 : vector<16x1xf32>
    %292 = vector.broadcast %291 : vector<16x1xf32> to vector<16x64xf32>
    %293 = arith.mulf %283, %292 : vector<16x64xf32>
    %294 = arith.truncf %293 : vector<16x64xf32> to vector<16x64xbf16>
    %c0_78 = arith.constant 0 : index
    %c0_79 = arith.constant 0 : index
    %c0_80 = arith.constant 0 : index
    %295 = vector.load %arg5[%c0_78, %c0_79, %c0_80] : memref<2x64x4xf32, #tpu.memory_space<vmem>>, vector<1x64x4xf32>
    %296 = vector.shape_cast %295 : vector<1x64x4xf32> to vector<64x4xf32>
    %cst_81 = arith.constant dense<0.000000e+00> : vector<16x4xf32>
    %297 = tpu.matmul %293, %296, %cst_81 {dimension_numbers = #tpu.dot_dimension_numbers<[1], [0], [0], [1], [0, 0, 1, 1], [], []>} : vector<16x64xf32>, vector<64x4xf32>, vector<16x4xf32> -> vector<16x4xf32>
    %cst_82 = arith.constant dense<0xFF800000> : vector<16xf32>
    %298 = vector.multi_reduction <maximumf>, %297, %cst_82 [1] : vector<16x4xf32> to vector<16xf32>
    %299 = vector.shape_cast %298 : vector<16xf32> to vector<16x1xf32>
    %300 = vector.broadcast %299 : vector<16x1xf32> to vector<16x4xf32>
    %301 = arith.subf %297, %300 : vector<16x4xf32>
    %302 = math.exp %301 : vector<16x4xf32>
    %cst_83 = arith.constant dense<0.000000e+00> : vector<16xf32>
    %303 = vector.multi_reduction <add>, %302, %cst_83 [1] : vector<16x4xf32> to vector<16xf32>
    %304 = vector.shape_cast %303 : vector<16xf32> to vector<16x1xf32>
    %305 = vector.broadcast %304 : vector<16x1xf32> to vector<16x4xf32>
    %306 = arith.divf %302, %305 : vector<16x4xf32>
    %307 = tpu.iota {dimensions = array<i32: 1>} : vector<16x4xi32>
    %308 = vector.extract_strided_slice %306 {offsets = [0, 0], sizes = [16, 1], strides = [1, 1]} : vector<16x4xf32> to vector<16x1xf32>
    %309 = vector.broadcast %308 : vector<16x1xf32> to vector<16x4xf32>
    %310 = arith.cmpf ogt, %306, %309 : vector<16x4xf32>
    %311 = vector.broadcast %308 : vector<16x1xf32> to vector<16x4xf32>
    %312 = arith.cmpf oeq, %306, %311 : vector<16x4xf32>
    %c0_i32 = arith.constant 0 : i32
    %313 = vector.broadcast %c0_i32 : i32 to vector<16x4xi32>
    %314 = arith.cmpi slt, %307, %313 : vector<16x4xi32>
    %315 = arith.andi %312, %314 : vector<16x4xi1>
    %316 = arith.ori %310, %315 : vector<16x4xi1>
    %317 = arith.extui %316 : vector<16x4xi1> to vector<16x4xi32>
    %cst_84 = arith.constant dense<0> : vector<16xi32>
    %318 = vector.multi_reduction <add>, %317, %cst_84 [1] : vector<16x4xi32> to vector<16xi32>
    %319 = vector.shape_cast %318 : vector<16xi32> to vector<16x1xi32>
    %c2_i32 = arith.constant 2 : i32
    %320 = vector.broadcast %c2_i32 : i32 to vector<16x1xi32>
    %321 = arith.cmpi slt, %319, %320 : vector<16x1xi32>
    %c0_i32_85 = arith.constant 0 : i32
    %322 = vector.broadcast %c0_i32_85 : i32 to vector<16x4xi32>
    %323 = arith.cmpi eq, %307, %322 : vector<16x4xi32>
    %324 = vector.broadcast %321 : vector<16x1xi1> to vector<16x4xi1>
    %325 = arith.andi %324, %323 : vector<16x4xi1>
    %326 = vector.extract_strided_slice %306 {offsets = [0, 1], sizes = [16, 1], strides = [1, 1]} : vector<16x4xf32> to vector<16x1xf32>
    %327 = vector.broadcast %326 : vector<16x1xf32> to vector<16x4xf32>
    %328 = arith.cmpf ogt, %306, %327 : vector<16x4xf32>
    %329 = vector.broadcast %326 : vector<16x1xf32> to vector<16x4xf32>
    %330 = arith.cmpf oeq, %306, %329 : vector<16x4xf32>
    %c1_i32 = arith.constant 1 : i32
    %331 = vector.broadcast %c1_i32 : i32 to vector<16x4xi32>
    %332 = arith.cmpi slt, %307, %331 : vector<16x4xi32>
    %333 = arith.andi %330, %332 : vector<16x4xi1>
    %334 = arith.ori %328, %333 : vector<16x4xi1>
    %335 = arith.extui %334 : vector<16x4xi1> to vector<16x4xi32>
    %cst_86 = arith.constant dense<0> : vector<16xi32>
    %336 = vector.multi_reduction <add>, %335, %cst_86 [1] : vector<16x4xi32> to vector<16xi32>
    %337 = vector.shape_cast %336 : vector<16xi32> to vector<16x1xi32>
    %c2_i32_87 = arith.constant 2 : i32
    %338 = vector.broadcast %c2_i32_87 : i32 to vector<16x1xi32>
    %339 = arith.cmpi slt, %337, %338 : vector<16x1xi32>
    %c1_i32_88 = arith.constant 1 : i32
    %340 = vector.broadcast %c1_i32_88 : i32 to vector<16x4xi32>
    %341 = arith.cmpi eq, %307, %340 : vector<16x4xi32>
    %342 = vector.broadcast %339 : vector<16x1xi1> to vector<16x4xi1>
    %343 = arith.andi %342, %341 : vector<16x4xi1>
    %344 = arith.ori %325, %343 : vector<16x4xi1>
    %345 = vector.extract_strided_slice %306 {offsets = [0, 2], sizes = [16, 1], strides = [1, 1]} : vector<16x4xf32> to vector<16x1xf32>
    %346 = vector.broadcast %345 : vector<16x1xf32> to vector<16x4xf32>
    %347 = arith.cmpf ogt, %306, %346 : vector<16x4xf32>
    %348 = vector.broadcast %345 : vector<16x1xf32> to vector<16x4xf32>
    %349 = arith.cmpf oeq, %306, %348 : vector<16x4xf32>
    %c2_i32_89 = arith.constant 2 : i32
    %350 = vector.broadcast %c2_i32_89 : i32 to vector<16x4xi32>
    %351 = arith.cmpi slt, %307, %350 : vector<16x4xi32>
    %352 = arith.andi %349, %351 : vector<16x4xi1>
    %353 = arith.ori %347, %352 : vector<16x4xi1>
    %354 = arith.extui %353 : vector<16x4xi1> to vector<16x4xi32>
    %cst_90 = arith.constant dense<0> : vector<16xi32>
    %355 = vector.multi_reduction <add>, %354, %cst_90 [1] : vector<16x4xi32> to vector<16xi32>
    %356 = vector.shape_cast %355 : vector<16xi32> to vector<16x1xi32>
    %c2_i32_91 = arith.constant 2 : i32
    %357 = vector.broadcast %c2_i32_91 : i32 to vector<16x1xi32>
    %358 = arith.cmpi slt, %356, %357 : vector<16x1xi32>
    %c2_i32_92 = arith.constant 2 : i32
    %359 = vector.broadcast %c2_i32_92 : i32 to vector<16x4xi32>
    %360 = arith.cmpi eq, %307, %359 : vector<16x4xi32>
    %361 = vector.broadcast %358 : vector<16x1xi1> to vector<16x4xi1>
    %362 = arith.andi %361, %360 : vector<16x4xi1>
    %363 = arith.ori %344, %362 : vector<16x4xi1>
    %364 = vector.extract_strided_slice %306 {offsets = [0, 3], sizes = [16, 1], strides = [1, 1]} : vector<16x4xf32> to vector<16x1xf32>
    %365 = vector.broadcast %364 : vector<16x1xf32> to vector<16x4xf32>
    %366 = arith.cmpf ogt, %306, %365 : vector<16x4xf32>
    %367 = vector.broadcast %364 : vector<16x1xf32> to vector<16x4xf32>
    %368 = arith.cmpf oeq, %306, %367 : vector<16x4xf32>
    %c3_i32 = arith.constant 3 : i32
    %369 = vector.broadcast %c3_i32 : i32 to vector<16x4xi32>
    %370 = arith.cmpi slt, %307, %369 : vector<16x4xi32>
    %371 = arith.andi %368, %370 : vector<16x4xi1>
    %372 = arith.ori %366, %371 : vector<16x4xi1>
    %373 = arith.extui %372 : vector<16x4xi1> to vector<16x4xi32>
    %cst_93 = arith.constant dense<0> : vector<16xi32>
    %374 = vector.multi_reduction <add>, %373, %cst_93 [1] : vector<16x4xi32> to vector<16xi32>
    %375 = vector.shape_cast %374 : vector<16xi32> to vector<16x1xi32>
    %c2_i32_94 = arith.constant 2 : i32
    %376 = vector.broadcast %c2_i32_94 : i32 to vector<16x1xi32>
    %377 = arith.cmpi slt, %375, %376 : vector<16x1xi32>
    %c3_i32_95 = arith.constant 3 : i32
    %378 = vector.broadcast %c3_i32_95 : i32 to vector<16x4xi32>
    %379 = arith.cmpi eq, %307, %378 : vector<16x4xi32>
    %380 = vector.broadcast %377 : vector<16x1xi1> to vector<16x4xi1>
    %381 = arith.andi %380, %379 : vector<16x4xi1>
    %382 = arith.ori %363, %381 : vector<16x4xi1>
    %cst_96 = arith.constant 0.000000e+00 : f32
    %383 = vector.broadcast %cst_96 : f32 to vector<16x4xf32>
    %384 = arith.select %382, %306, %383 : vector<16x4xi1>, vector<16x4xf32>
    %cst_97 = arith.constant dense<0.000000e+00> : vector<16xf32>
    %385 = vector.multi_reduction <add>, %384, %cst_97 [1] : vector<16x4xf32> to vector<16xf32>
    %386 = vector.shape_cast %385 : vector<16xf32> to vector<16x1xf32>
    %387 = vector.broadcast %386 : vector<16x1xf32> to vector<16x4xf32>
    %388 = arith.divf %384, %387 : vector<16x4xf32>
    %cst_98 = arith.constant 0.000000e+00 : f32
    %389 = vector.broadcast %cst_98 : f32 to vector<16x64xf32>
    %c0_99 = arith.constant 0 : index
    %c0_100 = arith.constant 0 : index
    %c0_101 = arith.constant 0 : index
    %c0_102 = arith.constant 0 : index
    %390 = vector.load %arg6[%c0_99, %c0_100, %c0_101, %c0_102] : memref<2x4x64x256xbf16, #tpu.memory_space<vmem>>, vector<1x1x64x256xbf16>
    %391 = vector.shape_cast %390 : vector<1x1x64x256xbf16> to vector<64x256xbf16>
    %cst_103 = arith.constant dense<0.000000e+00> : vector<16x256xf32>
    %392 = tpu.matmul %294, %391, %cst_103 {dimension_numbers = #tpu.dot_dimension_numbers<[1], [0], [0], [1], [0, 0, 1, 1], [], []>} : vector<16x64xbf16>, vector<64x256xbf16>, vector<16x256xf32> -> vector<16x256xf32>
    %393 = vector.extract_strided_slice %392 {offsets = [0, 0], sizes = [16, 128], strides = [1, 1]} : vector<16x256xf32> to vector<16x128xf32>
    %394 = arith.negf %393 : vector<16x128xf32>
    %395 = math.exp %394 : vector<16x128xf32>
    %cst_104 = arith.constant 1.000000e+00 : f32
    %396 = vector.broadcast %cst_104 : f32 to vector<16x128xf32>
    %397 = arith.addf %396, %395 : vector<16x128xf32>
    %398 = arith.divf %396, %397 : vector<16x128xf32>
    %399 = arith.mulf %393, %398 : vector<16x128xf32>
    %400 = vector.extract_strided_slice %392 {offsets = [0, 128], sizes = [16, 128], strides = [1, 1]} : vector<16x256xf32> to vector<16x128xf32>
    %401 = arith.mulf %399, %400 : vector<16x128xf32>
    %402 = vector.extract_strided_slice %388 {offsets = [0, 0], sizes = [16, 1], strides = [1, 1]} : vector<16x4xf32> to vector<16x1xf32>
    %403 = vector.broadcast %402 : vector<16x1xf32> to vector<16x128xf32>
    %404 = arith.mulf %401, %403 : vector<16x128xf32>
    %405 = arith.truncf %404 : vector<16x128xf32> to vector<16x128xbf16>
    %c0_105 = arith.constant 0 : index
    %c0_106 = arith.constant 0 : index
    %c0_107 = arith.constant 0 : index
    %c0_108 = arith.constant 0 : index
    %406 = vector.load %arg7[%c0_105, %c0_106, %c0_107, %c0_108] : memref<2x4x128x64xbf16, #tpu.memory_space<vmem>>, vector<1x1x128x64xbf16>
    %407 = vector.shape_cast %406 : vector<1x1x128x64xbf16> to vector<128x64xbf16>
    %cst_109 = arith.constant dense<0.000000e+00> : vector<16x64xf32>
    %408 = tpu.matmul %405, %407, %cst_109 {dimension_numbers = #tpu.dot_dimension_numbers<[1], [0], [0], [1], [0, 0, 1, 1], [], []>} : vector<16x128xbf16>, vector<128x64xbf16>, vector<16x64xf32> -> vector<16x64xf32>
    %409 = arith.addf %389, %408 : vector<16x64xf32>
    %c0_110 = arith.constant 0 : index
    %c1 = arith.constant 1 : index
    %c0_111 = arith.constant 0 : index
    %c0_112 = arith.constant 0 : index
    %410 = vector.load %arg6[%c0_110, %c1, %c0_111, %c0_112] : memref<2x4x64x256xbf16, #tpu.memory_space<vmem>>, vector<1x1x64x256xbf16>
    %411 = vector.shape_cast %410 : vector<1x1x64x256xbf16> to vector<64x256xbf16>
    %cst_113 = arith.constant dense<0.000000e+00> : vector<16x256xf32>
    %412 = tpu.matmul %294, %411, %cst_113 {dimension_numbers = #tpu.dot_dimension_numbers<[1], [0], [0], [1], [0, 0, 1, 1], [], []>} : vector<16x64xbf16>, vector<64x256xbf16>, vector<16x256xf32> -> vector<16x256xf32>
    %413 = vector.extract_strided_slice %412 {offsets = [0, 0], sizes = [16, 128], strides = [1, 1]} : vector<16x256xf32> to vector<16x128xf32>
    %414 = arith.negf %413 : vector<16x128xf32>
    %415 = math.exp %414 : vector<16x128xf32>
    %cst_114 = arith.constant 1.000000e+00 : f32
    %416 = vector.broadcast %cst_114 : f32 to vector<16x128xf32>
    %417 = arith.addf %416, %415 : vector<16x128xf32>
    %418 = arith.divf %416, %417 : vector<16x128xf32>
    %419 = arith.mulf %413, %418 : vector<16x128xf32>
    %420 = vector.extract_strided_slice %412 {offsets = [0, 128], sizes = [16, 128], strides = [1, 1]} : vector<16x256xf32> to vector<16x128xf32>
    %421 = arith.mulf %419, %420 : vector<16x128xf32>
    %422 = vector.extract_strided_slice %388 {offsets = [0, 1], sizes = [16, 1], strides = [1, 1]} : vector<16x4xf32> to vector<16x1xf32>
    %423 = vector.broadcast %422 : vector<16x1xf32> to vector<16x128xf32>
    %424 = arith.mulf %421, %423 : vector<16x128xf32>
    %425 = arith.truncf %424 : vector<16x128xf32> to vector<16x128xbf16>
    %c0_115 = arith.constant 0 : index
    %c1_116 = arith.constant 1 : index
    %c0_117 = arith.constant 0 : index
    %c0_118 = arith.constant 0 : index
    %426 = vector.load %arg7[%c0_115, %c1_116, %c0_117, %c0_118] : memref<2x4x128x64xbf16, #tpu.memory_space<vmem>>, vector<1x1x128x64xbf16>
    %427 = vector.shape_cast %426 : vector<1x1x128x64xbf16> to vector<128x64xbf16>
    %cst_119 = arith.constant dense<0.000000e+00> : vector<16x64xf32>
    %428 = tpu.matmul %425, %427, %cst_119 {dimension_numbers = #tpu.dot_dimension_numbers<[1], [0], [0], [1], [0, 0, 1, 1], [], []>} : vector<16x128xbf16>, vector<128x64xbf16>, vector<16x64xf32> -> vector<16x64xf32>
    %429 = arith.addf %409, %428 : vector<16x64xf32>
    %c0_120 = arith.constant 0 : index
    %c2 = arith.constant 2 : index
    %c0_121 = arith.constant 0 : index
    %c0_122 = arith.constant 0 : index
    %430 = vector.load %arg6[%c0_120, %c2, %c0_121, %c0_122] : memref<2x4x64x256xbf16, #tpu.memory_space<vmem>>, vector<1x1x64x256xbf16>
    %431 = vector.shape_cast %430 : vector<1x1x64x256xbf16> to vector<64x256xbf16>
    %cst_123 = arith.constant dense<0.000000e+00> : vector<16x256xf32>
    %432 = tpu.matmul %294, %431, %cst_123 {dimension_numbers = #tpu.dot_dimension_numbers<[1], [0], [0], [1], [0, 0, 1, 1], [], []>} : vector<16x64xbf16>, vector<64x256xbf16>, vector<16x256xf32> -> vector<16x256xf32>
    %433 = vector.extract_strided_slice %432 {offsets = [0, 0], sizes = [16, 128], strides = [1, 1]} : vector<16x256xf32> to vector<16x128xf32>
    %434 = arith.negf %433 : vector<16x128xf32>
    %435 = math.exp %434 : vector<16x128xf32>
    %cst_124 = arith.constant 1.000000e+00 : f32
    %436 = vector.broadcast %cst_124 : f32 to vector<16x128xf32>
    %437 = arith.addf %436, %435 : vector<16x128xf32>
    %438 = arith.divf %436, %437 : vector<16x128xf32>
    %439 = arith.mulf %433, %438 : vector<16x128xf32>
    %440 = vector.extract_strided_slice %432 {offsets = [0, 128], sizes = [16, 128], strides = [1, 1]} : vector<16x256xf32> to vector<16x128xf32>
    %441 = arith.mulf %439, %440 : vector<16x128xf32>
    %442 = vector.extract_strided_slice %388 {offsets = [0, 2], sizes = [16, 1], strides = [1, 1]} : vector<16x4xf32> to vector<16x1xf32>
    %443 = vector.broadcast %442 : vector<16x1xf32> to vector<16x128xf32>
    %444 = arith.mulf %441, %443 : vector<16x128xf32>
    %445 = arith.truncf %444 : vector<16x128xf32> to vector<16x128xbf16>
    %c0_125 = arith.constant 0 : index
    %c2_126 = arith.constant 2 : index
    %c0_127 = arith.constant 0 : index
    %c0_128 = arith.constant 0 : index
    %446 = vector.load %arg7[%c0_125, %c2_126, %c0_127, %c0_128] : memref<2x4x128x64xbf16, #tpu.memory_space<vmem>>, vector<1x1x128x64xbf16>
    %447 = vector.shape_cast %446 : vector<1x1x128x64xbf16> to vector<128x64xbf16>
    %cst_129 = arith.constant dense<0.000000e+00> : vector<16x64xf32>
    %448 = tpu.matmul %445, %447, %cst_129 {dimension_numbers = #tpu.dot_dimension_numbers<[1], [0], [0], [1], [0, 0, 1, 1], [], []>} : vector<16x128xbf16>, vector<128x64xbf16>, vector<16x64xf32> -> vector<16x64xf32>
    %449 = arith.addf %429, %448 : vector<16x64xf32>
    %c0_130 = arith.constant 0 : index
    %c3 = arith.constant 3 : index
    %c0_131 = arith.constant 0 : index
    %c0_132 = arith.constant 0 : index
    %450 = vector.load %arg6[%c0_130, %c3, %c0_131, %c0_132] : memref<2x4x64x256xbf16, #tpu.memory_space<vmem>>, vector<1x1x64x256xbf16>
    %451 = vector.shape_cast %450 : vector<1x1x64x256xbf16> to vector<64x256xbf16>
    %cst_133 = arith.constant dense<0.000000e+00> : vector<16x256xf32>
    %452 = tpu.matmul %294, %451, %cst_133 {dimension_numbers = #tpu.dot_dimension_numbers<[1], [0], [0], [1], [0, 0, 1, 1], [], []>} : vector<16x64xbf16>, vector<64x256xbf16>, vector<16x256xf32> -> vector<16x256xf32>
    %453 = vector.extract_strided_slice %452 {offsets = [0, 0], sizes = [16, 128], strides = [1, 1]} : vector<16x256xf32> to vector<16x128xf32>
    %454 = arith.negf %453 : vector<16x128xf32>
    %455 = math.exp %454 : vector<16x128xf32>
    %cst_134 = arith.constant 1.000000e+00 : f32
    %456 = vector.broadcast %cst_134 : f32 to vector<16x128xf32>
    %457 = arith.addf %456, %455 : vector<16x128xf32>
    %458 = arith.divf %456, %457 : vector<16x128xf32>
    %459 = arith.mulf %453, %458 : vector<16x128xf32>
    %460 = vector.extract_strided_slice %452 {offsets = [0, 128], sizes = [16, 128], strides = [1, 1]} : vector<16x256xf32> to vector<16x128xf32>
    %461 = arith.mulf %459, %460 : vector<16x128xf32>
    %462 = vector.extract_strided_slice %388 {offsets = [0, 3], sizes = [16, 1], strides = [1, 1]} : vector<16x4xf32> to vector<16x1xf32>
    %463 = vector.broadcast %462 : vector<16x1xf32> to vector<16x128xf32>
    %464 = arith.mulf %461, %463 : vector<16x128xf32>
    %465 = arith.truncf %464 : vector<16x128xf32> to vector<16x128xbf16>
    %c0_135 = arith.constant 0 : index
    %c3_136 = arith.constant 3 : index
    %c0_137 = arith.constant 0 : index
    %c0_138 = arith.constant 0 : index
    %466 = vector.load %arg7[%c0_135, %c3_136, %c0_137, %c0_138] : memref<2x4x128x64xbf16, #tpu.memory_space<vmem>>, vector<1x1x128x64xbf16>
    %467 = vector.shape_cast %466 : vector<1x1x128x64xbf16> to vector<128x64xbf16>
    %cst_139 = arith.constant dense<0.000000e+00> : vector<16x64xf32>
    %468 = tpu.matmul %465, %467, %cst_139 {dimension_numbers = #tpu.dot_dimension_numbers<[1], [0], [0], [1], [0, 0, 1, 1], [], []>} : vector<16x128xbf16>, vector<128x64xbf16>, vector<16x64xf32> -> vector<16x64xf32>
    %469 = arith.addf %449, %468 : vector<16x64xf32>
    %470 = arith.addf %283, %469 : vector<16x64xf32>
    %471 = arith.mulf %470, %470 : vector<16x64xf32>
    %cst_140 = arith.constant dense<0.000000e+00> : vector<16xf32>
    %472 = vector.multi_reduction <add>, %471, %cst_140 [1] : vector<16x64xf32> to vector<16xf32>
    %473 = vector.shape_cast %472 : vector<16xf32> to vector<16x1xf32>
    %cst_141 = arith.constant 6.400000e+01 : f32
    %474 = vector.broadcast %cst_141 : f32 to vector<16x1xf32>
    %475 = arith.divf %473, %474 : vector<16x1xf32>
    %cst_142 = arith.constant 9.99999974E-6 : f32
    %476 = vector.broadcast %cst_142 : f32 to vector<16x1xf32>
    %477 = arith.addf %475, %476 : vector<16x1xf32>
    %478 = math.rsqrt %477 : vector<16x1xf32>
    %479 = vector.broadcast %478 : vector<16x1xf32> to vector<16x64xf32>
    %480 = arith.mulf %470, %479 : vector<16x64xf32>
    %481 = arith.truncf %480 : vector<16x64xf32> to vector<16x64xbf16>
    %c1_143 = arith.constant 1 : index
    %c0_144 = arith.constant 0 : index
    %c0_145 = arith.constant 0 : index
    %482 = vector.load %arg3[%c1_143, %c0_144, %c0_145] : memref<2x64x128xbf16, #tpu.memory_space<vmem>>, vector<1x64x128xbf16>
    %483 = vector.shape_cast %482 : vector<1x64x128xbf16> to vector<64x128xbf16>
    %cst_146 = arith.constant dense<0.000000e+00> : vector<16x128xf32>
    %484 = tpu.matmul %481, %483, %cst_146 {dimension_numbers = #tpu.dot_dimension_numbers<[1], [0], [0], [1], [0, 0, 1, 1], [], []>} : vector<16x64xbf16>, vector<64x128xbf16>, vector<16x128xf32> -> vector<16x128xf32>
    %485 = vector.extract_strided_slice %484 {offsets = [0, 64], sizes = [8, 16], strides = [1, 1]} : vector<16x128xf32> to vector<8x16xf32>
    %486 = vector.extract_strided_slice %485 {offsets = [0, 8], sizes = [8, 8], strides = [1, 1]} : vector<8x16xf32> to vector<8x8xf32>
    %cst_147 = arith.constant 0.000000e+00 : f32
    %487 = vector.broadcast %cst_147 : f32 to vector<8x8xf32>
    %488 = arith.subf %487, %486 : vector<8x8xf32>
    %489 = vector.extract_strided_slice %485 {offsets = [0, 0], sizes = [8, 8], strides = [1, 1]} : vector<8x16xf32> to vector<8x8xf32>
    %490 = tpu.concatenate %488, %489 in 1 : vector<8x8xf32>, vector<8x8xf32> -> vector<8x16xf32>
    %491 = arith.mulf %485, %0 : vector<8x16xf32>
    %492 = arith.mulf %490, %1 : vector<8x16xf32>
    %493 = arith.addf %491, %492 : vector<8x16xf32>
    %494 = arith.truncf %493 : vector<8x16xf32> to vector<8x16xbf16>
    %495 = vector.extract_strided_slice %484 {offsets = [0, 96], sizes = [8, 16], strides = [1, 1]} : vector<16x128xf32> to vector<8x16xf32>
    %496 = arith.truncf %495 : vector<8x16xf32> to vector<8x16xbf16>
    %497 = vector.extract_strided_slice %484 {offsets = [0, 0], sizes = [8, 16], strides = [1, 1]} : vector<16x128xf32> to vector<8x16xf32>
    %498 = vector.extract_strided_slice %497 {offsets = [0, 8], sizes = [8, 8], strides = [1, 1]} : vector<8x16xf32> to vector<8x8xf32>
    %cst_148 = arith.constant 0.000000e+00 : f32
    %499 = vector.broadcast %cst_148 : f32 to vector<8x8xf32>
    %500 = arith.subf %499, %498 : vector<8x8xf32>
    %501 = vector.extract_strided_slice %497 {offsets = [0, 0], sizes = [8, 8], strides = [1, 1]} : vector<8x16xf32> to vector<8x8xf32>
    %502 = tpu.concatenate %500, %501 in 1 : vector<8x8xf32>, vector<8x8xf32> -> vector<8x16xf32>
    %503 = arith.mulf %497, %0 : vector<8x16xf32>
    %504 = arith.mulf %502, %1 : vector<8x16xf32>
    %505 = arith.addf %503, %504 : vector<8x16xf32>
    %506 = arith.truncf %505 : vector<8x16xf32> to vector<8x16xbf16>
    %cst_149 = arith.constant dense<0.000000e+00> : vector<8x8xf32>
    %507 = tpu.matmul %506, %494, %cst_149 {dimension_numbers = #tpu.dot_dimension_numbers<[1], [1], [0], [0], [0, 0, 1, 0], [], []>} : vector<8x16xbf16>, vector<8x16xbf16>, vector<8x8xf32> -> vector<8x8xf32>
    %cst_150 = arith.constant 2.500000e-01 : f32
    %508 = vector.broadcast %cst_150 : f32 to vector<8x8xf32>
    %509 = arith.mulf %507, %508 : vector<8x8xf32>
    %cst_151 = arith.constant -1.000000e+30 : f32
    %510 = vector.broadcast %cst_151 : f32 to vector<8x8xf32>
    %511 = arith.select %4, %509, %510 : vector<8x8xi1>, vector<8x8xf32>
    %cst_152 = arith.constant dense<0xFF800000> : vector<8xf32>
    %512 = vector.multi_reduction <maximumf>, %511, %cst_152 [1] : vector<8x8xf32> to vector<8xf32>
    %513 = vector.shape_cast %512 : vector<8xf32> to vector<8x1xf32>
    %514 = vector.broadcast %513 : vector<8x1xf32> to vector<8x8xf32>
    %515 = arith.subf %511, %514 : vector<8x8xf32>
    %516 = math.exp %515 : vector<8x8xf32>
    %cst_153 = arith.constant dense<0.000000e+00> : vector<8xf32>
    %517 = vector.multi_reduction <add>, %516, %cst_153 [1] : vector<8x8xf32> to vector<8xf32>
    %518 = vector.shape_cast %517 : vector<8xf32> to vector<8x1xf32>
    %519 = vector.broadcast %518 : vector<8x1xf32> to vector<8x8xf32>
    %520 = arith.divf %516, %519 : vector<8x8xf32>
    %521 = arith.truncf %520 : vector<8x8xf32> to vector<8x8xbf16>
    %cst_154 = arith.constant dense<0.000000e+00> : vector<8x16xf32>
    %522 = tpu.matmul %521, %496, %cst_154 {dimension_numbers = #tpu.dot_dimension_numbers<[1], [0], [0], [1], [0, 0, 1, 1], [], []>} : vector<8x8xbf16>, vector<8x16xbf16>, vector<8x16xf32> -> vector<8x16xf32>
    %523 = vector.extract_strided_slice %484 {offsets = [0, 16], sizes = [8, 16], strides = [1, 1]} : vector<16x128xf32> to vector<8x16xf32>
    %524 = vector.extract_strided_slice %523 {offsets = [0, 8], sizes = [8, 8], strides = [1, 1]} : vector<8x16xf32> to vector<8x8xf32>
    %cst_155 = arith.constant 0.000000e+00 : f32
    %525 = vector.broadcast %cst_155 : f32 to vector<8x8xf32>
    %526 = arith.subf %525, %524 : vector<8x8xf32>
    %527 = vector.extract_strided_slice %523 {offsets = [0, 0], sizes = [8, 8], strides = [1, 1]} : vector<8x16xf32> to vector<8x8xf32>
    %528 = tpu.concatenate %526, %527 in 1 : vector<8x8xf32>, vector<8x8xf32> -> vector<8x16xf32>
    %529 = arith.mulf %523, %0 : vector<8x16xf32>
    %530 = arith.mulf %528, %1 : vector<8x16xf32>
    %531 = arith.addf %529, %530 : vector<8x16xf32>
    %532 = arith.truncf %531 : vector<8x16xf32> to vector<8x16xbf16>
    %cst_156 = arith.constant dense<0.000000e+00> : vector<8x8xf32>
    %533 = tpu.matmul %532, %494, %cst_156 {dimension_numbers = #tpu.dot_dimension_numbers<[1], [1], [0], [0], [0, 0, 1, 0], [], []>} : vector<8x16xbf16>, vector<8x16xbf16>, vector<8x8xf32> -> vector<8x8xf32>
    %cst_157 = arith.constant 2.500000e-01 : f32
    %534 = vector.broadcast %cst_157 : f32 to vector<8x8xf32>
    %535 = arith.mulf %533, %534 : vector<8x8xf32>
    %cst_158 = arith.constant -1.000000e+30 : f32
    %536 = vector.broadcast %cst_158 : f32 to vector<8x8xf32>
    %537 = arith.select %4, %535, %536 : vector<8x8xi1>, vector<8x8xf32>
    %cst_159 = arith.constant dense<0xFF800000> : vector<8xf32>
    %538 = vector.multi_reduction <maximumf>, %537, %cst_159 [1] : vector<8x8xf32> to vector<8xf32>
    %539 = vector.shape_cast %538 : vector<8xf32> to vector<8x1xf32>
    %540 = vector.broadcast %539 : vector<8x1xf32> to vector<8x8xf32>
    %541 = arith.subf %537, %540 : vector<8x8xf32>
    %542 = math.exp %541 : vector<8x8xf32>
    %cst_160 = arith.constant dense<0.000000e+00> : vector<8xf32>
    %543 = vector.multi_reduction <add>, %542, %cst_160 [1] : vector<8x8xf32> to vector<8xf32>
    %544 = vector.shape_cast %543 : vector<8xf32> to vector<8x1xf32>
    %545 = vector.broadcast %544 : vector<8x1xf32> to vector<8x8xf32>
    %546 = arith.divf %542, %545 : vector<8x8xf32>
    %547 = arith.truncf %546 : vector<8x8xf32> to vector<8x8xbf16>
    %cst_161 = arith.constant dense<0.000000e+00> : vector<8x16xf32>
    %548 = tpu.matmul %547, %496, %cst_161 {dimension_numbers = #tpu.dot_dimension_numbers<[1], [0], [0], [1], [0, 0, 1, 1], [], []>} : vector<8x8xbf16>, vector<8x16xbf16>, vector<8x16xf32> -> vector<8x16xf32>
    %549 = vector.extract_strided_slice %484 {offsets = [0, 80], sizes = [8, 16], strides = [1, 1]} : vector<16x128xf32> to vector<8x16xf32>
    %550 = vector.extract_strided_slice %549 {offsets = [0, 8], sizes = [8, 8], strides = [1, 1]} : vector<8x16xf32> to vector<8x8xf32>
    %cst_162 = arith.constant 0.000000e+00 : f32
    %551 = vector.broadcast %cst_162 : f32 to vector<8x8xf32>
    %552 = arith.subf %551, %550 : vector<8x8xf32>
    %553 = vector.extract_strided_slice %549 {offsets = [0, 0], sizes = [8, 8], strides = [1, 1]} : vector<8x16xf32> to vector<8x8xf32>
    %554 = tpu.concatenate %552, %553 in 1 : vector<8x8xf32>, vector<8x8xf32> -> vector<8x16xf32>
    %555 = arith.mulf %549, %0 : vector<8x16xf32>
    %556 = arith.mulf %554, %1 : vector<8x16xf32>
    %557 = arith.addf %555, %556 : vector<8x16xf32>
    %558 = arith.truncf %557 : vector<8x16xf32> to vector<8x16xbf16>
    %559 = vector.extract_strided_slice %484 {offsets = [0, 112], sizes = [8, 16], strides = [1, 1]} : vector<16x128xf32> to vector<8x16xf32>
    %560 = arith.truncf %559 : vector<8x16xf32> to vector<8x16xbf16>
    %561 = vector.extract_strided_slice %484 {offsets = [0, 32], sizes = [8, 16], strides = [1, 1]} : vector<16x128xf32> to vector<8x16xf32>
    %562 = vector.extract_strided_slice %561 {offsets = [0, 8], sizes = [8, 8], strides = [1, 1]} : vector<8x16xf32> to vector<8x8xf32>
    %cst_163 = arith.constant 0.000000e+00 : f32
    %563 = vector.broadcast %cst_163 : f32 to vector<8x8xf32>
    %564 = arith.subf %563, %562 : vector<8x8xf32>
    %565 = vector.extract_strided_slice %561 {offsets = [0, 0], sizes = [8, 8], strides = [1, 1]} : vector<8x16xf32> to vector<8x8xf32>
    %566 = tpu.concatenate %564, %565 in 1 : vector<8x8xf32>, vector<8x8xf32> -> vector<8x16xf32>
    %567 = arith.mulf %561, %0 : vector<8x16xf32>
    %568 = arith.mulf %566, %1 : vector<8x16xf32>
    %569 = arith.addf %567, %568 : vector<8x16xf32>
    %570 = arith.truncf %569 : vector<8x16xf32> to vector<8x16xbf16>
    %cst_164 = arith.constant dense<0.000000e+00> : vector<8x8xf32>
    %571 = tpu.matmul %570, %558, %cst_164 {dimension_numbers = #tpu.dot_dimension_numbers<[1], [1], [0], [0], [0, 0, 1, 0], [], []>} : vector<8x16xbf16>, vector<8x16xbf16>, vector<8x8xf32> -> vector<8x8xf32>
    %cst_165 = arith.constant 2.500000e-01 : f32
    %572 = vector.broadcast %cst_165 : f32 to vector<8x8xf32>
    %573 = arith.mulf %571, %572 : vector<8x8xf32>
    %cst_166 = arith.constant -1.000000e+30 : f32
    %574 = vector.broadcast %cst_166 : f32 to vector<8x8xf32>
    %575 = arith.select %4, %573, %574 : vector<8x8xi1>, vector<8x8xf32>
    %cst_167 = arith.constant dense<0xFF800000> : vector<8xf32>
    %576 = vector.multi_reduction <maximumf>, %575, %cst_167 [1] : vector<8x8xf32> to vector<8xf32>
    %577 = vector.shape_cast %576 : vector<8xf32> to vector<8x1xf32>
    %578 = vector.broadcast %577 : vector<8x1xf32> to vector<8x8xf32>
    %579 = arith.subf %575, %578 : vector<8x8xf32>
    %580 = math.exp %579 : vector<8x8xf32>
    %cst_168 = arith.constant dense<0.000000e+00> : vector<8xf32>
    %581 = vector.multi_reduction <add>, %580, %cst_168 [1] : vector<8x8xf32> to vector<8xf32>
    %582 = vector.shape_cast %581 : vector<8xf32> to vector<8x1xf32>
    %583 = vector.broadcast %582 : vector<8x1xf32> to vector<8x8xf32>
    %584 = arith.divf %580, %583 : vector<8x8xf32>
    %585 = arith.truncf %584 : vector<8x8xf32> to vector<8x8xbf16>
    %cst_169 = arith.constant dense<0.000000e+00> : vector<8x16xf32>
    %586 = tpu.matmul %585, %560, %cst_169 {dimension_numbers = #tpu.dot_dimension_numbers<[1], [0], [0], [1], [0, 0, 1, 1], [], []>} : vector<8x8xbf16>, vector<8x16xbf16>, vector<8x16xf32> -> vector<8x16xf32>
    %587 = vector.extract_strided_slice %484 {offsets = [0, 48], sizes = [8, 16], strides = [1, 1]} : vector<16x128xf32> to vector<8x16xf32>
    %588 = vector.extract_strided_slice %587 {offsets = [0, 8], sizes = [8, 8], strides = [1, 1]} : vector<8x16xf32> to vector<8x8xf32>
    %cst_170 = arith.constant 0.000000e+00 : f32
    %589 = vector.broadcast %cst_170 : f32 to vector<8x8xf32>
    %590 = arith.subf %589, %588 : vector<8x8xf32>
    %591 = vector.extract_strided_slice %587 {offsets = [0, 0], sizes = [8, 8], strides = [1, 1]} : vector<8x16xf32> to vector<8x8xf32>
    %592 = tpu.concatenate %590, %591 in 1 : vector<8x8xf32>, vector<8x8xf32> -> vector<8x16xf32>
    %593 = arith.mulf %587, %0 : vector<8x16xf32>
    %594 = arith.mulf %592, %1 : vector<8x16xf32>
    %595 = arith.addf %593, %594 : vector<8x16xf32>
    %596 = arith.truncf %595 : vector<8x16xf32> to vector<8x16xbf16>
    %cst_171 = arith.constant dense<0.000000e+00> : vector<8x8xf32>
    %597 = tpu.matmul %596, %558, %cst_171 {dimension_numbers = #tpu.dot_dimension_numbers<[1], [1], [0], [0], [0, 0, 1, 0], [], []>} : vector<8x16xbf16>, vector<8x16xbf16>, vector<8x8xf32> -> vector<8x8xf32>
    %cst_172 = arith.constant 2.500000e-01 : f32
    %598 = vector.broadcast %cst_172 : f32 to vector<8x8xf32>
    %599 = arith.mulf %597, %598 : vector<8x8xf32>
    %cst_173 = arith.constant -1.000000e+30 : f32
    %600 = vector.broadcast %cst_173 : f32 to vector<8x8xf32>
    %601 = arith.select %4, %599, %600 : vector<8x8xi1>, vector<8x8xf32>
    %cst_174 = arith.constant dense<0xFF800000> : vector<8xf32>
    %602 = vector.multi_reduction <maximumf>, %601, %cst_174 [1] : vector<8x8xf32> to vector<8xf32>
    %603 = vector.shape_cast %602 : vector<8xf32> to vector<8x1xf32>
    %604 = vector.broadcast %603 : vector<8x1xf32> to vector<8x8xf32>
    %605 = arith.subf %601, %604 : vector<8x8xf32>
    %606 = math.exp %605 : vector<8x8xf32>
    %cst_175 = arith.constant dense<0.000000e+00> : vector<8xf32>
    %607 = vector.multi_reduction <add>, %606, %cst_175 [1] : vector<8x8xf32> to vector<8xf32>
    %608 = vector.shape_cast %607 : vector<8xf32> to vector<8x1xf32>
    %609 = vector.broadcast %608 : vector<8x1xf32> to vector<8x8xf32>
    %610 = arith.divf %606, %609 : vector<8x8xf32>
    %611 = arith.truncf %610 : vector<8x8xf32> to vector<8x8xbf16>
    %cst_176 = arith.constant dense<0.000000e+00> : vector<8x16xf32>
    %612 = tpu.matmul %611, %560, %cst_176 {dimension_numbers = #tpu.dot_dimension_numbers<[1], [0], [0], [1], [0, 0, 1, 1], [], []>} : vector<8x8xbf16>, vector<8x16xbf16>, vector<8x16xf32> -> vector<8x16xf32>
    %613 = tpu.concatenate %522, %548, %586, %612 in 1 : vector<8x16xf32>, vector<8x16xf32>, vector<8x16xf32>, vector<8x16xf32> -> vector<8x64xf32>
    %614 = vector.extract_strided_slice %484 {offsets = [8, 64], sizes = [8, 16], strides = [1, 1]} : vector<16x128xf32> to vector<8x16xf32>
    %615 = vector.extract_strided_slice %614 {offsets = [0, 8], sizes = [8, 8], strides = [1, 1]} : vector<8x16xf32> to vector<8x8xf32>
    %cst_177 = arith.constant 0.000000e+00 : f32
    %616 = vector.broadcast %cst_177 : f32 to vector<8x8xf32>
    %617 = arith.subf %616, %615 : vector<8x8xf32>
    %618 = vector.extract_strided_slice %614 {offsets = [0, 0], sizes = [8, 8], strides = [1, 1]} : vector<8x16xf32> to vector<8x8xf32>
    %619 = tpu.concatenate %617, %618 in 1 : vector<8x8xf32>, vector<8x8xf32> -> vector<8x16xf32>
    %620 = arith.mulf %614, %0 : vector<8x16xf32>
    %621 = arith.mulf %619, %1 : vector<8x16xf32>
    %622 = arith.addf %620, %621 : vector<8x16xf32>
    %623 = arith.truncf %622 : vector<8x16xf32> to vector<8x16xbf16>
    %624 = vector.extract_strided_slice %484 {offsets = [8, 96], sizes = [8, 16], strides = [1, 1]} : vector<16x128xf32> to vector<8x16xf32>
    %625 = arith.truncf %624 : vector<8x16xf32> to vector<8x16xbf16>
    %626 = vector.extract_strided_slice %484 {offsets = [8, 0], sizes = [8, 16], strides = [1, 1]} : vector<16x128xf32> to vector<8x16xf32>
    %627 = vector.extract_strided_slice %626 {offsets = [0, 8], sizes = [8, 8], strides = [1, 1]} : vector<8x16xf32> to vector<8x8xf32>
    %cst_178 = arith.constant 0.000000e+00 : f32
    %628 = vector.broadcast %cst_178 : f32 to vector<8x8xf32>
    %629 = arith.subf %628, %627 : vector<8x8xf32>
    %630 = vector.extract_strided_slice %626 {offsets = [0, 0], sizes = [8, 8], strides = [1, 1]} : vector<8x16xf32> to vector<8x8xf32>
    %631 = tpu.concatenate %629, %630 in 1 : vector<8x8xf32>, vector<8x8xf32> -> vector<8x16xf32>
    %632 = arith.mulf %626, %0 : vector<8x16xf32>
    %633 = arith.mulf %631, %1 : vector<8x16xf32>
    %634 = arith.addf %632, %633 : vector<8x16xf32>
    %635 = arith.truncf %634 : vector<8x16xf32> to vector<8x16xbf16>
    %cst_179 = arith.constant dense<0.000000e+00> : vector<8x8xf32>
    %636 = tpu.matmul %635, %623, %cst_179 {dimension_numbers = #tpu.dot_dimension_numbers<[1], [1], [0], [0], [0, 0, 1, 0], [], []>} : vector<8x16xbf16>, vector<8x16xbf16>, vector<8x8xf32> -> vector<8x8xf32>
    %cst_180 = arith.constant 2.500000e-01 : f32
    %637 = vector.broadcast %cst_180 : f32 to vector<8x8xf32>
    %638 = arith.mulf %636, %637 : vector<8x8xf32>
    %cst_181 = arith.constant -1.000000e+30 : f32
    %639 = vector.broadcast %cst_181 : f32 to vector<8x8xf32>
    %640 = arith.select %4, %638, %639 : vector<8x8xi1>, vector<8x8xf32>
    %cst_182 = arith.constant dense<0xFF800000> : vector<8xf32>
    %641 = vector.multi_reduction <maximumf>, %640, %cst_182 [1] : vector<8x8xf32> to vector<8xf32>
    %642 = vector.shape_cast %641 : vector<8xf32> to vector<8x1xf32>
    %643 = vector.broadcast %642 : vector<8x1xf32> to vector<8x8xf32>
    %644 = arith.subf %640, %643 : vector<8x8xf32>
    %645 = math.exp %644 : vector<8x8xf32>
    %cst_183 = arith.constant dense<0.000000e+00> : vector<8xf32>
    %646 = vector.multi_reduction <add>, %645, %cst_183 [1] : vector<8x8xf32> to vector<8xf32>
    %647 = vector.shape_cast %646 : vector<8xf32> to vector<8x1xf32>
    %648 = vector.broadcast %647 : vector<8x1xf32> to vector<8x8xf32>
    %649 = arith.divf %645, %648 : vector<8x8xf32>
    %650 = arith.truncf %649 : vector<8x8xf32> to vector<8x8xbf16>
    %cst_184 = arith.constant dense<0.000000e+00> : vector<8x16xf32>
    %651 = tpu.matmul %650, %625, %cst_184 {dimension_numbers = #tpu.dot_dimension_numbers<[1], [0], [0], [1], [0, 0, 1, 1], [], []>} : vector<8x8xbf16>, vector<8x16xbf16>, vector<8x16xf32> -> vector<8x16xf32>
    %652 = vector.extract_strided_slice %484 {offsets = [8, 16], sizes = [8, 16], strides = [1, 1]} : vector<16x128xf32> to vector<8x16xf32>
    %653 = vector.extract_strided_slice %652 {offsets = [0, 8], sizes = [8, 8], strides = [1, 1]} : vector<8x16xf32> to vector<8x8xf32>
    %cst_185 = arith.constant 0.000000e+00 : f32
    %654 = vector.broadcast %cst_185 : f32 to vector<8x8xf32>
    %655 = arith.subf %654, %653 : vector<8x8xf32>
    %656 = vector.extract_strided_slice %652 {offsets = [0, 0], sizes = [8, 8], strides = [1, 1]} : vector<8x16xf32> to vector<8x8xf32>
    %657 = tpu.concatenate %655, %656 in 1 : vector<8x8xf32>, vector<8x8xf32> -> vector<8x16xf32>
    %658 = arith.mulf %652, %0 : vector<8x16xf32>
    %659 = arith.mulf %657, %1 : vector<8x16xf32>
    %660 = arith.addf %658, %659 : vector<8x16xf32>
    %661 = arith.truncf %660 : vector<8x16xf32> to vector<8x16xbf16>
    %cst_186 = arith.constant dense<0.000000e+00> : vector<8x8xf32>
    %662 = tpu.matmul %661, %623, %cst_186 {dimension_numbers = #tpu.dot_dimension_numbers<[1], [1], [0], [0], [0, 0, 1, 0], [], []>} : vector<8x16xbf16>, vector<8x16xbf16>, vector<8x8xf32> -> vector<8x8xf32>
    %cst_187 = arith.constant 2.500000e-01 : f32
    %663 = vector.broadcast %cst_187 : f32 to vector<8x8xf32>
    %664 = arith.mulf %662, %663 : vector<8x8xf32>
    %cst_188 = arith.constant -1.000000e+30 : f32
    %665 = vector.broadcast %cst_188 : f32 to vector<8x8xf32>
    %666 = arith.select %4, %664, %665 : vector<8x8xi1>, vector<8x8xf32>
    %cst_189 = arith.constant dense<0xFF800000> : vector<8xf32>
    %667 = vector.multi_reduction <maximumf>, %666, %cst_189 [1] : vector<8x8xf32> to vector<8xf32>
    %668 = vector.shape_cast %667 : vector<8xf32> to vector<8x1xf32>
    %669 = vector.broadcast %668 : vector<8x1xf32> to vector<8x8xf32>
    %670 = arith.subf %666, %669 : vector<8x8xf32>
    %671 = math.exp %670 : vector<8x8xf32>
    %cst_190 = arith.constant dense<0.000000e+00> : vector<8xf32>
    %672 = vector.multi_reduction <add>, %671, %cst_190 [1] : vector<8x8xf32> to vector<8xf32>
    %673 = vector.shape_cast %672 : vector<8xf32> to vector<8x1xf32>
    %674 = vector.broadcast %673 : vector<8x1xf32> to vector<8x8xf32>
    %675 = arith.divf %671, %674 : vector<8x8xf32>
    %676 = arith.truncf %675 : vector<8x8xf32> to vector<8x8xbf16>
    %cst_191 = arith.constant dense<0.000000e+00> : vector<8x16xf32>
    %677 = tpu.matmul %676, %625, %cst_191 {dimension_numbers = #tpu.dot_dimension_numbers<[1], [0], [0], [1], [0, 0, 1, 1], [], []>} : vector<8x8xbf16>, vector<8x16xbf16>, vector<8x16xf32> -> vector<8x16xf32>
    %678 = vector.extract_strided_slice %484 {offsets = [8, 80], sizes = [8, 16], strides = [1, 1]} : vector<16x128xf32> to vector<8x16xf32>
    %679 = vector.extract_strided_slice %678 {offsets = [0, 8], sizes = [8, 8], strides = [1, 1]} : vector<8x16xf32> to vector<8x8xf32>
    %cst_192 = arith.constant 0.000000e+00 : f32
    %680 = vector.broadcast %cst_192 : f32 to vector<8x8xf32>
    %681 = arith.subf %680, %679 : vector<8x8xf32>
    %682 = vector.extract_strided_slice %678 {offsets = [0, 0], sizes = [8, 8], strides = [1, 1]} : vector<8x16xf32> to vector<8x8xf32>
    %683 = tpu.concatenate %681, %682 in 1 : vector<8x8xf32>, vector<8x8xf32> -> vector<8x16xf32>
    %684 = arith.mulf %678, %0 : vector<8x16xf32>
    %685 = arith.mulf %683, %1 : vector<8x16xf32>
    %686 = arith.addf %684, %685 : vector<8x16xf32>
    %687 = arith.truncf %686 : vector<8x16xf32> to vector<8x16xbf16>
    %688 = vector.extract_strided_slice %484 {offsets = [8, 112], sizes = [8, 16], strides = [1, 1]} : vector<16x128xf32> to vector<8x16xf32>
    %689 = arith.truncf %688 : vector<8x16xf32> to vector<8x16xbf16>
    %690 = vector.extract_strided_slice %484 {offsets = [8, 32], sizes = [8, 16], strides = [1, 1]} : vector<16x128xf32> to vector<8x16xf32>
    %691 = vector.extract_strided_slice %690 {offsets = [0, 8], sizes = [8, 8], strides = [1, 1]} : vector<8x16xf32> to vector<8x8xf32>
    %cst_193 = arith.constant 0.000000e+00 : f32
    %692 = vector.broadcast %cst_193 : f32 to vector<8x8xf32>
    %693 = arith.subf %692, %691 : vector<8x8xf32>
    %694 = vector.extract_strided_slice %690 {offsets = [0, 0], sizes = [8, 8], strides = [1, 1]} : vector<8x16xf32> to vector<8x8xf32>
    %695 = tpu.concatenate %693, %694 in 1 : vector<8x8xf32>, vector<8x8xf32> -> vector<8x16xf32>
    %696 = arith.mulf %690, %0 : vector<8x16xf32>
    %697 = arith.mulf %695, %1 : vector<8x16xf32>
    %698 = arith.addf %696, %697 : vector<8x16xf32>
    %699 = arith.truncf %698 : vector<8x16xf32> to vector<8x16xbf16>
    %cst_194 = arith.constant dense<0.000000e+00> : vector<8x8xf32>
    %700 = tpu.matmul %699, %687, %cst_194 {dimension_numbers = #tpu.dot_dimension_numbers<[1], [1], [0], [0], [0, 0, 1, 0], [], []>} : vector<8x16xbf16>, vector<8x16xbf16>, vector<8x8xf32> -> vector<8x8xf32>
    %cst_195 = arith.constant 2.500000e-01 : f32
    %701 = vector.broadcast %cst_195 : f32 to vector<8x8xf32>
    %702 = arith.mulf %700, %701 : vector<8x8xf32>
    %cst_196 = arith.constant -1.000000e+30 : f32
    %703 = vector.broadcast %cst_196 : f32 to vector<8x8xf32>
    %704 = arith.select %4, %702, %703 : vector<8x8xi1>, vector<8x8xf32>
    %cst_197 = arith.constant dense<0xFF800000> : vector<8xf32>
    %705 = vector.multi_reduction <maximumf>, %704, %cst_197 [1] : vector<8x8xf32> to vector<8xf32>
    %706 = vector.shape_cast %705 : vector<8xf32> to vector<8x1xf32>
    %707 = vector.broadcast %706 : vector<8x1xf32> to vector<8x8xf32>
    %708 = arith.subf %704, %707 : vector<8x8xf32>
    %709 = math.exp %708 : vector<8x8xf32>
    %cst_198 = arith.constant dense<0.000000e+00> : vector<8xf32>
    %710 = vector.multi_reduction <add>, %709, %cst_198 [1] : vector<8x8xf32> to vector<8xf32>
    %711 = vector.shape_cast %710 : vector<8xf32> to vector<8x1xf32>
    %712 = vector.broadcast %711 : vector<8x1xf32> to vector<8x8xf32>
    %713 = arith.divf %709, %712 : vector<8x8xf32>
    %714 = arith.truncf %713 : vector<8x8xf32> to vector<8x8xbf16>
    %cst_199 = arith.constant dense<0.000000e+00> : vector<8x16xf32>
    %715 = tpu.matmul %714, %689, %cst_199 {dimension_numbers = #tpu.dot_dimension_numbers<[1], [0], [0], [1], [0, 0, 1, 1], [], []>} : vector<8x8xbf16>, vector<8x16xbf16>, vector<8x16xf32> -> vector<8x16xf32>
    %716 = vector.extract_strided_slice %484 {offsets = [8, 48], sizes = [8, 16], strides = [1, 1]} : vector<16x128xf32> to vector<8x16xf32>
    %717 = vector.extract_strided_slice %716 {offsets = [0, 8], sizes = [8, 8], strides = [1, 1]} : vector<8x16xf32> to vector<8x8xf32>
    %cst_200 = arith.constant 0.000000e+00 : f32
    %718 = vector.broadcast %cst_200 : f32 to vector<8x8xf32>
    %719 = arith.subf %718, %717 : vector<8x8xf32>
    %720 = vector.extract_strided_slice %716 {offsets = [0, 0], sizes = [8, 8], strides = [1, 1]} : vector<8x16xf32> to vector<8x8xf32>
    %721 = tpu.concatenate %719, %720 in 1 : vector<8x8xf32>, vector<8x8xf32> -> vector<8x16xf32>
    %722 = arith.mulf %716, %0 : vector<8x16xf32>
    %723 = arith.mulf %721, %1 : vector<8x16xf32>
    %724 = arith.addf %722, %723 : vector<8x16xf32>
    %725 = arith.truncf %724 : vector<8x16xf32> to vector<8x16xbf16>
    %cst_201 = arith.constant dense<0.000000e+00> : vector<8x8xf32>
    %726 = tpu.matmul %725, %687, %cst_201 {dimension_numbers = #tpu.dot_dimension_numbers<[1], [1], [0], [0], [0, 0, 1, 0], [], []>} : vector<8x16xbf16>, vector<8x16xbf16>, vector<8x8xf32> -> vector<8x8xf32>
    %cst_202 = arith.constant 2.500000e-01 : f32
    %727 = vector.broadcast %cst_202 : f32 to vector<8x8xf32>
    %728 = arith.mulf %726, %727 : vector<8x8xf32>
    %cst_203 = arith.constant -1.000000e+30 : f32
    %729 = vector.broadcast %cst_203 : f32 to vector<8x8xf32>
    %730 = arith.select %4, %728, %729 : vector<8x8xi1>, vector<8x8xf32>
    %cst_204 = arith.constant dense<0xFF800000> : vector<8xf32>
    %731 = vector.multi_reduction <maximumf>, %730, %cst_204 [1] : vector<8x8xf32> to vector<8xf32>
    %732 = vector.shape_cast %731 : vector<8xf32> to vector<8x1xf32>
    %733 = vector.broadcast %732 : vector<8x1xf32> to vector<8x8xf32>
    %734 = arith.subf %730, %733 : vector<8x8xf32>
    %735 = math.exp %734 : vector<8x8xf32>
    %cst_205 = arith.constant dense<0.000000e+00> : vector<8xf32>
    %736 = vector.multi_reduction <add>, %735, %cst_205 [1] : vector<8x8xf32> to vector<8xf32>
    %737 = vector.shape_cast %736 : vector<8xf32> to vector<8x1xf32>
    %738 = vector.broadcast %737 : vector<8x1xf32> to vector<8x8xf32>
    %739 = arith.divf %735, %738 : vector<8x8xf32>
    %740 = arith.truncf %739 : vector<8x8xf32> to vector<8x8xbf16>
    %cst_206 = arith.constant dense<0.000000e+00> : vector<8x16xf32>
    %741 = tpu.matmul %740, %689, %cst_206 {dimension_numbers = #tpu.dot_dimension_numbers<[1], [0], [0], [1], [0, 0, 1, 1], [], []>} : vector<8x8xbf16>, vector<8x16xbf16>, vector<8x16xf32> -> vector<8x16xf32>
    %742 = tpu.concatenate %651, %677, %715, %741 in 1 : vector<8x16xf32>, vector<8x16xf32>, vector<8x16xf32>, vector<8x16xf32> -> vector<8x64xf32>
    %743 = tpu.concatenate %613, %742 in 0 : vector<8x64xf32>, vector<8x64xf32> -> vector<16x64xf32>
    %744 = arith.truncf %743 : vector<16x64xf32> to vector<16x64xbf16>
    %c1_207 = arith.constant 1 : index
    %c0_208 = arith.constant 0 : index
    %c0_209 = arith.constant 0 : index
    %745 = vector.load %arg4[%c1_207, %c0_208, %c0_209] : memref<2x64x64xbf16, #tpu.memory_space<vmem>>, vector<1x64x64xbf16>
    %746 = vector.shape_cast %745 : vector<1x64x64xbf16> to vector<64x64xbf16>
    %cst_210 = arith.constant dense<0.000000e+00> : vector<16x64xf32>
    %747 = tpu.matmul %744, %746, %cst_210 {dimension_numbers = #tpu.dot_dimension_numbers<[1], [0], [0], [1], [0, 0, 1, 1], [], []>} : vector<16x64xbf16>, vector<64x64xbf16>, vector<16x64xf32> -> vector<16x64xf32>
    %748 = arith.addf %470, %747 : vector<16x64xf32>
    %749 = arith.mulf %748, %748 : vector<16x64xf32>
    %cst_211 = arith.constant dense<0.000000e+00> : vector<16xf32>
    %750 = vector.multi_reduction <add>, %749, %cst_211 [1] : vector<16x64xf32> to vector<16xf32>
    %751 = vector.shape_cast %750 : vector<16xf32> to vector<16x1xf32>
    %cst_212 = arith.constant 6.400000e+01 : f32
    %752 = vector.broadcast %cst_212 : f32 to vector<16x1xf32>
    %753 = arith.divf %751, %752 : vector<16x1xf32>
    %cst_213 = arith.constant 9.99999974E-6 : f32
    %754 = vector.broadcast %cst_213 : f32 to vector<16x1xf32>
    %755 = arith.addf %753, %754 : vector<16x1xf32>
    %756 = math.rsqrt %755 : vector<16x1xf32>
    %757 = vector.broadcast %756 : vector<16x1xf32> to vector<16x64xf32>
    %758 = arith.mulf %748, %757 : vector<16x64xf32>
    %759 = arith.truncf %758 : vector<16x64xf32> to vector<16x64xbf16>
    %c1_214 = arith.constant 1 : index
    %c0_215 = arith.constant 0 : index
    %c0_216 = arith.constant 0 : index
    %760 = vector.load %arg5[%c1_214, %c0_215, %c0_216] : memref<2x64x4xf32, #tpu.memory_space<vmem>>, vector<1x64x4xf32>
    %761 = vector.shape_cast %760 : vector<1x64x4xf32> to vector<64x4xf32>
    %cst_217 = arith.constant dense<0.000000e+00> : vector<16x4xf32>
    %762 = tpu.matmul %758, %761, %cst_217 {dimension_numbers = #tpu.dot_dimension_numbers<[1], [0], [0], [1], [0, 0, 1, 1], [], []>} : vector<16x64xf32>, vector<64x4xf32>, vector<16x4xf32> -> vector<16x4xf32>
    %cst_218 = arith.constant dense<0xFF800000> : vector<16xf32>
    %763 = vector.multi_reduction <maximumf>, %762, %cst_218 [1] : vector<16x4xf32> to vector<16xf32>
    %764 = vector.shape_cast %763 : vector<16xf32> to vector<16x1xf32>
    %765 = vector.broadcast %764 : vector<16x1xf32> to vector<16x4xf32>
    %766 = arith.subf %762, %765 : vector<16x4xf32>
    %767 = math.exp %766 : vector<16x4xf32>
    %cst_219 = arith.constant dense<0.000000e+00> : vector<16xf32>
    %768 = vector.multi_reduction <add>, %767, %cst_219 [1] : vector<16x4xf32> to vector<16xf32>
    %769 = vector.shape_cast %768 : vector<16xf32> to vector<16x1xf32>
    %770 = vector.broadcast %769 : vector<16x1xf32> to vector<16x4xf32>
    %771 = arith.divf %767, %770 : vector<16x4xf32>
    %772 = tpu.iota {dimensions = array<i32: 1>} : vector<16x4xi32>
    %773 = vector.extract_strided_slice %771 {offsets = [0, 0], sizes = [16, 1], strides = [1, 1]} : vector<16x4xf32> to vector<16x1xf32>
    %774 = vector.broadcast %773 : vector<16x1xf32> to vector<16x4xf32>
    %775 = arith.cmpf ogt, %771, %774 : vector<16x4xf32>
    %776 = vector.broadcast %773 : vector<16x1xf32> to vector<16x4xf32>
    %777 = arith.cmpf oeq, %771, %776 : vector<16x4xf32>
    %c0_i32_220 = arith.constant 0 : i32
    %778 = vector.broadcast %c0_i32_220 : i32 to vector<16x4xi32>
    %779 = arith.cmpi slt, %772, %778 : vector<16x4xi32>
    %780 = arith.andi %777, %779 : vector<16x4xi1>
    %781 = arith.ori %775, %780 : vector<16x4xi1>
    %782 = arith.extui %781 : vector<16x4xi1> to vector<16x4xi32>
    %cst_221 = arith.constant dense<0> : vector<16xi32>
    %783 = vector.multi_reduction <add>, %782, %cst_221 [1] : vector<16x4xi32> to vector<16xi32>
    %784 = vector.shape_cast %783 : vector<16xi32> to vector<16x1xi32>
    %c2_i32_222 = arith.constant 2 : i32
    %785 = vector.broadcast %c2_i32_222 : i32 to vector<16x1xi32>
    %786 = arith.cmpi slt, %784, %785 : vector<16x1xi32>
    %c0_i32_223 = arith.constant 0 : i32
    %787 = vector.broadcast %c0_i32_223 : i32 to vector<16x4xi32>
    %788 = arith.cmpi eq, %772, %787 : vector<16x4xi32>
    %789 = vector.broadcast %786 : vector<16x1xi1> to vector<16x4xi1>
    %790 = arith.andi %789, %788 : vector<16x4xi1>
    %791 = vector.extract_strided_slice %771 {offsets = [0, 1], sizes = [16, 1], strides = [1, 1]} : vector<16x4xf32> to vector<16x1xf32>
    %792 = vector.broadcast %791 : vector<16x1xf32> to vector<16x4xf32>
    %793 = arith.cmpf ogt, %771, %792 : vector<16x4xf32>
    %794 = vector.broadcast %791 : vector<16x1xf32> to vector<16x4xf32>
    %795 = arith.cmpf oeq, %771, %794 : vector<16x4xf32>
    %c1_i32_224 = arith.constant 1 : i32
    %796 = vector.broadcast %c1_i32_224 : i32 to vector<16x4xi32>
    %797 = arith.cmpi slt, %772, %796 : vector<16x4xi32>
    %798 = arith.andi %795, %797 : vector<16x4xi1>
    %799 = arith.ori %793, %798 : vector<16x4xi1>
    %800 = arith.extui %799 : vector<16x4xi1> to vector<16x4xi32>
    %cst_225 = arith.constant dense<0> : vector<16xi32>
    %801 = vector.multi_reduction <add>, %800, %cst_225 [1] : vector<16x4xi32> to vector<16xi32>
    %802 = vector.shape_cast %801 : vector<16xi32> to vector<16x1xi32>
    %c2_i32_226 = arith.constant 2 : i32
    %803 = vector.broadcast %c2_i32_226 : i32 to vector<16x1xi32>
    %804 = arith.cmpi slt, %802, %803 : vector<16x1xi32>
    %c1_i32_227 = arith.constant 1 : i32
    %805 = vector.broadcast %c1_i32_227 : i32 to vector<16x4xi32>
    %806 = arith.cmpi eq, %772, %805 : vector<16x4xi32>
    %807 = vector.broadcast %804 : vector<16x1xi1> to vector<16x4xi1>
    %808 = arith.andi %807, %806 : vector<16x4xi1>
    %809 = arith.ori %790, %808 : vector<16x4xi1>
    %810 = vector.extract_strided_slice %771 {offsets = [0, 2], sizes = [16, 1], strides = [1, 1]} : vector<16x4xf32> to vector<16x1xf32>
    %811 = vector.broadcast %810 : vector<16x1xf32> to vector<16x4xf32>
    %812 = arith.cmpf ogt, %771, %811 : vector<16x4xf32>
    %813 = vector.broadcast %810 : vector<16x1xf32> to vector<16x4xf32>
    %814 = arith.cmpf oeq, %771, %813 : vector<16x4xf32>
    %c2_i32_228 = arith.constant 2 : i32
    %815 = vector.broadcast %c2_i32_228 : i32 to vector<16x4xi32>
    %816 = arith.cmpi slt, %772, %815 : vector<16x4xi32>
    %817 = arith.andi %814, %816 : vector<16x4xi1>
    %818 = arith.ori %812, %817 : vector<16x4xi1>
    %819 = arith.extui %818 : vector<16x4xi1> to vector<16x4xi32>
    %cst_229 = arith.constant dense<0> : vector<16xi32>
    %820 = vector.multi_reduction <add>, %819, %cst_229 [1] : vector<16x4xi32> to vector<16xi32>
    %821 = vector.shape_cast %820 : vector<16xi32> to vector<16x1xi32>
    %c2_i32_230 = arith.constant 2 : i32
    %822 = vector.broadcast %c2_i32_230 : i32 to vector<16x1xi32>
    %823 = arith.cmpi slt, %821, %822 : vector<16x1xi32>
    %c2_i32_231 = arith.constant 2 : i32
    %824 = vector.broadcast %c2_i32_231 : i32 to vector<16x4xi32>
    %825 = arith.cmpi eq, %772, %824 : vector<16x4xi32>
    %826 = vector.broadcast %823 : vector<16x1xi1> to vector<16x4xi1>
    %827 = arith.andi %826, %825 : vector<16x4xi1>
    %828 = arith.ori %809, %827 : vector<16x4xi1>
    %829 = vector.extract_strided_slice %771 {offsets = [0, 3], sizes = [16, 1], strides = [1, 1]} : vector<16x4xf32> to vector<16x1xf32>
    %830 = vector.broadcast %829 : vector<16x1xf32> to vector<16x4xf32>
    %831 = arith.cmpf ogt, %771, %830 : vector<16x4xf32>
    %832 = vector.broadcast %829 : vector<16x1xf32> to vector<16x4xf32>
    %833 = arith.cmpf oeq, %771, %832 : vector<16x4xf32>
    %c3_i32_232 = arith.constant 3 : i32
    %834 = vector.broadcast %c3_i32_232 : i32 to vector<16x4xi32>
    %835 = arith.cmpi slt, %772, %834 : vector<16x4xi32>
    %836 = arith.andi %833, %835 : vector<16x4xi1>
    %837 = arith.ori %831, %836 : vector<16x4xi1>
    %838 = arith.extui %837 : vector<16x4xi1> to vector<16x4xi32>
    %cst_233 = arith.constant dense<0> : vector<16xi32>
    %839 = vector.multi_reduction <add>, %838, %cst_233 [1] : vector<16x4xi32> to vector<16xi32>
    %840 = vector.shape_cast %839 : vector<16xi32> to vector<16x1xi32>
    %c2_i32_234 = arith.constant 2 : i32
    %841 = vector.broadcast %c2_i32_234 : i32 to vector<16x1xi32>
    %842 = arith.cmpi slt, %840, %841 : vector<16x1xi32>
    %c3_i32_235 = arith.constant 3 : i32
    %843 = vector.broadcast %c3_i32_235 : i32 to vector<16x4xi32>
    %844 = arith.cmpi eq, %772, %843 : vector<16x4xi32>
    %845 = vector.broadcast %842 : vector<16x1xi1> to vector<16x4xi1>
    %846 = arith.andi %845, %844 : vector<16x4xi1>
    %847 = arith.ori %828, %846 : vector<16x4xi1>
    %cst_236 = arith.constant 0.000000e+00 : f32
    %848 = vector.broadcast %cst_236 : f32 to vector<16x4xf32>
    %849 = arith.select %847, %771, %848 : vector<16x4xi1>, vector<16x4xf32>
    %cst_237 = arith.constant dense<0.000000e+00> : vector<16xf32>
    %850 = vector.multi_reduction <add>, %849, %cst_237 [1] : vector<16x4xf32> to vector<16xf32>
    %851 = vector.shape_cast %850 : vector<16xf32> to vector<16x1xf32>
    %852 = vector.broadcast %851 : vector<16x1xf32> to vector<16x4xf32>
    %853 = arith.divf %849, %852 : vector<16x4xf32>
    %cst_238 = arith.constant 0.000000e+00 : f32
    %854 = vector.broadcast %cst_238 : f32 to vector<16x64xf32>
    %c1_239 = arith.constant 1 : index
    %c0_240 = arith.constant 0 : index
    %c0_241 = arith.constant 0 : index
    %c0_242 = arith.constant 0 : index
    %855 = vector.load %arg6[%c1_239, %c0_240, %c0_241, %c0_242] : memref<2x4x64x256xbf16, #tpu.memory_space<vmem>>, vector<1x1x64x256xbf16>
    %856 = vector.shape_cast %855 : vector<1x1x64x256xbf16> to vector<64x256xbf16>
    %cst_243 = arith.constant dense<0.000000e+00> : vector<16x256xf32>
    %857 = tpu.matmul %759, %856, %cst_243 {dimension_numbers = #tpu.dot_dimension_numbers<[1], [0], [0], [1], [0, 0, 1, 1], [], []>} : vector<16x64xbf16>, vector<64x256xbf16>, vector<16x256xf32> -> vector<16x256xf32>
    %858 = vector.extract_strided_slice %857 {offsets = [0, 0], sizes = [16, 128], strides = [1, 1]} : vector<16x256xf32> to vector<16x128xf32>
    %859 = arith.negf %858 : vector<16x128xf32>
    %860 = math.exp %859 : vector<16x128xf32>
    %cst_244 = arith.constant 1.000000e+00 : f32
    %861 = vector.broadcast %cst_244 : f32 to vector<16x128xf32>
    %862 = arith.addf %861, %860 : vector<16x128xf32>
    %863 = arith.divf %861, %862 : vector<16x128xf32>
    %864 = arith.mulf %858, %863 : vector<16x128xf32>
    %865 = vector.extract_strided_slice %857 {offsets = [0, 128], sizes = [16, 128], strides = [1, 1]} : vector<16x256xf32> to vector<16x128xf32>
    %866 = arith.mulf %864, %865 : vector<16x128xf32>
    %867 = vector.extract_strided_slice %853 {offsets = [0, 0], sizes = [16, 1], strides = [1, 1]} : vector<16x4xf32> to vector<16x1xf32>
    %868 = vector.broadcast %867 : vector<16x1xf32> to vector<16x128xf32>
    %869 = arith.mulf %866, %868 : vector<16x128xf32>
    %870 = arith.truncf %869 : vector<16x128xf32> to vector<16x128xbf16>
    %c1_245 = arith.constant 1 : index
    %c0_246 = arith.constant 0 : index
    %c0_247 = arith.constant 0 : index
    %c0_248 = arith.constant 0 : index
    %871 = vector.load %arg7[%c1_245, %c0_246, %c0_247, %c0_248] : memref<2x4x128x64xbf16, #tpu.memory_space<vmem>>, vector<1x1x128x64xbf16>
    %872 = vector.shape_cast %871 : vector<1x1x128x64xbf16> to vector<128x64xbf16>
    %cst_249 = arith.constant dense<0.000000e+00> : vector<16x64xf32>
    %873 = tpu.matmul %870, %872, %cst_249 {dimension_numbers = #tpu.dot_dimension_numbers<[1], [0], [0], [1], [0, 0, 1, 1], [], []>} : vector<16x128xbf16>, vector<128x64xbf16>, vector<16x64xf32> -> vector<16x64xf32>
    %874 = arith.addf %854, %873 : vector<16x64xf32>
    %c1_250 = arith.constant 1 : index
    %c1_251 = arith.constant 1 : index
    %c0_252 = arith.constant 0 : index
    %c0_253 = arith.constant 0 : index
    %875 = vector.load %arg6[%c1_250, %c1_251, %c0_252, %c0_253] : memref<2x4x64x256xbf16, #tpu.memory_space<vmem>>, vector<1x1x64x256xbf16>
    %876 = vector.shape_cast %875 : vector<1x1x64x256xbf16> to vector<64x256xbf16>
    %cst_254 = arith.constant dense<0.000000e+00> : vector<16x256xf32>
    %877 = tpu.matmul %759, %876, %cst_254 {dimension_numbers = #tpu.dot_dimension_numbers<[1], [0], [0], [1], [0, 0, 1, 1], [], []>} : vector<16x64xbf16>, vector<64x256xbf16>, vector<16x256xf32> -> vector<16x256xf32>
    %878 = vector.extract_strided_slice %877 {offsets = [0, 0], sizes = [16, 128], strides = [1, 1]} : vector<16x256xf32> to vector<16x128xf32>
    %879 = arith.negf %878 : vector<16x128xf32>
    %880 = math.exp %879 : vector<16x128xf32>
    %cst_255 = arith.constant 1.000000e+00 : f32
    %881 = vector.broadcast %cst_255 : f32 to vector<16x128xf32>
    %882 = arith.addf %881, %880 : vector<16x128xf32>
    %883 = arith.divf %881, %882 : vector<16x128xf32>
    %884 = arith.mulf %878, %883 : vector<16x128xf32>
    %885 = vector.extract_strided_slice %877 {offsets = [0, 128], sizes = [16, 128], strides = [1, 1]} : vector<16x256xf32> to vector<16x128xf32>
    %886 = arith.mulf %884, %885 : vector<16x128xf32>
    %887 = vector.extract_strided_slice %853 {offsets = [0, 1], sizes = [16, 1], strides = [1, 1]} : vector<16x4xf32> to vector<16x1xf32>
    %888 = vector.broadcast %887 : vector<16x1xf32> to vector<16x128xf32>
    %889 = arith.mulf %886, %888 : vector<16x128xf32>
    %890 = arith.truncf %889 : vector<16x128xf32> to vector<16x128xbf16>
    %c1_256 = arith.constant 1 : index
    %c1_257 = arith.constant 1 : index
    %c0_258 = arith.constant 0 : index
    %c0_259 = arith.constant 0 : index
    %891 = vector.load %arg7[%c1_256, %c1_257, %c0_258, %c0_259] : memref<2x4x128x64xbf16, #tpu.memory_space<vmem>>, vector<1x1x128x64xbf16>
    %892 = vector.shape_cast %891 : vector<1x1x128x64xbf16> to vector<128x64xbf16>
    %cst_260 = arith.constant dense<0.000000e+00> : vector<16x64xf32>
    %893 = tpu.matmul %890, %892, %cst_260 {dimension_numbers = #tpu.dot_dimension_numbers<[1], [0], [0], [1], [0, 0, 1, 1], [], []>} : vector<16x128xbf16>, vector<128x64xbf16>, vector<16x64xf32> -> vector<16x64xf32>
    %894 = arith.addf %874, %893 : vector<16x64xf32>
    %c1_261 = arith.constant 1 : index
    %c2_262 = arith.constant 2 : index
    %c0_263 = arith.constant 0 : index
    %c0_264 = arith.constant 0 : index
    %895 = vector.load %arg6[%c1_261, %c2_262, %c0_263, %c0_264] : memref<2x4x64x256xbf16, #tpu.memory_space<vmem>>, vector<1x1x64x256xbf16>
    %896 = vector.shape_cast %895 : vector<1x1x64x256xbf16> to vector<64x256xbf16>
    %cst_265 = arith.constant dense<0.000000e+00> : vector<16x256xf32>
    %897 = tpu.matmul %759, %896, %cst_265 {dimension_numbers = #tpu.dot_dimension_numbers<[1], [0], [0], [1], [0, 0, 1, 1], [], []>} : vector<16x64xbf16>, vector<64x256xbf16>, vector<16x256xf32> -> vector<16x256xf32>
    %898 = vector.extract_strided_slice %897 {offsets = [0, 0], sizes = [16, 128], strides = [1, 1]} : vector<16x256xf32> to vector<16x128xf32>
    %899 = arith.negf %898 : vector<16x128xf32>
    %900 = math.exp %899 : vector<16x128xf32>
    %cst_266 = arith.constant 1.000000e+00 : f32
    %901 = vector.broadcast %cst_266 : f32 to vector<16x128xf32>
    %902 = arith.addf %901, %900 : vector<16x128xf32>
    %903 = arith.divf %901, %902 : vector<16x128xf32>
    %904 = arith.mulf %898, %903 : vector<16x128xf32>
    %905 = vector.extract_strided_slice %897 {offsets = [0, 128], sizes = [16, 128], strides = [1, 1]} : vector<16x256xf32> to vector<16x128xf32>
    %906 = arith.mulf %904, %905 : vector<16x128xf32>
    %907 = vector.extract_strided_slice %853 {offsets = [0, 2], sizes = [16, 1], strides = [1, 1]} : vector<16x4xf32> to vector<16x1xf32>
    %908 = vector.broadcast %907 : vector<16x1xf32> to vector<16x128xf32>
    %909 = arith.mulf %906, %908 : vector<16x128xf32>
    %910 = arith.truncf %909 : vector<16x128xf32> to vector<16x128xbf16>
    %c1_267 = arith.constant 1 : index
    %c2_268 = arith.constant 2 : index
    %c0_269 = arith.constant 0 : index
    %c0_270 = arith.constant 0 : index
    %911 = vector.load %arg7[%c1_267, %c2_268, %c0_269, %c0_270] : memref<2x4x128x64xbf16, #tpu.memory_space<vmem>>, vector<1x1x128x64xbf16>
    %912 = vector.shape_cast %911 : vector<1x1x128x64xbf16> to vector<128x64xbf16>
    %cst_271 = arith.constant dense<0.000000e+00> : vector<16x64xf32>
    %913 = tpu.matmul %910, %912, %cst_271 {dimension_numbers = #tpu.dot_dimension_numbers<[1], [0], [0], [1], [0, 0, 1, 1], [], []>} : vector<16x128xbf16>, vector<128x64xbf16>, vector<16x64xf32> -> vector<16x64xf32>
    %914 = arith.addf %894, %913 : vector<16x64xf32>
    %c1_272 = arith.constant 1 : index
    %c3_273 = arith.constant 3 : index
    %c0_274 = arith.constant 0 : index
    %c0_275 = arith.constant 0 : index
    %915 = vector.load %arg6[%c1_272, %c3_273, %c0_274, %c0_275] : memref<2x4x64x256xbf16, #tpu.memory_space<vmem>>, vector<1x1x64x256xbf16>
    %916 = vector.shape_cast %915 : vector<1x1x64x256xbf16> to vector<64x256xbf16>
    %cst_276 = arith.constant dense<0.000000e+00> : vector<16x256xf32>
    %917 = tpu.matmul %759, %916, %cst_276 {dimension_numbers = #tpu.dot_dimension_numbers<[1], [0], [0], [1], [0, 0, 1, 1], [], []>} : vector<16x64xbf16>, vector<64x256xbf16>, vector<16x256xf32> -> vector<16x256xf32>
    %918 = vector.extract_strided_slice %917 {offsets = [0, 0], sizes = [16, 128], strides = [1, 1]} : vector<16x256xf32> to vector<16x128xf32>
    %919 = arith.negf %918 : vector<16x128xf32>
    %920 = math.exp %919 : vector<16x128xf32>
    %cst_277 = arith.constant 1.000000e+00 : f32
    %921 = vector.broadcast %cst_277 : f32 to vector<16x128xf32>
    %922 = arith.addf %921, %920 : vector<16x128xf32>
    %923 = arith.divf %921, %922 : vector<16x128xf32>
    %924 = arith.mulf %918, %923 : vector<16x128xf32>
    %925 = vector.extract_strided_slice %917 {offsets = [0, 128], sizes = [16, 128], strides = [1, 1]} : vector<16x256xf32> to vector<16x128xf32>
    %926 = arith.mulf %924, %925 : vector<16x128xf32>
    %927 = vector.extract_strided_slice %853 {offsets = [0, 3], sizes = [16, 1], strides = [1, 1]} : vector<16x4xf32> to vector<16x1xf32>
    %928 = vector.broadcast %927 : vector<16x1xf32> to vector<16x128xf32>
    %929 = arith.mulf %926, %928 : vector<16x128xf32>
    %930 = arith.truncf %929 : vector<16x128xf32> to vector<16x128xbf16>
    %c1_278 = arith.constant 1 : index
    %c3_279 = arith.constant 3 : index
    %c0_280 = arith.constant 0 : index
    %c0_281 = arith.constant 0 : index
    %931 = vector.load %arg7[%c1_278, %c3_279, %c0_280, %c0_281] : memref<2x4x128x64xbf16, #tpu.memory_space<vmem>>, vector<1x1x128x64xbf16>
    %932 = vector.shape_cast %931 : vector<1x1x128x64xbf16> to vector<128x64xbf16>
    %cst_282 = arith.constant dense<0.000000e+00> : vector<16x64xf32>
    %933 = tpu.matmul %930, %932, %cst_282 {dimension_numbers = #tpu.dot_dimension_numbers<[1], [0], [0], [1], [0, 0, 1, 1], [], []>} : vector<16x128xbf16>, vector<128x64xbf16>, vector<16x64xf32> -> vector<16x64xf32>
    %934 = arith.addf %914, %933 : vector<16x64xf32>
    %935 = arith.addf %748, %934 : vector<16x64xf32>
    %936 = arith.mulf %935, %935 : vector<16x64xf32>
    %cst_283 = arith.constant dense<0.000000e+00> : vector<16xf32>
    %937 = vector.multi_reduction <add>, %936, %cst_283 [1] : vector<16x64xf32> to vector<16xf32>
    %938 = vector.shape_cast %937 : vector<16xf32> to vector<16x1xf32>
    %cst_284 = arith.constant 6.400000e+01 : f32
    %939 = vector.broadcast %cst_284 : f32 to vector<16x1xf32>
    %940 = arith.divf %938, %939 : vector<16x1xf32>
    %cst_285 = arith.constant 9.99999974E-6 : f32
    %941 = vector.broadcast %cst_285 : f32 to vector<16x1xf32>
    %942 = arith.addf %940, %941 : vector<16x1xf32>
    %943 = math.rsqrt %942 : vector<16x1xf32>
    %944 = vector.broadcast %943 : vector<16x1xf32> to vector<16x64xf32>
    %945 = arith.mulf %935, %944 : vector<16x64xf32>
    %c0_286 = arith.constant 0 : index
    %c0_287 = arith.constant 0 : index
    %946 = vector.load %arg8[%c0_286, %c0_287] : memref<1x64xf32, #tpu.memory_space<vmem>>, vector<1x64xf32>
    %947 = vector.broadcast %946 : vector<1x64xf32> to vector<16x64xf32>
    %948 = arith.mulf %945, %947 : vector<16x64xf32>
    %c0_288 = arith.constant 0 : index
    %c0_289 = arith.constant 0 : index
    %949 = vector.load %arg9[%c0_288, %c0_289] : memref<16x64xf32, #tpu.memory_space<vmem>>, vector<16x64xf32>
    tpu.vector_store %arg9[%c0_288, %c0_289], %948 {strides = array<i32>} : memref<16x64xf32, #tpu.memory_space<vmem>>, vector<16x64xf32>,
    return
  }
}

</mosaic_0001>

<bundles_post_ra>
// kernel: _lambda_.1
= control target key start
LH: loop header
LB: loop body
LE: loop exit
PB: predicated region body
PF: predicated region fallthrough
CT: control target
= control target key end

     0   :  { %14 = vsyncpa [#allocation3], 0  ;;  %s7768_s0 = inlined_call_operand.vmem [shape: f32[16,64], index: 0, kind: input, shape index: {}]   ;;  %s7769_s1 = inlined_call_operand.vmem [shape: f32[8,16], index: 1, kind: input, shape index: {}]   ;;  %s7770_s2 = inlined_call_operand.vmem [shape: f32[8,16], index: 2, kind: input, shape index: {}]   ;;  %s7771_s3 = inlined_call_operand.hbm [shape: bf16[2,64,128], index: 3, kind: input, shape index: {}]   ;;  %s7772_s4 = inlined_call_operand.hbm [shape: bf16[2,64,64], index: 4, kind: input, shape index: {}]   ;;  %s7773_s5 = inlined_call_operand.hbm [shape: f32[2,64,4], index: 5, kind: input, shape index: {}]   ;;  %s7774_s6 = inlined_call_operand.hbm [shape: bf16[2,4,64,256], index: 6, kind: input, shape index: {}]   ;;  %s7775_s7 = inlined_call_operand.hbm [shape: bf16[2,4,128,64], index: 7, kind: input, shape index: {}]   ;;  %s7776_s8 = inlined_call_operand.vmem [shape: f32[1,64], index: 8, kind: input, shape index: {}]   ;;  %s7777_s9 = inlined_call_operand.hbm [shape: f32[16,64], index: 9, kind: output, shape index: {}]  }
   0x1   :  { %15 = vsyncpa [#allocation6], 0 }
   0x2   :  { %16 = vsyncpa [#allocation9], 0 }
   0x3   :  { %17 = vsyncpa [#allocation4], 0  ;;  %s6603_s30 = smov [#allocation5]  }
   0x4   :  { %s41_s10 = sshll.u32 %s6603_s30, 4  ;;  %s42_s10 = int_to_ptr.vmem [resolvable:$true] %s41_s10 }
   0x5   :  { %s6483_s11 = scalar_lea.vmem %s42_s10, 1024  ;;  %p6488_p1 = scmp.lt.s32.totalorder %s42_s10, %s42_s10 }
   0x6   :  { %p6484_p0 = scmp.ne.s32.totalorder %s42_s10, %s6483_s11  ;;  %p6489_p2 = scmp.lt.s32.totalorder %s6483_s11, %s6483_s11 }
   0x8   :  { %p6490_p3 = por %p6489_p2, %p6488_p1 }
   0xa   :  { %p6491_p4 = pnand %p6490_p3, %p6484_p0 }
   0xc   :  { %6494 = shalt.err (!%p6491_p4)
}
   0xd   :  { %s6604_s12 = smov 64   ;;  %s6605_s13 = smov 4  }
   0xe   :  { %47 = dma.hbm_to_vmem [thread:$0]  %s7772_s4, 1024, %s42_s10, [#allocation6], %s6604_s12, %s6604_s12, %s6605_s13  }
   0xf   :  { %s6606_s16 = smov [#allocation8]   ;;  %s6607_s18 = smov [#allocation2]  }
  0x10   :  { %s65_s17 = sshll.u32 %s6606_s16, 4  ;;  %s29_s19 = sshll.u32 %s6607_s18, 4  ;;  %s66_s17 = int_to_ptr.vmem [resolvable:$true] %s65_s17  ;;  %s30_s19 = int_to_ptr.vmem [resolvable:$true] %s29_s19 }
  0x11   :  { %s6503_s20 = scalar_lea.vmem %s66_s17, 8192  ;;  %p6508_p6 = scmp.lt.s32.totalorder %s66_s17, %s66_s17 }
  0x12   :  { %p6504_p5 = scmp.ne.s32.totalorder %s66_s17, %s6503_s20  ;;  %p6509_p7 = scmp.lt.s32.totalorder %s6503_s20, %s6503_s20 }
  0x14   :  { %p6510_p8 = por %p6509_p7, %p6508_p6 }
  0x16   :  { %p6511_p9 = pnand %p6510_p8, %p6504_p5 }
  0x18   :  { %6514 = shalt.err (!%p6511_p9)
}
  0x19   :  { %s6608_s21 = smov 128   ;;  %s6609_s22 = smov 8  }
  0x1a   :  { %71 = dma.hbm_to_vmem [thread:$0]  %s7774_s6, 8192, %s66_s17, [#allocation9], %s6608_s21, %s6608_s21, %s6609_s22  }
  0x1b   :  { %s6523_s4 = scalar_lea.vmem %s30_s19, 1024  ;;  %p6528_p11 = scmp.lt.s32.totalorder %s30_s19, %s30_s19 }
  0x1c   :  { %p6524_p10 = scmp.ne.s32.totalorder %s30_s19, %s6523_s4  ;;  %p6529_p12 = scmp.lt.s32.totalorder %s6523_s4, %s6523_s4 }
  0x1e   :  { %p6530_p13 = por %p6529_p12, %p6528_p11 }
  0x20   :  { %p6531_p0 = pnand %p6530_p13, %p6524_p10 }
  0x22   :  { %6534 = shalt.err (!%p6531_p0)
}
  0x23   :  { %35 = dma.hbm_to_vmem [thread:$0]  %s7771_s3, 1024, %s30_s19, [#allocation3], %s6604_s12, %s6604_s12, %s6605_s13  }
  0x24   :  { %s6610_s27 = smov [#allocation7]   ;;  %s6611_s29 = smov [#allocation10]  }
  0x25   :  { %s53_s28 = sshll.u32 %s6610_s27, 4  ;;  %s77_s6 = sshll.u32 %s6611_s29, 4  ;;  %s54_s28 = int_to_ptr.vmem [resolvable:$true] %s53_s28  ;;  %s78_s6 = int_to_ptr.vmem [resolvable:$true] %s77_s6 }
  0x26   :  { %s6543_s30 = scalar_lea.vmem %s54_s28, 2048  ;;  %p6548_p2 = scmp.lt.s32.totalorder %s54_s28, %s54_s28 }
  0x27   :  { %p6544_p1 = scmp.ne.s32.totalorder %s54_s28, %s6543_s30  ;;  %p6549_p3 = scmp.lt.s32.totalorder %s6543_s30, %s6543_s30 }
  0x29   :  { %p6550_p4 = por %p6549_p3, %p6548_p2 }
  0x2b   :  { %p6551_p5 = pnand %p6550_p4, %p6544_p1 }
  0x2d   :  { %6554 = shalt.err (!%p6551_p5)
}
  0x2e   :  { %59 = dma.hbm_to_vmem [thread:$0]  %s7773_s5, 2048, %s54_s28, [#allocation6], %s6608_s21, %s6608_s21, %s6609_s22  }
  0x2f   :  { %s6563_s3 = scalar_lea.vmem %s78_s6, 8192  ;;  %p6568_p7 = scmp.lt.s32.totalorder %s78_s6, %s78_s6 }
  0x30   :  { %p6564_p6 = scmp.ne.s32.totalorder %s78_s6, %s6563_s3  ;;  %p6569_p8 = scmp.lt.s32.totalorder %s6563_s3, %s6563_s3 }
  0x32   :  { %p6570_p9 = por %p6569_p8, %p6568_p7 }
  0x34   :  { %p6571_p10 = pnand %p6570_p9, %p6564_p6 }
  0x36   :  { %6574 = shalt.err (!%p6571_p10)
}
  0x37   :  { %83 = dma.hbm_to_vmem [thread:$0]  %s7775_s7, 8192, %s78_s6, [#allocation9], %s6604_s12, %s6604_s12, %s6605_s13  }
  0x38   :  { %6595 = dma.done.wait [#allocation3], 1024  }
  0x39   :  { %6596 = vsyncadd [#allocation3], 4294966272 }
  0x3a   :  { %6597 = dma.done.wait [#allocation6], 3072  }
  0x3b   :  { %6598 = vsyncadd [#allocation6], 4294964224 }
  0x3c   :  { %6599 = dma.done.wait [#allocation9], 16384  }
  0x3d   :  { %6600 = vsyncadd [#allocation9], 4294950912  ;;  %v109_v0 = vld [vmem:[%s7768_s0] sm:$0xff]  ;;  %vm7783_vm0 = vcmask 523264   ;;  %v110_v1 = vld [vmem:[%s7768_s0 + $0x8] sm:$0xff]  ;;  %v6612_v7 = vmov 0.0  }
  0x3e   :  { %v111_v2 = vmul.f32 %v109_v0, %v109_v0  ;;  %v112_v3 = vmul.f32 %v110_v1, %v110_v1  ;;  %v6123_v6 = vld [vmem:[#allocation2 + $0x18] sm:$0xff]   ;;  %5601 = vmatprep.subr.bf16.mxu1 %v6612_v7  ;;  %v6124_v8 = vld [vmem:[#allocation2 + $0x10] sm:$0xff]   ;;  %vm7784_vm1 = vmmov 0   ;;  %5625 = vmatprep.subr.bf16.mxu0 %v6612_v7  ;;  %v6125_v9 = vld [vmem:[#allocation2 + $0x8] sm:$0xff]   ;;  %s6614_s7 = smov 104   ;;  %s6615_s13 = smov 56  }
  0x3f   :  { %5609 = vmatprep.mubr.msk.bf16.mxu1 %vm7784_vm1, %v6612_v7  ;;  %5602 = vmatpush3.bf16.msra.mxu1 %v6123_v6  ;;  %v6126_v10 = vld [vmem:[#allocation2] sm:$0xff]   ;;  %s6616_s19 = smov 88   ;;  %s6617_s20 = smov 72   ;;  %vm7782_vm2 = vcmask 64512   ;;  %vm7781_vm3 = vcmask 130048   ;;  %vm7780_vm5 = vcmask 1043456  }
  0x40   :  { %v114_v4 = vsel %vm7783_vm0, %v111_v2, 0.0  ;;  %v117_v5 = vsel %vm7783_vm0, %v112_v3, 0.0  ;;  %5603 = vmatprep.subr.bf16.mxu1 %v6612_v7  ;;  %5627 = vmatprep.mubr.msk.bf16.mxu0 %vm7784_vm1, %v6612_v7  ;;  %s6618_s23 = smov 120   ;;  %s6619_s24 = smov 40   ;;  %v6781_v28 = vld [vmem:[%s7769_s1] sm:$0xff]  ;;  %vm7779_vm6 = vcmask 261120  }
  0x41   :  { %115 = vadd.xlane.f32.xlu0 %v114_v4  ;;  %s6620_s26 = smov 16   ;;  %v6792_v30 = vld [vmem:[%s7770_s2] sm:$0xff]  ;;  %s6621_s29 = smov 80   ;;  %vm7778_vm7 = vcmask 392192   ;;  %vm7790_vm8 = vcmask 31744  }
  0x42   :  { %s6622_s6 = smov 32   ;;  %s6623_s30 = smov 48  }
  0x43   :  { %5604 = vmatpush3.bf16.msra.mxu1 %v6124_v8  ;;  %s6624_s10 = smov 112   ;;  %s6625_s11 = smov 96  }
  0x44   :  { %5605 = vmatprep.subr.bf16.mxu1 %v6612_v7  ;;  %s6630_s18 = smov [#allocation11]  }
  0x45   :  { %118 = vadd.xlane.f32.xlu0 %v117_v5 }
  0x47   :  { %5606 = vmatpush3.bf16.msra.mxu1 %v6125_v9 }
  0x48   :  { %5607 = vmatprep.subr.bf16.mxu1 %v6612_v7 }
  0x4b   :  { %5608 = vmatpush3.bf16.msra.mxu1 %v6126_v10 }
  0x4c   :  { %5613 = vmatprep.subr.bf16.mxu1 %v6612_v7 }
  0xca   :  { %v116_v11 = vpop.xlane.xlu0 %115 }
  0xcb   :  { %v121_v12 = vmul.f32 0.015625, %v116_v11 }
  0xcd   :  { %v123_v13 = vadd.f32 1e-05, %v121_v12 }
  0xce   :  { %v119_v14 = vpop.xlane.xlu0 %118 }
  0xcf   :  { %v122_v15 = vmul.f32 0.015625, %v119_v14  ;;  %6299 = vrsqrt.f32 %v123_v13 }
  0xd1   :  { %v124_v16 = vadd.f32 1e-05, %v122_v15 }
  0xd3   :  { %6301 = vrsqrt.f32 %v124_v16 }
  0xdc   :  { %v6300_v17 = vpop.eup %6299 }
  0xdd   :  { %v127_v19 = vmul.f32 %v6300_v17, %v109_v0 }
  0xe0   :  { %v6302_v18 = vpop.eup %6301 }
  0xe1   :  { %v128_v20 = vmul.f32 %v6302_v18, %v110_v1 }
  0xe3   :  { %v129_v21 = vpack.c.bf16 %v128_v20, %v127_v19 }
  0xe5   :  { %5610 = vmatmul.mubr.msk.bf16.vlgmr.msra.gmra.mxu1 %vm7783_vm0, %v129_v21 }
  0xe6   :  { %5615 = vmatprep.mubr.msk.bf16.mxu1 %vm7784_vm1, %v6612_v7 }
 0x1a5   :  { %v6732_v22 = vpop.f32.mrf.mxu1 }
 0x1a6   :  { %v6735_v23 = vsub.f32 0.0, %v6732_v22 }
 0x1a7   :  { %v5611_v24 = vpop.f32.mrf.mxu1 }
 0x1a8   :  { %355 = vrot.lane.b32.xlu0 %v6735_v23, %s6614_s7  ;;  %208 = vrot.lane.b32.xlu1 %v6735_v23, %s6615_s13 }
 0x1a9   :  { %v6741_v25 = vpop.f32.mrf.mxu1 }
 0x1aa   :  { %v6768_v27 = vsub.f32 0.0, %v6741_v25 }
 0x1ab   :  { %v5612_v26 = vpop.f32.mrf.mxu1 }
 0x1ac   :  { %629 = vrot.lane.b32.xlu0 %v6732_v22, %s6616_s19  ;;  %212 = vrot.lane.b32.xlu1 %v6732_v22, %s6617_s20 }
 0x1b0   :  { %358 = vrot.lane.b32.xlu1 %v6732_v22, %s6618_s23  ;;  %770 = vrot.lane.b32.xlu0 %v6741_v25, %s6617_s20 }
 0x1b4   :  { %479 = vrot.lane.b32.xlu1 %v6732_v22, %s6615_s13  ;;  %909 = vrot.lane.b32.xlu0 %v6741_v25, %s6618_s23 }
 0x1b8   :  { %476 = vrot.lane.b32.xlu1 %v6735_v23, %s6619_s24  ;;  %1027 = vrot.lane.b32.xlu0 %v6741_v25, %s6615_s13 }
 0x1bc   :  { %497 = vrot.lane.b32.xlu1 %v6732_v22, %s6614_s7  ;;  %1042 = vrot.lane.b32.xlu0 %v6741_v25, %s6614_s7 }
 0x1c0   :  { %494 = vrot.lane.b32.xlu1 %v6735_v23, %s6616_s19 }
 0x1c4   :  { %626 = vrot.lane.b32.xlu1 %v6735_v23, %s6617_s20 }
 0x1c8   :  { %766 = vrot.lane.b32.xlu1 %v6768_v27, %s6615_s13 }
 0x1cc   :  { %906 = vrot.lane.b32.xlu1 %v6768_v27, %s6614_s7 }
 0x1d0   :  { %1024 = vrot.lane.b32.xlu1 %v6768_v27, %s6619_s24 }
 0x1d4   :  { %1039 = vrot.lane.b32.xlu1 %v6768_v27, %s6616_s19 }
 0x1d8   :  { %218 = vrot.lane.b32.xlu1 %v6781_v28, %s6604_s12 }
 0x1dc   :  { %1168 = vrot.lane.b32.xlu1 %v6768_v27, %s6617_s20 }
 0x1e0   :  { %362 = vrot.lane.b32.xlu1 %v6781_v28, %s6620_s26 }
 0x21a   :  { %v209_v29 = vpop.permute.xlu1 %208  ;;  %v356_v34 = vpop.permute.xlu0 %355 }
 0x21e   :  { %v213_v31 = vpop.permute.xlu1 %212  ;;  %v630_v42 = vpop.permute.xlu0 %629 }
 0x21f   :  { %v216_v32 = vsel %vm7782_vm2, %v209_v29, %v213_v31 }
 0x220   :  { %v222_v33 = vmul.f32 %v216_v32, %v6792_v30 }
 0x222   :  { %v359_v35 = vpop.permute.xlu1 %358  ;;  %224 = vrot.lane.b32.xlu0 %v222_v33, %s6604_s12  ;;  %v771_v46 = vpop.permute.xlu0 %770 }
 0x223   :  { %v361_v36 = vsel %vm7782_vm2, %v356_v34, %v359_v35 }
 0x224   :  { %v366_v37 = vmul.f32 %v361_v36, %v6792_v30 }
 0x226   :  { %v480_v38 = vpop.permute.xlu1 %479  ;;  %1171 = vrot.lane.b32.xlu0 %v6741_v25, %s6616_s19  ;;  %368 = vrot.lane.b32.xlu1 %v366_v37, %s6620_s26  ;;  %v910_v51 = vpop.permute.xlu0 %909 }
 0x22a   :  { %v477_v39 = vpop.permute.xlu1 %476  ;;  %483 = vrot.lane.b32.xlu0 %v6781_v28, %s6621_s29  ;;  %501 = vrot.lane.b32.xlu1 %v6781_v28, %s6622_s6  ;;  %v1028_v57 = vpop.permute.xlu0 %1027 }
 0x22b   :  { %v482_v40 = vsel %vm7782_vm2, %v477_v39, %v480_v38 }
 0x22c   :  { %v487_v41 = vmul.f32 %v482_v40, %v6792_v30 }
 0x22e   :  { %v498_v43 = vpop.permute.xlu1 %497  ;;  %489 = vrot.lane.b32.xlu0 %v487_v41, %s6621_s29  ;;  %633 = vrot.lane.b32.xlu1 %v6781_v28, %s6623_s30  ;;  %v1043_v62 = vpop.permute.xlu0 %1042 }
 0x232   :  { %v495_v44 = vpop.permute.xlu1 %494 }
 0x233   :  { %v500_v45 = vsel %vm7782_vm2, %v495_v44, %v498_v43 }
 0x234   :  { %v505_v47 = vmul.f32 %v500_v45, %v6792_v30 }
 0x236   :  { %v627_v48 = vpop.permute.xlu1 %626  ;;  %507 = vrot.lane.b32.xlu0 %v505_v47, %s6622_s6 }
 0x237   :  { %v632_v49 = vsel %vm7782_vm2, %v627_v48, %v630_v42 }
 0x238   :  { %v637_v50 = vmul.f32 %v632_v49, %v6792_v30 }
 0x23a   :  { %v767_v52 = vpop.permute.xlu1 %766  ;;  %639 = vrot.lane.b32.xlu0 %v637_v50, %s6623_s30 }
 0x23b   :  { %v773_v53 = vsel %vm7782_vm2, %v767_v52, %v771_v46 }
 0x23c   :  { %v775_v54 = vmul.f32 %v773_v53, %v6792_v30 }
 0x23e   :  { %v907_v55 = vpop.permute.xlu1 %906  ;;  %777 = vrot.lane.b32.xlu1 %v775_v54, %s6604_s12 }
 0x23f   :  { %v912_v56 = vsel %vm7782_vm2, %v907_v55, %v910_v51 }
 0x240   :  { %v914_v58 = vmul.f32 %v912_v56, %v6792_v30 }
 0x242   :  { %v1025_v59 = vpop.permute.xlu1 %1024  ;;  %916 = vrot.lane.b32.xlu0 %v914_v58, %s6620_s26 }
 0x243   :  { %v1030_v60 = vsel %vm7782_vm2, %v1025_v59, %v1028_v57 }
 0x244   :  { %v1032_v61 = vmul.f32 %v1030_v60, %v6792_v30 }
 0x246   :  { %v1040_v63 = vpop.permute.xlu1 %1039  ;;  %1034 = vrot.lane.b32.xlu1 %v1032_v61, %s6621_s29  ;;  %v237_v61 = vmul.f32 %v6732_v22, %v6781_v28 }
 0x247   :  { %v1045_v0 = vsel %vm7782_vm2, %v1040_v63, %v1043_v62 }
 0x248   :  { %v1047_v1 = vmul.f32 %v1045_v0, %v6792_v30 }
 0x24a   :  { %1049 = vrot.lane.b32.xlu0 %v1047_v1, %s6622_s6  ;;  %v6831_v2 = vpop.permute.xlu1 %218 }
 0x24b   :  { %v221_v4 = vmul.f32 %v6831_v2, %v6732_v22  ;;  %v774_v37 = vmul.f32 %v6831_v2, %v6741_v25 }
 0x24e   :  { %230 = vrot.lane.b32.xlu0 %v6735_v23, %s6618_s23  ;;  %v1169_v3 = vpop.permute.xlu1 %1168 }
 0x252   :  { %v6835_v5 = vpop.permute.xlu1 %362 }
 0x253   :  { %v365_v13 = vmul.f32 %v6835_v5, %v6732_v22  ;;  %v913_v40 = vmul.f32 %v6835_v5, %v6741_v25 }
 0x294   :  { %v225_v6 = vpop.permute.xlu0 %224 }
 0x295   :  { %v227_v8 = vadd.f32 %v225_v6, %v221_v4 }
 0x297   :  { %v228_v9 = vpack.c.bf16 %v227_v8, %v227_v8 }
 0x298   :  { %v1172_v10 = vpop.permute.xlu0 %1171  ;;  %v369_v11 = vpop.permute.xlu1 %368 }
 0x299   :  { %v1174_v12 = vsel %vm7782_vm2, %v1169_v3, %v1172_v10  ;;  %242 = vrot.lane.b32.xlu1 %v228_v9, %s6604_s12  ;;  %v371_v15 = vadd.f32 %v369_v11, %v365_v13 }
 0x29a   :  { %v1176_v14 = vmul.f32 %v1174_v12, %v6792_v30 }
 0x29b   :  { %v372_v17 = vpack.c.bf16 %v371_v15, %v371_v15 }
 0x29c   :  { %v6842_v16 = vpop.permute.xlu0 %483  ;;  %1178 = vrot.lane.b32.xlu0 %v1176_v14, %s6623_s30  ;;  %v6850_v21 = vpop.permute.xlu1 %501  ;;  %v790_v14 = vmul.f32 %v6741_v25, %v6781_v28 }
 0x29d   :  { %233 = vrot.lane.b32.xlu1 %v6732_v22, %s6609_s22  ;;  %v486_v18 = vmul.f32 %v6842_v16, %v6732_v22  ;;  %v504_v24 = vmul.f32 %v6850_v21, %v6732_v22  ;;  %v1031_v45 = vmul.f32 %v6842_v16, %v6741_v25  ;;  %v1046_v49 = vmul.f32 %v6850_v21, %v6741_v25 }
 0x2a0   :  { %v490_v19 = vpop.permute.xlu0 %489  ;;  %v6855_v26 = vpop.permute.xlu1 %633 }
 0x2a1   :  { %v492_v20 = vadd.f32 %v490_v19, %v486_v18  ;;  %374 = vrot.lane.b32.xlu1 %v372_v17, %s6624_s10  ;;  %v636_v33 = vmul.f32 %v6855_v26, %v6732_v22  ;;  %v1175_v55 = vmul.f32 %v6855_v26, %v6741_v25 }
 0x2a3   :  { %v493_v23 = vpack.c.bf16 %v492_v20, %v492_v20 }
 0x2a5   :  { %516 = vrot.lane.b32.xlu0 %v493_v23, %s6623_s30 }
 0x2a8   :  { %v508_v29 = vpop.permute.xlu0 %507 }
 0x2a9   :  { %v510_v31 = vadd.f32 %v508_v29, %v504_v24  ;;  %v104_v24 = vlaneseq }
 0x2ab   :  { %v511_v32 = vpack.c.bf16 %v510_v31, %v510_v31  ;;  %v105_v29 = vshrl.u32 %v104_v24, 7  ;;  %v6924_v31 = vand.u32 127, %v104_v24 }
 0x2ac   :  { %v640_v34 = vpop.permute.xlu0 %639 }
 0x2ad   :  { %v642_v35 = vadd.f32 %v640_v34, %v636_v33  ;;  %513 = vrot.lane.b32.xlu1 %v511_v32, %s6625_s11  ;;  %vm6927_vm4 = vcmp.le.s32.totalorder %v6924_v31, %v105_v29  ;;  %v7797_v33 = vmov 0  ;;  %vm7789_vm9 = vcmp.lt.s32.totalorder %v6924_v31, 1 }
 0x2ae   :  { %v7798_v33 = vsel %vm6927_vm4, 4294967295, %v7797_v33  ;;  %vm7788_vm15 = vcmp.lt.s32.totalorder %v6924_v31, 2 }
 0x2af   :  { %v643_v36 = vpack.c.bf16 %v642_v35, %v642_v35 }
 0x2b0   :  { %v778_v38 = vpop.permute.xlu1 %777 }
 0x2b1   :  { %v780_v39 = vadd.f32 %v778_v38, %v774_v37  ;;  %645 = vrot.lane.b32.xlu0 %v643_v36, %s6621_s29 }
 0x2b3   :  { %v781_v41 = vpack.c.bf16 %v780_v39, %v780_v39 }
 0x2b4   :  { %v917_v42 = vpop.permute.xlu0 %916 }
 0x2b5   :  { %v919_v43 = vadd.f32 %v917_v42, %v913_v40  ;;  %783 = vrot.lane.b32.xlu0 %v6768_v27, %s6618_s23  ;;  %795 = vrot.lane.b32.xlu1 %v781_v41, %s6604_s12 }
 0x2b7   :  { %v920_v44 = vpack.c.bf16 %v919_v43, %v919_v43 }
 0x2b8   :  { %v1035_v46 = vpop.permute.xlu1 %1034 }
 0x2b9   :  { %v1037_v47 = vadd.f32 %v1035_v46, %v1031_v45  ;;  %922 = vrot.lane.b32.xlu0 %v920_v44, %s6624_s10  ;;  %786 = vrot.lane.b32.xlu1 %v6741_v25, %s6609_s22 }
 0x2bb   :  { %v1038_v48 = vpack.c.bf16 %v1037_v47, %v1037_v47 }
 0x2bc   :  { %v1050_v50 = vpop.permute.xlu0 %1049 }
 0x2bd   :  { %v1052_v51 = vadd.f32 %v1050_v50, %v1046_v49  ;;  %1058 = vrot.lane.b32.xlu1 %v1038_v48, %s6623_s30 }
 0x2bf   :  { %v1053_v27 = vpack.c.bf16 %v1052_v51, %v1052_v51 }
 0x2c0   :  { %v231_v52 = vpop.permute.xlu0 %230 }
 0x2c1   :  { %1055 = vrot.lane.b32.xlu0 %v1053_v27, %s6625_s11 }
 0x30b   :  { %v243_v53 = vpop.permute.xlu1 %242 }
 0x30c   :  { %v249_v54 = vsel %vm7781_vm3, %v243_v53, 0 }
 0x30d   :  { %5614 = vmatpush3.bf16.xpose.msra.mxu1 %v249_v54  ;;  %5626 = vmatpush3.bf16.xpose.msra.mxu0 %v249_v54 }
 0x30e   :  { %v1179_v56 = vpop.permute.xlu0 %1178  ;;  %5637 = vmatprep.subr.bf16.mxu0 %v6612_v7  ;;  %5619 = vmatprep.subr.bf16.mxu1 %v6612_v7 }
 0x30f   :  { %v1181_v57 = vadd.f32 %v1179_v56, %v1175_v55  ;;  %v234_v58 = vpop.permute.xlu1 %233 }
 0x310   :  { %v236_v59 = vsel %vm7782_vm2, %v231_v52, %v234_v58 }
 0x311   :  { %v1182_v60 = vpack.c.bf16 %v1181_v57, %v1181_v57  ;;  %v238_v62 = vmul.f32 %v236_v59, %v6792_v30 }
 0x313   :  { %v239_v63 = vadd.f32 %v238_v62, %v237_v61  ;;  %1184 = vrot.lane.b32.xlu1 %v1182_v60, %s6621_s29  ;;  %v375_v0 = vpop.permute.xlu1 %374 }
 0x314   :  { %5628 = vmatmul.mubr.msk.bf16.vlgmr.msra.gmra.mxu0 %vm7781_vm3, %v375_v0 }
 0x315   :  { %v240_v1 = vpack.c.bf16 %v239_v63, %v239_v63  ;;  %5639 = vmatprep.mubr.msk.bf16.mxu0 %vm7784_vm1, %v6612_v7 }
 0x317   :  { %v517_v3 = vpop.permute.xlu0 %516  ;;  %5616 = vmatmul.mubr.msk.bf16.vlgmr.msra.gmra.mxu1 %vm7781_vm3, %v240_v1 }
 0x318   :  { %v522_v4 = vsel %vm7781_vm3, %v517_v3, 0  ;;  %5621 = vmatprep.mubr.msk.bf16.mxu1 %vm7784_vm1, %v6612_v7 }
 0x319   :  { %5638 = vmatpush3.bf16.xpose.msra.mxu0 %v522_v4 }
 0x31a   :  { %5649 = vmatprep.subr.bf16.mxu0 %v6612_v7 }
 0x31f   :  { %v514_v6 = vpop.permute.xlu1 %513 }
 0x320   :  { %5640 = vmatmul.mubr.msk.bf16.vlgmr.msra.gmra.mxu0 %vm7781_vm3, %v514_v6 }
 0x321   :  { %5650 = vmatpush3.bf16.xpose.msra.mxu0 %v522_v4  ;;  %5651 = vmatprep.mubr.msk.bf16.mxu0 %vm7784_vm1, %v6612_v7 }
 0x322   :  { %5661 = vmatprep.subr.bf16.mxu0 %v6612_v7 }
 0x323   :  { %v646_v8 = vpop.permute.xlu0 %645 }
 0x327   :  { %v796_v9 = vpop.permute.xlu1 %795  ;;  %v784_v11 = vpop.permute.xlu0 %783 }
 0x328   :  { %v801_v10 = vsel %vm7781_vm3, %v796_v9, 0  ;;  %5652 = vmatmul.mubr.msk.bf16.vlgmr.msra.gmra.mxu0 %vm7781_vm3, %v646_v8 }
 0x329   :  { %5662 = vmatpush3.bf16.xpose.msra.mxu0 %v801_v10  ;;  %5663 = vmatprep.mubr.msk.bf16.mxu0 %vm7784_vm1, %v6612_v7 }
 0x32a   :  { %5673 = vmatprep.subr.bf16.mxu0 %v6612_v7 }
 0x32b   :  { %v787_v12 = vpop.permute.xlu1 %786  ;;  %v923_v20 = vpop.permute.xlu0 %922 }
 0x32c   :  { %v789_v13 = vsel %vm7782_vm2, %v784_v11, %v787_v12 }
 0x32d   :  { %v791_v15 = vmul.f32 %v789_v13, %v6792_v30 }
 0x32f   :  { %v792_v17 = vadd.f32 %v791_v15, %v790_v14  ;;  %v1059_v19 = vpop.permute.xlu1 %1058 }
 0x330   :  { %v1064_v23 = vsel %vm7781_vm3, %v1059_v19, 0 }
 0x331   :  { %v793_v18 = vpack.c.bf16 %v792_v17, %v792_v17 }
 0x333   :  { %5664 = vmatmul.mubr.msk.bf16.vlgmr.msra.gmra.mxu0 %vm7781_vm3, %v793_v18  ;;  %v1056_v28 = vpop.permute.xlu0 %1055 }
 0x334   :  { %5674 = vmatpush3.bf16.xpose.msra.mxu0 %v801_v10  ;;  %5675 = vmatprep.mubr.msk.bf16.mxu0 %vm7784_vm1, %v6612_v7 }
 0x335   :  { %5685 = vmatprep.subr.bf16.mxu0 %v6612_v7 }
 0x33b   :  { %5676 = vmatmul.mubr.msk.bf16.vlgmr.msra.gmra.mxu0 %vm7781_vm3, %v923_v20 }
 0x33c   :  { %5686 = vmatpush3.bf16.xpose.msra.mxu0 %v1064_v23  ;;  %5687 = vmatprep.mubr.msk.bf16.mxu0 %vm7784_vm1, %v6612_v7 }
 0x33d   :  { %5697 = vmatprep.subr.bf16.mxu0 %v6612_v7 }
 0x343   :  { %5688 = vmatmul.mubr.msk.bf16.vlgmr.msra.gmra.mxu0 %vm7781_vm3, %v1056_v28 }
 0x344   :  { %5698 = vmatpush3.bf16.xpose.msra.mxu0 %v1064_v23  ;;  %5699 = vmatprep.mubr.msk.bf16.mxu0 %vm7784_vm1, %v6612_v7 }
 0x345   :  { %5709 = vmatprep.subr.bf16.mxu0 %v6612_v7 }
 0x385   :  { %v1185_v30 = vpop.permute.xlu1 %1184 }
 0x386   :  { %5700 = vmatmul.mubr.msk.bf16.vlgmr.msra.gmra.mxu0 %vm7781_vm3, %v1185_v30 }
 0x387   :  { %5717 = vmatprep.mubr.msk.bf16.mxu0 %vm7784_vm1, %v6612_v7 }
 0x3d4   :  { %v413_v32 = vpop.f32.mrf.mxu0 }
 0x3d5   :  { %v419_v34 = vmul.f32 0.25, %v413_v32 }
 0x3d6   :  { %v5629_v35 = vpop.f32.mrf.mxu0 }
 0x3d7   :  { %v285_v36 = vpop.f32.mrf.mxu1  ;;  %v420_v37 = vsel %vm6927_vm4, %v419_v34, -1e+30 }
 0x3d8   :  { %v291_v38 = vmul.f32 0.25, %v285_v36  ;;  %v416_v39 = vpop.f32.mrf.mxu0  ;;  %v421_v40 = vsel %vm7782_vm2, %v420_v37, -inf }
 0x3d9   :  { %422 = vmax.xlane.f32.xlu1 %v421_v40  ;;  %v5617_v41 = vpop.f32.mrf.mxu1 }
 0x3da   :  { %v5630_v42 = vpop.f32.mrf.mxu0  ;;  %v292_v43 = vsel %vm6927_vm4, %v291_v38, -1e+30 }
 0x3db   :  { %v288_v44 = vpop.f32.mrf.mxu1  ;;  %v293_v45 = vsel %vm7782_vm2, %v292_v43, -inf }
 0x3dc   :  { %294 = vmax.xlane.f32.xlu0 %v293_v45 }
 0x3dd   :  { %v5618_v46 = vpop.f32.mrf.mxu1 }
 0x3e0   :  { %v558_v47 = vpop.f32.mrf.mxu0 }
 0x3e1   :  { %v564_v48 = vmul.f32 0.25, %v558_v47 }
 0x3e2   :  { %v5641_v49 = vpop.f32.mrf.mxu0 }
 0x3e3   :  { %v565_v50 = vsel %vm6927_vm4, %v564_v48, -1e+30 }
 0x3e4   :  { %v561_v51 = vpop.f32.mrf.mxu0  ;;  %v566_v27 = vsel %vm7782_vm2, %v565_v50, -inf }
 0x3e5   :  { %567 = vmax.xlane.f32.xlu0 %v566_v27 }
 0x3e6   :  { %v5642_v52 = vpop.f32.mrf.mxu0 }
 0x3e8   :  { %v684_v53 = vpop.f32.mrf.mxu0 }
 0x3e9   :  { %v690_v54 = vmul.f32 0.25, %v684_v53 }
 0x3ea   :  { %v5653_v55 = vpop.f32.mrf.mxu0 }
 0x3eb   :  { %v691_v56 = vsel %vm6927_vm4, %v690_v54, -1e+30 }
 0x3ec   :  { %v687_v57 = vpop.f32.mrf.mxu0  ;;  %v692_v58 = vsel %vm7782_vm2, %v691_v56, -inf }
 0x3ed   :  { %693 = vmax.xlane.f32.xlu0 %v692_v58  ;;  %v229_v57 = vpack.c.bf16 %v6732_v22, %v6732_v22 }
 0x3ee   :  { %v5654_v59 = vpop.f32.mrf.mxu0 }
 0x3f3   :  { %v837_v60 = vpop.f32.mrf.mxu0 }
 0x3f4   :  { %v843_v61 = vmul.f32 0.25, %v837_v60 }
 0x3f5   :  { %v5665_v62 = vpop.f32.mrf.mxu0 }
 0x3f6   :  { %v844_v63 = vsel %vm6927_vm4, %v843_v61, -1e+30 }
 0x3f7   :  { %v840_v0 = vpop.f32.mrf.mxu0  ;;  %v845_v1 = vsel %vm7782_vm2, %v844_v63, -inf }
 0x3f8   :  { %846 = vmax.xlane.f32.xlu1 %v845_v1 }
 0x3f9   :  { %v5666_v3 = vpop.f32.mrf.mxu0 }
 0x3fb   :  { %v961_v4 = vpop.f32.mrf.mxu0 }
 0x3fc   :  { %v967_v6 = vmul.f32 0.25, %v961_v4 }
 0x3fd   :  { %v5677_v8 = vpop.f32.mrf.mxu0 }
 0x3fe   :  { %v6948_v9 = vsel %vm6927_vm4, %v967_v6, -1e+30  ;;  %v782_v6 = vpack.c.bf16 %v6741_v25, %v6741_v25 }
 0x3ff   :  { %v964_v10 = vpop.f32.mrf.mxu0  ;;  %v969_v11 = vsel %vm7782_vm2, %v6948_v9, -inf }
 0x400   :  { %970 = vmax.xlane.f32.xlu0 %v969_v11 }
 0x401   :  { %v5678_v12 = vpop.f32.mrf.mxu0 }
 0x403   :  { %v1100_v13 = vpop.f32.mrf.mxu0 }
 0x404   :  { %v1106_v14 = vmul.f32 0.25, %v1100_v13 }
 0x405   :  { %v5689_v15 = vpop.f32.mrf.mxu0 }
 0x406   :  { %v1107_v17 = vsel %vm6927_vm4, %v1106_v14, -1e+30 }
 0x407   :  { %v1103_v18 = vpop.f32.mrf.mxu0  ;;  %v1108_v19 = vsel %vm7782_vm2, %v1107_v17, -inf }
 0x408   :  { %1109 = vmax.xlane.f32.xlu1 %v1108_v19 }
 0x409   :  { %v5690_v20 = vpop.f32.mrf.mxu0 }
 0x446   :  { %v1223_v23 = vpop.f32.mrf.mxu0 }
 0x447   :  { %v1229_v28 = vmul.f32 0.25, %v1223_v23 }
 0x448   :  { %v5701_v30 = vpop.f32.mrf.mxu0 }
 0x449   :  { %v1230_v24 = vsel %vm6927_vm4, %v1229_v28, -1e+30 }
 0x44a   :  { %v1226_v29 = vpop.f32.mrf.mxu0  ;;  %v1231_v32 = vsel %vm7782_vm2, %v1230_v24, -inf }
 0x44b   :  { %1232 = vmax.xlane.f32.xlu0 %v1231_v32 }
 0x44c   :  { %v5702_v34 = vpop.f32.mrf.mxu0 }
 0x462   :  { %v423_v35 = vpop.xlane.xlu1 %422 }
 0x463   :  { %v424_v36 = vsub.f32 %v420_v37, %v423_v35 }
 0x465   :  { %v425_v38 = vmul.f32 1.442695, %v424_v36  ;;  %v295_v39 = vpop.xlane.xlu0 %294 }
 0x466   :  { %v296_v40 = vsub.f32 %v292_v43, %v295_v39 }
 0x467   :  { %6303 = vpow2.f32 %v425_v38 }
 0x468   :  { %v297_v41 = vmul.f32 1.442695, %v296_v40 }
 0x46a   :  { %6305 = vpow2.f32 %v297_v41 }
 0x46e   :  { %v568_v42 = vpop.xlane.xlu0 %567 }
 0x46f   :  { %v569_v44 = vsub.f32 %v565_v50, %v568_v42 }
 0x471   :  { %v570_v45 = vmul.f32 1.442695, %v569_v44 }
 0x473   :  { %6307 = vpow2.f32 %v570_v45 }
 0x474   :  { %v6958_v46 = vpop.eup %6303 }
 0x475   :  { %v427_v47 = vsel %vm7782_vm2, %v6958_v46, 0.0 }
 0x476   :  { %428 = vadd.xlane.f32.xlu0 %v427_v47  ;;  %v694_v48 = vpop.xlane.xlu0 %693 }
 0x477   :  { %v6306_v49 = vpop.eup %6305  ;;  %v695_v51 = vsub.f32 %v691_v56, %v694_v48 }
 0x478   :  { %v299_v37 = vsel %vm7782_vm2, %v6306_v49, 0.0 }
 0x479   :  { %v696_v27 = vmul.f32 1.442695, %v695_v51  ;;  %300 = vadd.xlane.f32.xlu1 %v299_v37 }
 0x47b   :  { %6309 = vpow2.f32 %v696_v27 }
 0x480   :  { %v6963_v43 = vpop.eup %6307 }
 0x481   :  { %v847_v52 = vpop.xlane.xlu1 %846  ;;  %v572_v50 = vsel %vm7782_vm2, %v6963_v43, 0.0 }
 0x482   :  { %v848_v53 = vsub.f32 %v844_v63, %v847_v52  ;;  %573 = vadd.xlane.f32.xlu1 %v572_v50 }
 0x484   :  { %v849_v54 = vmul.f32 1.442695, %v848_v53 }
 0x486   :  { %6311 = vpow2.f32 %v849_v54 }
 0x488   :  { %v6967_v55 = vpop.eup %6309 }
 0x489   :  { %v698_v56 = vsel %vm7782_vm2, %v6967_v55, 0.0  ;;  %v971_v63 = vpop.xlane.xlu0 %970 }
 0x48a   :  { %699 = vadd.xlane.f32.xlu0 %v698_v56  ;;  %v972_v0 = vsub.f32 %v6948_v9, %v971_v63 }
 0x48c   :  { %v973_v22 = vmul.f32 1.442695, %v972_v0 }
 0x491   :  { %v1110_v60 = vpop.xlane.xlu1 %1109 }
 0x492   :  { %v1111_v61 = vsub.f32 %v1107_v17, %v1110_v60 }
 0x493   :  { %v6973_v58 = vpop.eup %6311  ;;  %306 = vrot.lane.b32.xlu1 %v229_v57, %s6622_s6 }
 0x494   :  { %v851_v59 = vsel %vm7782_vm2, %v6973_v58, 0.0  ;;  %v1112_v62 = vmul.f32 1.442695, %v1111_v61 }
 0x495   :  { %852 = vadd.xlane.f32.xlu0 %v851_v59 }
 0x496   :  { %6313 = vpow2.f32 %v1112_v62 }
 0x497   :  { %6315 = vpow2.f32 %v973_v22 }
 0x4a3   :  { %v6980_v1 = vpop.eup %6313 }
 0x4a4   :  { %v1114_v3 = vsel %vm7782_vm2, %v6980_v1, 0.0  ;;  %v6984_v4 = vpop.eup %6315 }
 0x4a5   :  { %v975_v8 = vsel %vm7782_vm2, %v6984_v4, 0.0 }
 0x4ab   :  { %578 = vrot.lane.b32.xlu0 %v229_v57, %s6620_s26 }
 0x4b7   :  { %1115 = vadd.xlane.f32.xlu1 %v1114_v3 }
 0x4c8   :  { %858 = vrot.lane.b32.xlu1 %v782_v6, %s6622_s6 }
 0x4ca   :  { %976 = vadd.xlane.f32.xlu0 %v975_v8 }
 0x4d4   :  { %v1233_v9 = vpop.xlane.xlu0 %1232 }
 0x4d5   :  { %v1234_v10 = vsub.f32 %v1230_v24, %v1233_v9 }
 0x4d7   :  { %v1235_v11 = vmul.f32 1.442695, %v1234_v10 }
 0x4d9   :  { %6317 = vpow2.f32 %v1235_v11 }
 0x4e6   :  { %v6991_v12 = vpop.eup %6317 }
 0x4e7   :  { %v1237_v13 = vsel %vm7782_vm2, %v6991_v12, 0.0 }
 0x4e8   :  { %1238 = vadd.xlane.f32.xlu0 %v1237_v13 }
 0x4fe   :  { %1120 = vrot.lane.b32.xlu0 %v782_v6, %s6620_s26 }
 0x4ff   :  { %v429_v25 = vpop.xlane.xlu0 %428 }
 0x502   :  { %v301_v14 = vpop.xlane.xlu1 %300 }
 0x503   :  { %6319 = vrcp.f32 %v301_v14 }
 0x504   :  { %6321 = vrcp.f32 %v429_v25 }
 0x50b   :  { %v574_v15 = vpop.xlane.xlu1 %573 }
 0x50c   :  { %6323 = vrcp.f32 %v574_v15 }
 0x50f   :  { %v307_v17 = vpop.permute.xlu1 %306 }
 0x510   :  { %v6320_v18 = vpop.eup %6319  ;;  %v313_v19 = vsel %vm7780_vm5, %v307_v17, 0 }
 0x511   :  { %5620 = vmatpush3.bf16.msra.mxu1 %v313_v19  ;;  %v303_v20 = vmul.f32 %v6320_v18, %v6306_v49  ;;  %v6322_v28 = vpop.eup %6321 }
 0x512   :  { %5631 = vmatprep.subr.bf16.mxu1 %v6612_v7  ;;  %v431_v24 = vmul.f32 %v6322_v28, %v6958_v46 }
 0x513   :  { %v304_v23 = vpack.c.bf16 %v303_v20, %v303_v20  ;;  %v700_v30 = vpop.xlane.xlu0 %699 }
 0x514   :  { %6325 = vrcp.f32 %v700_v30  ;;  %v432_v29 = vpack.c.bf16 %v431_v24, %v431_v24  ;;  %v6127_v30 = vld [vmem:[#allocation5 + $0x18] sm:$0xff]   ;;  %v6128_v24 = vld [vmem:[#allocation5 + $0x10] sm:$0xff]  }
 0x515   :  { %5622 = vmatmul.mubr.msk.bf16.vlgmr.msra.gmra.mxu1 %vm7782_vm2, %v304_v23  ;;  %5710 = vmatpush3.bf16.msra.mxu0 %v6127_v30  ;;  %v6142_v30 = vld [vmem:[#allocation8 + $0x4] ss:$8 sps:$4 sm:$0xff]  }
 0x516   :  { %5632 = vmatpush3.bf16.msra.mxu1 %v313_v19  ;;  %5633 = vmatprep.mubr.msk.bf16.mxu1 %vm7784_vm1, %v6612_v7 }
 0x517   :  { %5643 = vmatprep.subr.bf16.mxu1 %v6612_v7  ;;  %5711 = vmatprep.subr.bf16.mxu0 %v6612_v7 }
 0x519   :  { %v6324_v32 = vpop.eup %6323  ;;  %5712 = vmatpush3.bf16.msra.mxu0 %v6128_v24  ;;  %v6140_v24 = vld [vmem:[#allocation8] ss:$8 sps:$4 sm:$0xff]  }
 0x51a   :  { %v576_v35 = vmul.f32 %v6324_v32, %v6963_v43  ;;  %5713 = vmatprep.subr.bf16.mxu0 %v6612_v7 }
 0x51c   :  { %v577_v39 = vpack.c.bf16 %v576_v35, %v576_v35  ;;  %v6130_v35 = vld [vmem:[#allocation5] sm:$0xff]  }
 0x51d   :  { %5634 = vmatmul.mubr.msk.bf16.vlgmr.msra.gmra.mxu1 %vm7782_vm2, %v432_v29  ;;  %v6129_v29 = vld [vmem:[#allocation5 + $0x8] sm:$0xff]  }
 0x51e   :  { %v853_v34 = vpop.xlane.xlu0 %852  ;;  %5645 = vmatprep.mubr.msk.bf16.mxu1 %vm7784_vm1, %v6612_v7  ;;  %5714 = vmatpush3.bf16.msra.mxu0 %v6129_v29  ;;  %v6145_v29 = vld [vmem:[#allocation8 + $0x74] ss:$8 sps:$4 sm:$0xff]  }
 0x51f   :  { %6327 = vrcp.f32 %v853_v34  ;;  %5715 = vmatprep.subr.bf16.mxu0 %v6612_v7 }
 0x521   :  { %v6326_v40 = vpop.eup %6325 }
 0x522   :  { %v579_v36 = vpop.permute.xlu0 %578  ;;  %v702_v41 = vmul.f32 %v6326_v40, %v6967_v55  ;;  %5716 = vmatpush3.bf16.msra.mxu0 %v6130_v35 }
 0x523   :  { %v584_v38 = vsel %vm7780_vm5, %v579_v36, 0 }
 0x524   :  { %5644 = vmatpush3.bf16.msra.mxu1 %v584_v38  ;;  %v703_v42 = vpack.c.bf16 %v702_v41, %v702_v41 }
 0x525   :  { %5655 = vmatprep.subr.bf16.mxu1 %v6612_v7 }
 0x527   :  { %5646 = vmatmul.mubr.msk.bf16.vlgmr.msra.gmra.mxu1 %vm7782_vm2, %v577_v39 }
 0x528   :  { %5656 = vmatpush3.bf16.msra.mxu1 %v584_v38  ;;  %5657 = vmatprep.mubr.msk.bf16.mxu1 %vm7784_vm1, %v6612_v7 }
 0x529   :  { %5667 = vmatprep.subr.bf16.mxu1 %v6612_v7 }
 0x52c   :  { %v6328_v44 = vpop.eup %6327 }
 0x52d   :  { %v855_v46 = vmul.f32 %v6328_v44, %v6973_v58 }
 0x52f   :  { %5658 = vmatmul.mubr.msk.bf16.vlgmr.msra.gmra.mxu1 %vm7782_vm2, %v703_v42  ;;  %v856_v49 = vpack.c.bf16 %v855_v46, %v855_v46 }
 0x530   :  { %5669 = vmatprep.mubr.msk.bf16.mxu1 %vm7784_vm1, %v6612_v7 }
 0x540   :  { %v1116_v45 = vpop.xlane.xlu1 %1115 }
 0x544   :  { %v859_v47 = vpop.permute.xlu1 %858 }
 0x545   :  { %v864_v48 = vsel %vm7780_vm5, %v859_v47, 0 }
 0x546   :  { %5668 = vmatpush3.bf16.msra.mxu1 %v864_v48 }
 0x547   :  { %5679 = vmatprep.subr.bf16.mxu1 %v6612_v7 }
 0x549   :  { %5670 = vmatmul.mubr.msk.bf16.vlgmr.msra.gmra.mxu1 %vm7782_vm2, %v856_v49 }
 0x54a   :  { %5680 = vmatpush3.bf16.msra.mxu1 %v864_v48  ;;  %5681 = vmatprep.mubr.msk.bf16.mxu1 %vm7784_vm1, %v6612_v7 }
 0x54b   :  { %5691 = vmatprep.subr.bf16.mxu1 %v6612_v7 }
 0x553   :  { %v977_v51 = vpop.xlane.xlu0 %976 }
 0x554   :  { %6329 = vrcp.f32 %v977_v51 }
 0x555   :  { %6331 = vrcp.f32 %v1116_v45 }
 0x561   :  { %v6330_v37 = vpop.eup %6329 }
 0x562   :  { %v979_v27 = vmul.f32 %v6330_v37, %v6984_v4  ;;  %v6332_v52 = vpop.eup %6331 }
 0x563   :  { %v1118_v53 = vmul.f32 %v6332_v52, %v6980_v1 }
 0x564   :  { %v980_v43 = vpack.c.bf16 %v979_v27, %v979_v27 }
 0x565   :  { %v1119_v56 = vpack.c.bf16 %v1118_v53, %v1118_v53 }
 0x566   :  { %5682 = vmatmul.mubr.msk.bf16.vlgmr.msra.gmra.mxu1 %vm7782_vm2, %v980_v43 }
 0x567   :  { %5693 = vmatprep.mubr.msk.bf16.mxu1 %vm7784_vm1, %v6612_v7 }
 0x571   :  { %v1239_v50 = vpop.xlane.xlu0 %1238 }
 0x572   :  { %6333 = vrcp.f32 %v1239_v50 }
 0x575   :  { %v1121_v54 = vpop.permute.xlu0 %1120 }
 0x576   :  { %v1126_v55 = vsel %vm7780_vm5, %v1121_v54, 0 }
 0x577   :  { %5692 = vmatpush3.bf16.msra.mxu1 %v1126_v55 }
 0x578   :  { %5703 = vmatprep.subr.bf16.mxu1 %v6612_v7 }
 0x57a   :  { %5694 = vmatmul.mubr.msk.bf16.vlgmr.msra.gmra.mxu1 %vm7782_vm2, %v1119_v56 }
 0x57b   :  { %5704 = vmatpush3.bf16.msra.mxu1 %v1126_v55  ;;  %5705 = vmatprep.mubr.msk.bf16.mxu1 %vm7784_vm1, %v6612_v7 }
 0x57f   :  { %v6334_v57 = vpop.eup %6333 }
 0x580   :  { %v1241_v58 = vmul.f32 %v6334_v57, %v6991_v12 }
 0x582   :  { %v1242_v59 = vpack.c.bf16 %v1241_v58, %v1241_v58 }
 0x584   :  { %5706 = vmatmul.mubr.msk.bf16.vlgmr.msra.gmra.mxu1 %vm7782_vm2, %v1242_v59 }
 0x5d5   :  { %v349_v60 = vpop.f32.mrf.mxu1 }
 0x5d7   :  { %v5623_v61 = vpop.f32.mrf.mxu1 }
 0x5d8   :  { %v6471_v61 = vld [vmem:[%s7768_s0] sm:$0xff] }
 0x5d9   :  { %v352_v62 = vpop.f32.mrf.mxu1 }
 0x5db   :  { %v5624_v63 = vpop.f32.mrf.mxu1 }
 0x5dd   :  { %v470_v0 = vpop.f32.mrf.mxu1 }
 0x5df   :  { %v5635_v1 = vpop.f32.mrf.mxu1 }
 0x5e0   :  { %v6472_v1 = vld [vmem:[%s7768_s0 + $0x8] sm:$0xff] }
 0x5e1   :  { %v473_v22 = vpop.f32.mrf.mxu1 }
 0x5e3   :  { %v5636_v3 = vpop.f32.mrf.mxu1 }
 0x5e7   :  { %v620_v4 = vpop.f32.mrf.mxu1 }
 0x5e9   :  { %v5647_v6 = vpop.f32.mrf.mxu1 }
 0x5eb   :  { %v623_v8 = vpop.f32.mrf.mxu1 }
 0x5ed   :  { %v5648_v9 = vpop.f32.mrf.mxu1 }
 0x5ee   :  { %v1404_v9 = vld [vmem:[#allocation7 + $0x38] sm:$0xff] }
 0x5ef   :  { %v741_v10 = vpop.f32.mrf.mxu1  ;;  %5721 = vmatprep.subr.mxu1 %v1404_v9 }
 0x5f0   :  { %5722 = vmatpush3.msra.mxu1 %v1404_v9 }
 0x5f1   :  { %v5659_v11 = vpop.f32.mrf.mxu1 }
 0x5f2   :  { %v6131_v11 = vld [vmem:[#allocation8 + $0x30] ss:$8 sps:$4 sm:$0xff]  }
 0x5f3   :  { %v744_v13 = vpop.f32.mrf.mxu1 }
 0x5f4   :  { %v6133_v13 = vld [vmem:[#allocation8 + $0x34] ss:$8 sps:$4 sm:$0xff]  }
 0x5f5   :  { %v5660_v14 = vpop.f32.mrf.mxu1  ;;  %1804 = vmatprep.subr.bf16.mxu0 %v6133_v13  ;;  %v6628_v13 = vmov 2  }
 0x5f6   :  { %v1402_v14 = vld [vmem:[#allocation7 + $0x28] sm:$0xff] }
 0x609   :  { %v900_v12 = vpop.f32.mrf.mxu1 }
 0x60b   :  { %v5671_v25 = vpop.f32.mrf.mxu1 }
 0x60c   :  { %v1401_v25 = vld [vmem:[#allocation7 + $0x20] sm:$0xff] }
 0x60d   :  { %v903_v15 = vpop.f32.mrf.mxu1 }
 0x60e   :  { %v6134_v15 = vld [vmem:[#allocation8 + $0x20] ss:$8 sps:$4 sm:$0xff]  }
 0x60f   :  { %v5672_v17 = vpop.f32.mrf.mxu1 }
 0x610   :  { %v6139_v17 = vld [vmem:[#allocation8 + $0x14] ss:$8 sps:$4 sm:$0xff]  }
 0x626   :  { %v1018_v18 = vpop.f32.mrf.mxu1 }
 0x627   :  { %v6067_v19 = vpack.i.bf16 %v1018_v18, %v470_v0  ;;  %v1400_v18 = vld [vmem:[#allocation7 + $0x18] sm:$0xff] }
 0x628   :  { %v5683_v20 = vpop.f32.mrf.mxu1 }
 0x629   :  { %6068 = vrot.lane.b32.xlu1 %v6067_v19, %s6620_s26  ;;  %v1399_v19 = vld [vmem:[#allocation7 + $0x10] sm:$0xff] }
 0x62a   :  { %v1021_v23 = vpop.f32.mrf.mxu1  ;;  %v6137_v20 = vld [vmem:[#allocation8 + $0x10] ss:$8 sps:$4 sm:$0xff]  }
 0x62b   :  { %v1398_v23 = vld [vmem:[#allocation7 + $0x8] sm:$0xff] }
 0x62c   :  { %v5684_v28 = vpop.f32.mrf.mxu1 }
 0x62d   :  { %v1397_v28 = vld [vmem:[#allocation7] sm:$0xff] }
 0x63a   :  { %v1162_v32 = vpop.f32.mrf.mxu1 }
 0x63b   :  { %v6072_v34 = vpack.i.bf16 %v1162_v32, %v620_v4  ;;  %v6626_v32 = vmov 0  }
 0x63c   :  { %v5695_v36 = vpop.f32.mrf.mxu1 }
 0x63d   :  { %6073 = vrot.lane.b32.xlu1 %v6072_v34, %s6622_s6 }
 0x63e   :  { %v1165_v38 = vpop.f32.mrf.mxu1 }
 0x640   :  { %v5696_v39 = vpop.f32.mrf.mxu1 }
 0x644   :  { %v1280_v40 = vpop.f32.mrf.mxu1 }
 0x645   :  { %v6077_v41 = vpack.i.bf16 %v1280_v40, %v741_v10  ;;  %v1403_v10 = vld [vmem:[#allocation7 + $0x30] sm:$0xff] }
 0x646   :  { %v5707_v42 = vpop.f32.mrf.mxu1  ;;  %5723 = vmatprep.subr.mxu1 %v1403_v10 }
 0x647   :  { %6078 = vrot.lane.b32.xlu1 %v6077_v41, %s6623_s30  ;;  %5724 = vmatpush3.msra.mxu1 %v1403_v10 }
 0x648   :  { %v1283_v44 = vpop.f32.mrf.mxu1  ;;  %5725 = vmatprep.subr.mxu1 %v1402_v14 }
 0x649   :  { %5726 = vmatpush3.msra.mxu1 %v1402_v14  ;;  %v6629_v14 = vmov 3  }
 0x64a   :  { %v5708_v45 = vpop.f32.mrf.mxu1  ;;  %5727 = vmatprep.subr.mxu1 %v1401_v25 }
 0x64b   :  { %5728 = vmatpush3.msra.mxu1 %v1401_v25  ;;  %v6143_v45 = vld [vmem:[#allocation8 + $0x70] ss:$8 sps:$4 sm:$0xff]  }
 0x64c   :  { %5729 = vmatprep.subr.mxu1 %v1400_v18 }
 0x64d   :  { %5730 = vmatpush3.msra.mxu1 %v1400_v18 }
 0x64e   :  { %5731 = vmatprep.subr.mxu1 %v1399_v19 }
 0x64f   :  { %5732 = vmatpush3.msra.mxu1 %v1399_v19 }
 0x650   :  { %5733 = vmatprep.subr.mxu1 %v1398_v23 }
 0x651   :  { %5734 = vmatpush3.msra.mxu1 %v1398_v23 }
 0x652   :  { %5735 = vmatprep.subr.mxu1 %v1397_v28 }
 0x653   :  { %5736 = vmatpush3.msra.mxu1 %v1397_v28 }
 0x654   :  { %1941 = vmatprep.subr.bf16.mxu1 %v6145_v29 }
 0x69b   :  { %v6069_v46 = vpop.permute.xlu1 %6068 }
 0x69c   :  { %v6071_v48 = vunpack.i.h.bf16 %v6069_v46  ;;  %v6070_v49 = vunpack.i.l.bf16 %v6069_v46 }
 0x69e   :  { %v1298_v43 = vsel %vm7781_vm3, %v900_v12, %v6071_v48  ;;  %v759_v52 = vsel %vm7781_vm3, %v349_v60, %v6070_v49  ;;  %v6136_v12 = vld [vmem:[#allocation8 + $0x24] ss:$8 sps:$4 sm:$0xff]   ;;  %v6146_v49 = vld [vmem:[#allocation8 + $0x60] ss:$8 sps:$4 sm:$0xff]  }
 0x6af   :  { %v6074_v47 = vpop.permute.xlu1 %6073 }
 0x6b0   :  { %v6076_v51 = vunpack.i.h.bf16 %v6074_v47  ;;  %v6075_v37 = vunpack.i.l.bf16 %v6074_v47  ;;  %v6148_v47 = vld [vmem:[#allocation8 + $0x64] ss:$8 sps:$4 sm:$0xff]  }
 0x6b2   :  { %v1299_v54 = vsel %vm7779_vm6, %v1298_v43, %v6076_v51  ;;  %v761_v55 = vsel %vm7779_vm6, %v759_v52, %v6075_v37  ;;  %v6151_v51 = vld [vmem:[#allocation8 + $0x54] ss:$8 sps:$4 sm:$0xff]   ;;  %v6149_v37 = vld [vmem:[#allocation8 + $0x50] ss:$8 sps:$4 sm:$0xff]   ;;  %v6152_v43 = vld [vmem:[#allocation8 + $0x40] ss:$8 sps:$4 sm:$0xff]  }
 0x6b9   :  { %v6079_v27 = vpop.permute.xlu1 %6078 }
 0x6ba   :  { %v6081_v50 = vunpack.i.h.bf16 %v6079_v27  ;;  %v6080_v53 = vunpack.i.l.bf16 %v6079_v27  ;;  %v6154_v27 = vld [vmem:[#allocation8 + $0x44] ss:$8 sps:$4 sm:$0xff]  }
 0x6bc   :  { %v1300_v56 = vsel %vm7778_vm7, %v1299_v54, %v6081_v50  ;;  %v763_v57 = vsel %vm7778_vm7, %v761_v55, %v6080_v53 }
 0x6bd   :  { %v1301_v58 = vpack.c.bf16 %v1300_v56, %v763_v57 }
 0x6bf   :  { %5718 = vmatmul.mubr.msk.bf16.vlgmr.msra.gmra.mxu0 %vm7783_vm0, %v1301_v58 }
 0x6c0   :  { %1805 = vmatpush1.bf16.msra.mxu0 %v6131_v11  ;;  %1828 = vmatprep.mubr.bf16.mxu0 %v6626_v32 }
 0x6c1   :  { %1806 = vmatprep.subr.bf16.mxu0 %v6136_v12 }
 0x6c4   :  { %1807 = vmatpush1.bf16.msra.mxu0 %v6134_v15 }
 0x6c5   :  { %1808 = vmatprep.subr.bf16.mxu0 %v6139_v17 }
 0x6c8   :  { %1809 = vmatpush1.bf16.msra.mxu0 %v6137_v20 }
 0x6c9   :  { %1810 = vmatprep.subr.bf16.mxu0 %v6142_v30 }
 0x6cc   :  { %1811 = vmatpush1.bf16.msra.mxu0 %v6140_v24 }
 0x6cd   :  { %5740 = vmatprep.subr.bf16.mxu0 %v6612_v7 }
 0x77f   :  { %v1371_v59 = vpop.f32.mrf.mxu0 }
 0x780   :  { %v7052_v62 = vadd.f32 %v6471_v61, %v1371_v59 }
 0x781   :  { %v5719_v60 = vpop.f32.mrf.mxu0 }
 0x782   :  { %v1380_v63 = vmul.f32 %v7052_v62, %v7052_v62 }
 0x783   :  { %v1374_v0 = vpop.f32.mrf.mxu0 }
 0x784   :  { %v7059_v22 = vadd.f32 %v6472_v1, %v1374_v0  ;;  %v1382_v3 = vsel %vm7783_vm0, %v1380_v63, 0.0 }
 0x785   :  { %1383 = vadd.xlane.f32.xlu1 %v1382_v3  ;;  %v5720_v4 = vpop.f32.mrf.mxu0  ;;  %v6627_v3 = vmov 1  }
 0x786   :  { %v1381_v6 = vmul.f32 %v7059_v22, %v7059_v22  ;;  %6083 = vset.pattern.permute.xlu1 %v6627_v3  ;;  %6082 = vset.pattern.permute.xlu0 %v6627_v3 }
 0x788   :  { %v1385_v8 = vsel %vm7783_vm0, %v1381_v6, 0.0 }
 0x789   :  { %1386 = vadd.xlane.f32.xlu0 %v1385_v8 }
 0x80e   :  { %v1384_v34 = vpop.xlane.xlu1 %1383 }
 0x80f   :  { %v1388_v35 = vmul.f32 0.015625, %v1384_v34 }
 0x811   :  { %v1390_v36 = vadd.f32 1e-05, %v1388_v35 }
 0x812   :  { %v1387_v38 = vpop.xlane.xlu0 %1386 }
 0x813   :  { %6335 = vrsqrt.f32 %v1390_v36  ;;  %v1389_v39 = vmul.f32 0.015625, %v1387_v38 }
 0x815   :  { %v1391_v40 = vadd.f32 1e-05, %v1389_v39 }
 0x817   :  { %6337 = vrsqrt.f32 %v1391_v40 }
 0x820   :  { %v6336_v41 = vpop.eup %6335 }
 0x821   :  { %v1394_v42 = vmul.f32 %v6336_v41, %v7052_v62 }
 0x823   :  { %5737 = vmatprep.mubr.msk.f32.mxu1 %vm7783_vm0, %v1394_v42 }
 0x824   :  { %v6338_v44 = vpop.eup %6337 }
 0x825   :  { %v1395_v46 = vmul.f32 %v6338_v44, %v7059_v22 }
 0x827   :  { %v7070_v48 = vpack.c.bf16 %v1395_v46, %v1394_v42  ;;  %5738 = vmatmul.mubr.msk.f32.vlgmr.msra.gmra.mxu1 %vm7783_vm0, %v1395_v46 }
 0x828   :  { %1942 = vmatpush1.bf16.msra.mxu1 %v6143_v45  ;;  %1965 = vmatprep.mubr.bf16.mxu1 %v6626_v32 }
 0x829   :  { %5252 = vmatmul.mubr.msk.bf16.vlgmr.msra.gmra.mxu0 %vm7783_vm0, %v7070_v48  ;;  %1943 = vmatprep.subr.bf16.mxu1 %v6148_v47 }
 0x82a   :  { %5756 = vmatprep.mubr.msk.bf16.mxu0 %vm7784_vm1, %v6612_v7 }
 0x82c   :  { %1944 = vmatpush1.bf16.msra.mxu1 %v6146_v49 }
 0x82d   :  { %1945 = vmatprep.subr.bf16.mxu1 %v6151_v51 }
 0x830   :  { %1946 = vmatpush1.bf16.msra.mxu1 %v6149_v37 }
 0x831   :  { %1947 = vmatprep.subr.bf16.mxu1 %v6154_v27 }
 0x834   :  { %1948 = vmatpush1.bf16.msra.mxu1 %v6152_v43 }
 0x835   :  { %5760 = vmatprep.subr.bf16.mxu1 %v6612_v7 }
 0x837   :  { %5263 = vmatmul.mubr.msk.bf16.vlgmr.msra.gmra.mxu1 %vm7783_vm0, %v7070_v48 }
 0x838   :  { %5776 = vmatprep.mubr.msk.bf16.mxu1 %vm7784_vm1, %v6612_v7 }
 0x8e7   :  { %v5739_v52 = vpop.f32.mrf.mxu1 }
 0x8e8   :  { %v1490_v50 = vsel %vm7790_vm8, %v5739_v52, -inf }
 0x8e9   :  { %1491 = vmax.xlane.f32.xlu1 %v1490_v50  ;;  %v1477_v53 = vpop.f32.mrf.mxu1 }
 0x8ea   :  { %v1487_v54 = vsel %vm7790_vm8, %v1477_v53, -inf }
 0x8eb   :  { %1488 = vmax.xlane.f32.xlu0 %v1487_v54 }
 0x972   :  { %v1492_v55 = vpop.xlane.xlu1 %1491 }
 0x973   :  { %v1494_v56 = vsub.f32 %v5739_v52, %v1492_v55 }
 0x974   :  { %v1489_v57 = vpop.xlane.xlu0 %1488 }
 0x975   :  { %v1497_v58 = vmul.f32 1.442695, %v1494_v56  ;;  %v1493_v59 = vsub.f32 %v1477_v53, %v1489_v57 }
 0x977   :  { %6339 = vpow2.f32 %v1497_v58  ;;  %v1495_v61 = vmul.f32 1.442695, %v1493_v59 }
 0x979   :  { %6341 = vpow2.f32 %v1495_v61 }
 0x984   :  { %v6340_v60 = vpop.eup %6339 }
 0x985   :  { %v1502_v63 = vsel %vm7790_vm8, %v6340_v60, 0.0 }
 0x986   :  { %v6342_v0 = vpop.eup %6341  ;;  %1503 = vadd.xlane.f32.xlu1 %v1502_v63 }
 0x987   :  { %v1499_v1 = vsel %vm7790_vm8, %v6342_v0, 0.0 }
 0x988   :  { %1500 = vadd.xlane.f32.xlu0 %v1499_v1 }
 0xa0f   :  { %v1504_v4 = vpop.xlane.xlu1 %1503 }
 0xa10   :  { %6343 = vrcp.f32 %v1504_v4 }
 0xa11   :  { %v1501_v6 = vpop.xlane.xlu0 %1500 }
 0xa12   :  { %6345 = vrcp.f32 %v1501_v6 }
 0xa1d   :  { %v6344_v8 = vpop.eup %6343 }
 0xa1e   :  { %v7089_v9 = vmul.f32 %v6344_v8, %v6340_v60 }
 0xa1f   :  { %v6346_v10 = vpop.eup %6345 }
 0xa20   :  { %v7091_v11 = vmul.f32 %v6346_v10, %v6342_v0  ;;  %1570 = vperm.xlu1 %6083, %v7089_v9  }
 0xa22   :  { %1566 = vperm.xlu0 %6082, %v7091_v11  }
 0xa24   :  { %6084 = vset.pattern.permute.xlu1 %v6628_v13 }
 0xa25   :  { %1626 = vperm.xlu1 %6084, %v7089_v9  }
 0xa29   :  { %6085 = vset.pattern.permute.xlu1 %v6626_v32 }
 0xa2a   :  { %1516 = vperm.xlu1 %6085, %v7089_v9  }
 0xa2e   :  { %6086 = vset.pattern.permute.xlu1 %v6628_v13 }
 0xa2f   :  { %1622 = vperm.xlu1 %6086, %v7091_v11  }
 0xa33   :  { %6087 = vset.pattern.permute.xlu1 %v6626_v32 }
 0xa34   :  { %1511 = vperm.xlu1 %6087, %v7091_v11  }
 0xa38   :  { %6088 = vset.pattern.permute.xlu1 %v6629_v14 }
 0xa39   :  { %1678 = vperm.xlu1 %6088, %v7091_v11  }
 0xa3d   :  { %1682 = vperm.xlu1 %6088, %v7089_v9  }
 0xa41   :  { %6089 = vset.pattern.permute.xlu1 %v6627_v3 }
 0xa9b   :  { %v1571_v12 = vpop.permute.xlu1 %1570 }
 0xa9c   :  { %vm1576_vm10 = vcmp.eq.f32.partialorder %v7089_v9, %v1571_v12  ;;  %vm1574_vm11 = vcmp.gt.f32.partialorder %v7089_v9, %v1571_v12 }
 0xa9d   :  { %v1567_v15 = vpop.permute.xlu0 %1566  ;;  %vm1579_vm12 = vmand %vm1576_vm10, %vm7789_vm9 }
 0xa9e   :  { %vm1575_vm14 = vcmp.eq.f32.partialorder %v7091_v11, %v1567_v15  ;;  %vm7118_vm6 = vmor %vm1574_vm11, %vm1579_vm12  ;;  %vm1573_vm10 = vcmp.gt.f32.partialorder %v7091_v11, %v1567_v15 }
 0xa9f   :  { %vm1578_vm5 = vmand %vm1575_vm14, %vm7789_vm9  ;;  %v1583_v35 = vsel %vm7118_vm6, 1, %v6626_v32 }
 0xaa0   :  { %v1627_v25 = vpop.permute.xlu1 %1626  ;;  %vm1580_vm1 = vmor %vm1573_vm10, %vm1578_vm5  ;;  %v1597_v41 = vsel %vm7790_vm8, %v1583_v35, 0 }
 0xaa1   :  { %vm1632_vm7 = vcmp.eq.f32.partialorder %v7089_v9, %v1627_v25  ;;  %vm1630_vm12 = vcmp.gt.f32.partialorder %v7089_v9, %v1627_v25  ;;  %v1582_v38 = vsel %vm1580_vm1, 1, %v6626_v32  ;;  %v1599_v51 = vshrl.u32 %v1597_v41, 16 }
 0xaa2   :  { %v1584_v37 = vsel %vm7790_vm8, %v1582_v38, 0  ;;  %v1598_v63 = vand.u32 65535, %v1597_v41 }
 0xaa3   :  { %v1601_v54 = vcvt.s32.f32 %v1599_v51  ;;  %v1585_v55 = vand.u32 65535, %v1584_v37  ;;  %v1586_v20 = vshrl.u32 %v1584_v37, 16 }
 0xaa4   :  { %v1600_v4 = vcvt.s32.f32 %v1598_v63 }
 0xaa5   :  { %v1517_v17 = vpop.permute.xlu1 %1516  ;;  %v1587_v60 = vcvt.s32.f32 %v1585_v55 }
 0xaa6   :  { %vm1520_vm13 = vcmp.gt.f32.partialorder %v7089_v9, %v1517_v17 }
 0xaa7   :  { %v1529_v18 = vsel %vm1520_vm13, 1, %v6626_v32  ;;  %vm1635_vm13 = vmand %vm1632_vm7, %vm7788_vm15 }
 0xaa8   :  { %v1543_v19 = vsel %vm7790_vm8, %v1529_v18, 0  ;;  %vm1637_vm7 = vmor %vm1630_vm12, %vm1635_vm13  ;;  %vm7795_vm12 = vcmp.eq.s32.totalorder %v6924_v31, 1 }
 0xaa9   :  { %v1545_v23 = vshrl.u32 %v1543_v19, 16  ;;  %v1544_v28 = vand.u32 65535, %v1543_v19  ;;  %v1639_v46 = vsel %vm1637_vm7, 1, %v6626_v32 }
 0xaaa   :  { %v1623_v30 = vpop.permute.xlu1 %1622  ;;  %v1653_v52 = vsel %vm7790_vm8, %v1639_v46, 0 }
 0xaab   :  { %vm1629_vm3 = vcmp.gt.f32.partialorder %v7091_v11, %v1623_v30  ;;  %vm1631_vm2 = vcmp.eq.f32.partialorder %v7091_v11, %v1623_v30  ;;  %v1547_v24 = vcvt.s32.f32 %v1545_v23  ;;  %v1546_v29 = vcvt.s32.f32 %v1544_v28 }
 0xaac   :  { %vm1634_vm11 = vmand %vm1631_vm2, %vm7788_vm15  ;;  %v1655_v57 = vshrl.u32 %v1653_v52, 16  ;;  %v1654_v15 = vand.u32 65535, %v1653_v52  ;;  %v1588_v23 = vcvt.s32.f32 %v1586_v20 }
 0xaad   :  { %vm1636_vm0 = vmor %vm1629_vm3, %vm1634_vm11  ;;  %1550 = vadd.xlane.f32.xlu1 %v1547_v24  ;;  %1548 = vadd.xlane.f32.xlu0 %v1546_v29 }
 0xaae   :  { %v1638_v34 = vsel %vm1636_vm0, 1, %v6626_v32  ;;  %vm7786_vm0 = vcmp.lt.s32.totalorder %v6924_v31, 3  ;;  %v1657_v61 = vcvt.s32.f32 %v1655_v57  ;;  %v1656_v18 = vcvt.s32.f32 %v1654_v15 }
 0xaaf   :  { %v1512_v36 = vpop.permute.xlu1 %1511  ;;  %v1640_v40 = vsel %vm7790_vm8, %v1638_v34, 0 }
 0xab0   :  { %vm1519_vm14 = vcmp.gt.f32.partialorder %v7091_v11, %v1512_v36  ;;  %v1642_v49 = vshrl.u32 %v1640_v40, 16  ;;  %v1641_v10 = vand.u32 65535, %v1640_v40 }
 0xab1   :  { %v1528_v39 = vsel %vm1519_vm14, 1, %v6626_v32  ;;  %vm7787_vm14 = vcmp.eq.s32.totalorder %v6924_v31, 0 }
 0xab2   :  { %v1530_v42 = vsel %vm7790_vm8, %v1528_v39, 0  ;;  %v1644_v56 = vcvt.s32.f32 %v1642_v49  ;;  %v1643_v25 = vcvt.s32.f32 %v1641_v10 }
 0xab3   :  { %v1531_v44 = vand.u32 65535, %v1530_v42  ;;  %v1532_v45 = vshrl.u32 %v1530_v42, 16 }
 0xab4   :  { %v1679_v47 = vpop.permute.xlu1 %1678 }
 0xab5   :  { %vm1685_vm1 = vcmp.gt.f32.partialorder %v7091_v11, %v1679_v47  ;;  %vm1687_vm2 = vcmp.eq.f32.partialorder %v7091_v11, %v1679_v47  ;;  %v1533_v27 = vcvt.s32.f32 %v1531_v44  ;;  %v1534_v43 = vcvt.s32.f32 %v1532_v45 }
 0xab6   :  { %vm1690_vm3 = vmand %vm1687_vm2, %vm7786_vm0 }
 0xab7   :  { %vm1692_vm5 = vmor %vm1685_vm1, %vm1690_vm3  ;;  %1535 = vadd.xlane.f32.xlu1 %v1533_v27  ;;  %1537 = vadd.xlane.f32.xlu0 %v1534_v43 }
 0xab8   :  { %v1694_v50 = vsel %vm1692_vm5, 1, %v6626_v32  ;;  %v1683_v53 = vpop.permute.xlu1 %1682 }
 0xab9   :  { %vm1686_vm6 = vcmp.gt.f32.partialorder %v7089_v9, %v1683_v53  ;;  %vm1688_vm10 = vcmp.eq.f32.partialorder %v7089_v9, %v1683_v53  ;;  %v1696_v58 = vsel %vm7790_vm8, %v1694_v50, 0 }
 0xaba   :  { %vm1691_vm13 = vmand %vm1688_vm10, %vm7786_vm0  ;;  %v1698_v0 = vshrl.u32 %v1696_v58, 16  ;;  %v1697_v17 = vand.u32 65535, %v1696_v58 }
 0xabb   :  { %vm1693_vm11 = vmor %vm1686_vm6, %vm1691_vm13  ;;  %1647 = vadd.xlane.f32.xlu1 %v1644_v56  ;;  %1604 = vadd.xlane.f32.xlu0 %v1601_v54  ;;  %vm7793_vm13 = vcmp.eq.s32.totalorder %v6924_v31, 2 }
 0xabc   :  { %v1695_v59 = vsel %vm1693_vm11, 1, %v6626_v32  ;;  %v1700_v6 = vcvt.s32.f32 %v1698_v0  ;;  %v1699_v19 = vcvt.s32.f32 %v1697_v17 }
 0xabd   :  { %v1709_v1 = vsel %vm7790_vm8, %v1695_v59, 0 }
 0xabe   :  { %v1711_v8 = vshrl.u32 %v1709_v1, 16  ;;  %v1710_v28 = vand.u32 65535, %v1709_v1 }
 0xabf   :  { %1660 = vadd.xlane.f32.xlu0 %v1657_v61  ;;  %1589 = vadd.xlane.f32.xlu1 %v1587_v60 }
 0xac0   :  { %v1713_v12 = vcvt.s32.f32 %v1711_v8  ;;  %v1712_v30 = vcvt.s32.f32 %v1710_v28 }
 0xac3   :  { %1602 = vadd.xlane.f32.xlu0 %v1600_v4  ;;  %1703 = vadd.xlane.f32.xlu1 %v1700_v6 }
 0xac7   :  { %1716 = vadd.xlane.f32.xlu0 %v1713_v12  ;;  %1645 = vadd.xlane.f32.xlu1 %v1643_v25 }
 0xacb   :  { %1658 = vadd.xlane.f32.xlu0 %v1656_v18  ;;  %1701 = vadd.xlane.f32.xlu1 %v1699_v19 }
 0xacf   :  { %1591 = vadd.xlane.f32.xlu0 %v1588_v23 }
 0xad3   :  { %1714 = vadd.xlane.f32.xlu0 %v1712_v30 }
 0xb36   :  { %v1551_v24 = vpop.xlane.xlu1 %1550  ;;  %v1549_v29 = vpop.xlane.xlu0 %1548 }
 0xb37   :  { %v1553_v41 = vcvt.f32.s32 %v1551_v24  ;;  %v1552_v27 = vcvt.f32.s32 %v1549_v29 }
 0xb39   :  { %v1554_v49 = vshll.u32 %v1553_v41, 16  ;;  %v6155_v41 = vld [vmem:[#allocation10 + $0x78] sm:$0xff]  }
 0xb3a   :  { %5741 = vmatpush3.bf16.msra.mxu0 %v6155_v41 }
 0xb3b   :  { %v1555_v57 = vadd.s32 %v1554_v49, %v1552_v27  ;;  %5742 = vmatprep.subr.bf16.mxu0 %v6612_v7  ;;  %v6161_v49 = vld [vmem:[#allocation10 + $0x58] sm:$0xff]   ;;  %v6165_v27 = vld [vmem:[#allocation10 + $0x48] sm:$0xff]  }
 0xb3d   :  { %vm1557_vm1 = vcmp.lt.s32.totalorder %v1555_v57, 2  ;;  %v6171_v57 = vld [vmem:[#allocation8 + $0xb4] ss:$8 sps:$4 sm:$0xff]  }
 0xb3e   :  { %vm7168_vm5 = vmand %vm1557_vm1, %vm7787_vm14  ;;  %vm7794_vm1 = vcmp.eq.s32.totalorder %v6924_v31, 3 }
 0xb40   :  { %v1536_v34 = vpop.xlane.xlu1 %1535  ;;  %v1538_v35 = vpop.xlane.xlu0 %1537 }
 0xb41   :  { %v1540_v42 = vcvt.f32.s32 %v1538_v35  ;;  %v1539_v54 = vcvt.f32.s32 %v1536_v34 }
 0xb43   :  { %v1541_v51 = vshll.u32 %v1540_v42, 16  ;;  %v6158_v42 = vld [vmem:[#allocation10 + $0x38] sm:$0xff]  }
 0xb44   :  { %v1648_v36 = vpop.xlane.xlu1 %1647  ;;  %v1605_v38 = vpop.xlane.xlu0 %1604  ;;  %5761 = vmatpush3.bf16.msra.mxu1 %v6158_v42 }
 0xb45   :  { %v1607_v44 = vcvt.f32.s32 %v1605_v38  ;;  %v1650_v43 = vcvt.f32.s32 %v1648_v36  ;;  %v1542_v59 = vadd.s32 %v1541_v51, %v1539_v54  ;;  %5762 = vmatprep.subr.bf16.mxu1 %v6612_v7  ;;  %v6166_v51 = vld [vmem:[#allocation10 + $0x18] sm:$0xff]  }
 0xb47   :  { %v1608_v37 = vshll.u32 %v1607_v44, 16  ;;  %v1651_v61 = vshll.u32 %v1650_v43, 16  ;;  %vm1556_vm2 = vcmp.lt.s32.totalorder %v1542_v59, 2  ;;  %v6156_v44 = vld [vmem:[#allocation10 + $0x70] sm:$0xff]   ;;  %v6172_v59 = vld [vmem:[#allocation10 + $0x8] sm:$0xff]  }
 0xb48   :  { %v1590_v39 = vpop.xlane.xlu1 %1589  ;;  %v1661_v40 = vpop.xlane.xlu0 %1660  ;;  %vm7174_vm10 = vmand %vm1556_vm2, %vm7787_vm14  ;;  %5743 = vmatpush3.bf16.msra.mxu0 %v6156_v44 }
 0xb49   :  { %v1663_v52 = vcvt.f32.s32 %v1661_v40  ;;  %v1593_v23 = vcvt.f32.s32 %v1590_v39  ;;  %5744 = vmatprep.subr.bf16.mxu0 %v6612_v7 }
 0xb4b   :  { %v1664_v60 = vshll.u32 %v1663_v52, 16 }
 0xb4c   :  { %v1704_v45 = vpop.xlane.xlu1 %1703  ;;  %v1603_v46 = vpop.xlane.xlu0 %1602 }
 0xb4d   :  { %v1606_v47 = vcvt.f32.s32 %v1603_v46  ;;  %v1706_v55 = vcvt.f32.s32 %v1704_v45  ;;  %v6157_v45 = vld [vmem:[#allocation10 + $0x68] sm:$0xff]  }
 0xb4e   :  { %v6162_v46 = vld [vmem:[#allocation10 + $0x28] sm:$0xff]   ;;  %5745 = vmatpush3.bf16.msra.mxu0 %v6157_v45 }
 0xb4f   :  { %v1609_v56 = vadd.s32 %v1608_v37, %v1606_v47  ;;  %v1707_v1 = vshll.u32 %v1706_v55, 16  ;;  %5746 = vmatprep.subr.bf16.mxu0 %v6612_v7  ;;  %v6164_v47 = vld [vmem:[#allocation10 + $0x20] sm:$0xff]   ;;  %v6163_v37 = vld [vmem:[#allocation10 + $0x50] sm:$0xff]  }
 0xb50   :  { %v1646_v50 = vpop.xlane.xlu1 %1645  ;;  %v1717_v53 = vpop.xlane.xlu0 %1716  ;;  %v6168_v55 = vld [vmem:[#allocation10 + $0x10] sm:$0xff]  }
 0xb51   :  { %v1649_v58 = vcvt.f32.s32 %v1646_v50  ;;  %vm1611_vm7 = vcmp.lt.s32.totalorder %v1609_v56, 2  ;;  %v1719_v18 = vcvt.f32.s32 %v1717_v53  ;;  %v6167_v50 = vld [vmem:[#allocation10 + $0x40] sm:$0xff]  }
 0xb52   :  { %vm7162_vm3 = vmand %vm1611_vm7, %vm7795_vm12 }
 0xb53   :  { %v1652_v8 = vadd.s32 %v1651_v61, %v1649_v58  ;;  %vm1620_vm0 = vmor %vm7168_vm5, %vm7162_vm3  ;;  %v1720_v24 = vshll.u32 %v1719_v18, 16  ;;  %v6176_v61 = vld [vmem:[#allocation10] sm:$0xff]  }
 0xb54   :  { %v1702_v63 = vpop.xlane.xlu1 %1701  ;;  %v1659_v0 = vpop.xlane.xlu0 %1658 }
 0xb55   :  { %v1705_v4 = vcvt.f32.s32 %v1702_v63  ;;  %v1662_v6 = vcvt.f32.s32 %v1659_v0  ;;  %vm1666_vm11 = vcmp.lt.s32.totalorder %v1652_v8, 2  ;;  %v1830_v0 = vpop.f32.mrf.mxu0 }
 0xb56   :  { %vm1673_vm14 = vmand %vm1666_vm11, %vm7793_vm13 }
 0xb57   :  { %v1708_v10 = vadd.s32 %v1707_v1, %v1705_v4  ;;  %v1665_v12 = vadd.s32 %v1664_v60, %v1662_v6  ;;  %v1967_v60 = vpop.f32.mrf.mxu1  ;;  %v1832_v6 = vpop.f32.mrf.mxu0 }
 0xb58   :  { %v1592_v15 = vpop.xlane.xlu0 %1591  ;;  %v5264_v4 = vmul.f32 -1.442695, %v1967_v60 }
 0xb59   :  { %vm1667_vm6 = vcmp.lt.s32.totalorder %v1665_v12, 2  ;;  %v1594_v19 = vcvt.f32.s32 %v1592_v15  ;;  %vm1722_vm7 = vcmp.lt.s32.totalorder %v1708_v10, 2  ;;  %v1969_v63 = vpop.f32.mrf.mxu1  ;;  %v1834_v10 = vpop.f32.mrf.mxu0  ;;  %v5253_v12 = vmul.f32 -1.442695, %v1830_v0 }
 0xb5a   :  { %vm1674_vm2 = vmand %vm1667_vm6, %vm7793_vm13  ;;  %v5254_v25 = vmul.f32 -1.442695, %v1834_v10 }
 0xb5b   :  { %v1595_v28 = vshll.u32 %v1594_v19, 16  ;;  %vm1729_vm15 = vmand %vm1722_vm7, %vm7794_vm1  ;;  %vm7807_vm7 = vcmask 31744   ;;  %v1971_v1 = vpop.f32.mrf.mxu1 }
 0xb5c   :  { %v1715_v30 = vpop.xlane.xlu0 %1714  ;;  %vm1676_vm8 = vmor %vm1620_vm0, %vm1674_vm2  ;;  %v5265_v8 = vmul.f32 -1.442695, %v1971_v1 }
 0xb5d   :  { %v1596_v29 = vadd.s32 %v1595_v28, %v1593_v23  ;;  %v1718_v34 = vcvt.f32.s32 %v1715_v30  ;;  %vm7808_vm2 = vmmov %vm7807_vm7 }
 0xb5f   :  { %vm1610_vm9 = vcmp.lt.s32.totalorder %v1596_v29, 2  ;;  %v1721_v35 = vadd.s32 %v1720_v24, %v1718_v34 }
 0xb60   :  { %vm1617_vm4 = vmand %vm1610_vm9, %vm7795_vm12 }
 0xb61   :  { %vm1723_vm3 = vcmp.lt.s32.totalorder %v1721_v35, 2  ;;  %vm1619_vm5 = vmor %vm7174_vm10, %vm1617_vm4  ;;  %vm7809_vm4 = vmmov 0  }
 0xb62   :  { %vm1675_vm6 = vmor %vm1619_vm5, %vm1673_vm14 }
 0xb63   :  { %vm1731_vm11 = vmor %vm1675_vm6, %vm1729_vm15 }
 0xb64   :  { %v1733_v36 = vsel %vm1731_vm11, %v7091_v11, 0.0  ;;  %vm1730_vm13 = vmand %vm1723_vm3, %vm7794_vm1  ;;  %v6160_v11 = vld [vmem:[#allocation10 + $0x30] sm:$0xff]  }
 0xb65   :  { %v1735_v38 = vsel %vm7807_vm7, %v1733_v36, 0.0  ;;  %vm1732_vm0 = vmor %vm1676_vm8, %vm1730_vm13  ;;  %5763 = vmatpush3.bf16.msra.mxu1 %v6160_v11  ;;  %vm7810_vm8 = vcmask 523264   ;;  %vm7815_vm13 = vcmask 64512  }
 0xb66   :  { %1736 = vadd.xlane.f32.xlu1 %v1735_v38  ;;  %v1734_v39 = vsel %vm1732_vm0, %v7089_v9, 0.0  ;;  %5764 = vmatprep.subr.bf16.mxu1 %v6612_v7  ;;  %v6159_v9 = vld [vmem:[#allocation10 + $0x60] sm:$0xff]   ;;  %vm7811_vm9 = vmmov %vm7810_vm8 }
 0xb67   :  { %v1738_v40 = vsel %vm7808_vm2, %v1734_v39, 0.0  ;;  %5747 = vmatpush3.bf16.msra.mxu0 %v6159_v9  ;;  %vm7812_vm15 = vmmov %vm7810_vm8 }
 0xb68   :  { %1739 = vadd.xlane.f32.xlu0 %v1738_v40  ;;  %5748 = vmatprep.subr.bf16.mxu0 %v6612_v7  ;;  %vm7813_vm14 = vmmov %vm7810_vm8 }
 0xb69   :  { %5765 = vmatpush3.bf16.msra.mxu1 %v6162_v46  ;;  %vm7814_vm10 = vmmov %vm7810_vm8 }
 0xb6a   :  { %5766 = vmatprep.subr.bf16.mxu1 %v6612_v7  ;;  %vm7816_vm3 = vmmov %vm7815_vm13 }
 0xb6b   :  { %5749 = vmatpush3.bf16.msra.mxu0 %v6161_v49  ;;  %vm7817_vm5 = vmmov %vm7816_vm3 }
 0xb6c   :  { %5750 = vmatprep.subr.bf16.mxu0 %v6612_v7  ;;  %vm7818_vm6 = vmmov %vm7816_vm3 }
 0xb6d   :  { %5767 = vmatpush3.bf16.msra.mxu1 %v6164_v47  ;;  %v6169_v47 = vld [vmem:[#allocation8 + $0xb0] ss:$8 sps:$4 sm:$0xff]   ;;  %vm7819_vm11 = vmmov %vm7816_vm3 }
 0xb6e   :  { %5768 = vmatprep.subr.bf16.mxu1 %v6612_v7  ;;  %vm7820_vm7 = vmmov %vm7816_vm3 }
 0xb6f   :  { %5751 = vmatpush3.bf16.msra.mxu0 %v6163_v37  ;;  %v6175_v37 = vld [vmem:[#allocation8 + $0xa4] ss:$8 sps:$4 sm:$0xff]   ;;  %vm7821_vm0 = vmmov %vm7816_vm3 }
 0xb70   :  { %5752 = vmatprep.subr.bf16.mxu0 %v6612_v7  ;;  %vm7822_vm2 = vmmov %vm7821_vm0 }
 0xb71   :  { %5769 = vmatpush3.bf16.msra.mxu1 %v6166_v51 }
 0xb72   :  { %5770 = vmatprep.subr.bf16.mxu1 %v6612_v7 }
 0xb73   :  { %5753 = vmatpush3.bf16.msra.mxu0 %v6165_v27  ;;  %v1836_v27 = vpop.f32.mrf.mxu0 }
 0xb74   :  { %5754 = vmatprep.subr.bf16.mxu0 %v6612_v7 }
 0xb75   :  { %5771 = vmatpush3.bf16.msra.mxu1 %v6168_v55 }
 0xb76   :  { %5772 = vmatprep.subr.bf16.mxu1 %v6612_v7 }
 0xb77   :  { %5755 = vmatpush3.bf16.msra.mxu0 %v6167_v50  ;;  %v6173_v50 = vld [vmem:[#allocation8 + $0xa0] ss:$8 sps:$4 sm:$0xff]  }
 0xb78   :  { %2255 = vmatprep.subr.bf16.mxu0 %v6171_v57 }
 0xb79   :  { %5773 = vmatpush3.bf16.msra.mxu1 %v6172_v59  ;;  %v6182_v59 = vld [vmem:[#allocation8 + $0x84] ss:$8 sps:$4 sm:$0xff]  }
 0xb7a   :  { %5774 = vmatprep.subr.bf16.mxu1 %v6612_v7 }
 0xb7d   :  { %5775 = vmatpush3.bf16.msra.mxu1 %v6176_v61  ;;  %v6180_v61 = vld [vmem:[#allocation8 + $0x80] ss:$8 sps:$4 sm:$0xff]  }
 0xb7e   :  { %5780 = vmatprep.subr.bf16.mxu1 %v6612_v7 }
 0xbef   :  { %v1737_v43 = vpop.xlane.xlu1 %1736 }
 0xbf0   :  { %6347 = vrcp.f32 %v1737_v43 }
 0xbf1   :  { %v1740_v52 = vpop.xlane.xlu0 %1739 }
 0xbf2   :  { %6349 = vrcp.f32 %v1740_v52 }
 0xbf3   :  { %6351 = vpow2.f32 %v5264_v4  ;;  %v6191_v4 = vld [vmem:[#allocation8 + $0xd4] ss:$8 sps:$4 sm:$0xff]  }
 0xbf4   :  { %6353 = vpow2.f32 %v5265_v8  ;;  %v6194_v8 = vld [vmem:[#allocation8 + $0xc4] ss:$8 sps:$4 sm:$0xff]  }
 0xbf5   :  { %6355 = vpow2.f32 %v5253_v12  ;;  %v6195_v12 = vld [vmem:[#allocation10 + $0xb8] sm:$0xff]  }
 0xbf6   :  { %6357 = vpow2.f32 %v5254_v25  ;;  %v6196_v25 = vld [vmem:[#allocation10 + $0xb0] sm:$0xff]  }
 0xbfd   :  { %v6348_v53 = vpop.eup %6347 }
 0xbfe   :  { %v1742_v54 = vmul.f32 %v6348_v53, %v1733_v36 }
 0xbff   :  { %v6350_v56 = vpop.eup %6349 }
 0xc00   :  { %1993 = vperm.xlu1 %6089, %v1742_v54   ;;  %v1744_v58 = vmul.f32 %v6350_v56, %v1734_v39  ;;  %v6352_v15 = vpop.eup %6351  ;;  %v1973_v39 = vpop.f32.mrf.mxu1 }
 0xc01   :  { %v6354_v17 = vpop.eup %6353  ;;  %v1982_v18 = vadd.f32 1.0, %v6352_v15  ;;  %v6197_v15 = vld [vmem:[#allocation10 + $0xa8] sm:$0xff]  }
 0xc02   :  { %1997 = vperm.xlu0 %6082, %v1744_v58   ;;  %v1983_v19 = vadd.f32 1.0, %v6354_v17  ;;  %v6356_v20 = vpop.eup %6355  ;;  %v6198_v17 = vld [vmem:[#allocation10 + $0xa0] sm:$0xff]  }
 0xc03   :  { %6359 = vrcp.f32 %v1982_v18  ;;  %v6358_v23 = vpop.eup %6357  ;;  %v1845_v28 = vadd.f32 1.0, %v6356_v20  ;;  %v6200_v18 = vld [vmem:[#allocation10 + $0xf8] sm:$0xff]   ;;  %v6202_v20 = vld [vmem:[#allocation10 + $0xf0] sm:$0xff]  }
 0xc04   :  { %6090 = vset.pattern.permute.xlu1 %v6626_v32  ;;  %6361 = vrcp.f32 %v1983_v19  ;;  %v1846_v30 = vadd.f32 1.0, %v6358_v23  ;;  %v6201_v19 = vld [vmem:[#allocation10 + $0x90] sm:$0xff]   ;;  %v6203_v23 = vld [vmem:[#allocation10 + $0x88] sm:$0xff]  }
 0xc05   :  { %1857 = vperm.xlu1 %6090, %v1742_v54   ;;  %6363 = vrcp.f32 %v1845_v28  ;;  %v6204_v28 = vld [vmem:[#allocation10 + $0xe8] sm:$0xff]  }
 0xc06   :  { %6092 = vset.pattern.permute.xlu0 %v6628_v13  ;;  %6365 = vrcp.f32 %v1846_v30  ;;  %v6205_v30 = vld [vmem:[#allocation10 + $0x80] sm:$0xff]  }
 0xc07   :  { %2307 = vperm.xlu0 %6092, %v1742_v54  }
 0xc09   :  { %1862 = vperm.xlu1 %6090, %v1744_v58  }
 0xc0b   :  { %6094 = vset.pattern.permute.xlu0 %v6629_v14 }
 0xc0c   :  { %2538 = vperm.xlu0 %6094, %v1744_v58  }
 0xc0d   :  { %6091 = vset.pattern.permute.xlu1 %v6628_v13 }
 0xc0e   :  { %2311 = vperm.xlu1 %6091, %v1744_v58   ;;  %v6177_v58 = vld [vmem:[#allocation8 + $0x90] ss:$8 sps:$4 sm:$0xff]  }
 0xc10   :  { %6110 = vset.pattern.permute.xlu0 %v6627_v3  ;;  %v6360_v24 = vpop.eup %6359 }
 0xc11   :  { %v6362_v29 = vpop.eup %6361  ;;  %v1988_v34 = vmul.f32 %v6360_v24, %v1967_v60  ;;  %v6185_v60 = vld [vmem:[#allocation8 + $0xf4] ss:$8 sps:$4 sm:$0xff]   ;;  %v6206_v24 = vld [vmem:[#allocation10 + $0xe0] sm:$0xff]  }
 0xc12   :  { %6093 = vset.pattern.permute.xlu1 %v6629_v14  ;;  %v1989_v35 = vmul.f32 %v6362_v29, %v1971_v1  ;;  %v6364_v38 = vpop.eup %6363  ;;  %v6186_v1 = vld [vmem:[#allocation8 + $0xe0] ss:$8 sps:$4 sm:$0xff]   ;;  %v6207_v29 = vld [vmem:[#allocation10 + $0xd8] sm:$0xff]  }
 0xc13   :  { %2534 = vperm.xlu1 %6093, %v1742_v54   ;;  %v1990_v36 = vmul.f32 %v1988_v34, %v1969_v63  ;;  %v6366_v41 = vpop.eup %6365  ;;  %v1851_v46 = vmul.f32 %v6364_v38, %v1830_v0  ;;  %v6179_v54 = vld [vmem:[#allocation8 + $0x94] ss:$8 sps:$4 sm:$0xff]   ;;  %v6183_v63 = vld [vmem:[#allocation8 + $0xf0] ss:$8 sps:$4 sm:$0xff]   ;;  %v6188_v0 = vld [vmem:[#allocation8 + $0xe4] ss:$8 sps:$4 sm:$0xff]  }
 0xc14   :  { %v1991_v42 = vmul.f32 %v1989_v35, %v1973_v39  ;;  %v1852_v9 = vmul.f32 %v6366_v41, %v1834_v10  ;;  %v6192_v10 = vld [vmem:[#allocation8 + $0xc0] ss:$8 sps:$4 sm:$0xff]   ;;  %v6208_v34 = vld [vmem:[#allocation10 + $0xd0] sm:$0xff]  }
 0xc15   :  { %v1853_v43 = vmul.f32 %v1851_v46, %v1832_v6  ;;  %v6189_v6 = vld [vmem:[#allocation8 + $0xd0] ss:$8 sps:$4 sm:$0xff]   ;;  %v6209_v35 = vld [vmem:[#allocation10 + $0xc8] sm:$0xff]  }
 0xc16   :  { %v1854_v52 = vmul.f32 %v1852_v9, %v1836_v27 }
 0xc17   :  { %6111 = vset.pattern.permute.xlu1 %v6627_v3 }
 0xc7b   :  { %v1994_v40 = vpop.permute.xlu1 %1993 }
 0xc7c   :  { %v2000_v44 = vmul.f32 %v1994_v40, %v1990_v36  ;;  %v6210_v36 = vld [vmem:[#allocation10 + $0xc0] sm:$0xff]  }
 0xc7d   :  { %v1998_v11 = vpop.permute.xlu0 %1997 }
 0xc7e   :  { %v2001_v45 = vmul.f32 %v1998_v11, %v1991_v42 }
 0xc80   :  { %v2002_v49 = vpack.c.bf16 %v2001_v45, %v2000_v44  ;;  %v1858_v51 = vpop.permute.xlu1 %1857 }
 0xc81   :  { %v1865_v55 = vmul.f32 %v1858_v51, %v1853_v43 }
 0xc82   :  { %5757 = vmatmul.mubr.bf16.vlgmr.msra.gmra.mxu0 %v2002_v49 }
 0xc83   :  { %2256 = vmatpush1.bf16.msra.mxu0 %v6169_v47  ;;  %2279 = vmatprep.mubr.bf16.mxu0 %v6626_v32 }
 0xc84   :  { %2257 = vmatprep.subr.bf16.mxu0 %v6175_v37  ;;  %v1863_v53 = vpop.permute.xlu1 %1862 }
 0xc85   :  { %v1866_v56 = vmul.f32 %v1863_v53, %v1854_v52 }
 0xc87   :  { %v1867_v57 = vpack.c.bf16 %v1866_v56, %v1865_v55  ;;  %2258 = vmatpush1.bf16.msra.mxu0 %v6173_v50 }
 0xc88   :  { %2259 = vmatprep.subr.bf16.mxu0 %v6179_v54 }
 0xc89   :  { %5777 = vmatmul.mubr.bf16.vlgmr.msra.gmra.mxu1 %v1867_v57 }
 0xc8a   :  { %5796 = vmatprep.mubr.msk.bf16.mxu1 %vm7809_vm4, %v6612_v7  ;;  %5781 = vmatpush3.bf16.msra.mxu1 %v6195_v12 }
 0xc8b   :  { %2260 = vmatpush1.bf16.msra.mxu0 %v6177_v58  ;;  %5782 = vmatprep.subr.bf16.mxu1 %v6612_v7 }
 0xc8c   :  { %2261 = vmatprep.subr.bf16.mxu0 %v6182_v59 }
 0xc8e   :  { %5783 = vmatpush3.bf16.msra.mxu1 %v6196_v25  ;;  %v2308_v25 = vpop.permute.xlu0 %2307 }
 0xc8f   :  { %2262 = vmatpush1.bf16.msra.mxu0 %v6180_v61  ;;  %5784 = vmatprep.subr.bf16.mxu1 %v6612_v7 }
 0xc90   :  { %2482 = vmatprep.subr.bf16.mxu0 %v6185_v60 }
 0xc92   :  { %5290 = vmatmul.mubr.msk.bf16.vlgmr.msra.gmra.mxu0 %vm7810_vm8, %v7070_v48  ;;  %5785 = vmatpush3.bf16.msra.mxu1 %v6197_v15  ;;  %v2312_v15 = vpop.permute.xlu1 %2311  ;;  %vm7823_vm8 = vmmov %vm7821_vm0 }
 0xc93   :  { %2483 = vmatpush1.bf16.msra.mxu0 %v6183_v63  ;;  %2506 = vmatprep.mubr.bf16.mxu0 %v6626_v32 }
 0xc94   :  { %2484 = vmatprep.subr.bf16.mxu0 %v6188_v0  ;;  %5786 = vmatprep.subr.bf16.mxu1 %v6612_v7 }
 0xc96   :  { %5787 = vmatpush3.bf16.msra.mxu1 %v6198_v17 }
 0xc97   :  { %2485 = vmatpush1.bf16.msra.mxu0 %v6186_v1  ;;  %5788 = vmatprep.subr.bf16.mxu1 %v6612_v7 }
 0xc98   :  { %2486 = vmatprep.subr.bf16.mxu0 %v6191_v4 }
 0xc9b   :  { %2487 = vmatpush1.bf16.msra.mxu0 %v6189_v6 }
 0xc9c   :  { %2488 = vmatprep.subr.bf16.mxu0 %v6194_v8 }
 0xc9f   :  { %2489 = vmatpush1.bf16.msra.mxu0 %v6192_v10 }
 0xca0   :  { %5800 = vmatprep.subr.bf16.mxu0 %v6612_v7 }
 0xca2   :  { %5309 = vmatmul.mubr.msk.bf16.vlgmr.msra.gmra.mxu0 %vm7811_vm9, %v7070_v48  ;;  %v6199_v48 = vld [vmem:[#allocation10 + $0x98] sm:$0xff]   ;;  %vm7824_vm9 = vmmov %vm7821_vm0 }
 0xca3   :  { %5816 = vmatprep.mubr.msk.bf16.mxu0 %vm7809_vm4, %v6612_v7  ;;  %5789 = vmatpush3.bf16.msra.mxu1 %v6199_v48 }
 0xca4   :  { %5801 = vmatpush3.bf16.msra.mxu0 %v6200_v18  ;;  %5790 = vmatprep.subr.bf16.mxu1 %v6612_v7 }
 0xca5   :  { %5802 = vmatprep.subr.bf16.mxu0 %v6612_v7 }
 0xca7   :  { %5791 = vmatpush3.bf16.msra.mxu1 %v6201_v19 }
 0xca8   :  { %5803 = vmatpush3.bf16.msra.mxu0 %v6202_v20  ;;  %5792 = vmatprep.subr.bf16.mxu1 %v6612_v7 }
 0xca9   :  { %5804 = vmatprep.subr.bf16.mxu0 %v6612_v7 }
 0xcab   :  { %5793 = vmatpush3.bf16.msra.mxu1 %v6203_v23 }
 0xcac   :  { %5805 = vmatpush3.bf16.msra.mxu0 %v6204_v28  ;;  %5794 = vmatprep.subr.bf16.mxu1 %v6612_v7 }
 0xcad   :  { %5806 = vmatprep.subr.bf16.mxu0 %v6612_v7 }
 0xcaf   :  { %5795 = vmatpush3.bf16.msra.mxu1 %v6205_v30 }
 0xcb0   :  { %5807 = vmatpush3.bf16.msra.mxu0 %v6206_v24  ;;  %5820 = vmatprep.subr.bf16.mxu1 %v6612_v7 }
 0xcb1   :  { %5808 = vmatprep.subr.bf16.mxu0 %v6612_v7 }
 0xcb4   :  { %5809 = vmatpush3.bf16.msra.mxu0 %v6207_v29 }
 0xcb5   :  { %5810 = vmatprep.subr.bf16.mxu0 %v6612_v7 }
 0xcb8   :  { %5811 = vmatpush3.bf16.msra.mxu0 %v6208_v34  ;;  %v2539_v34 = vpop.permute.xlu0 %2538 }
 0xcb9   :  { %5812 = vmatprep.subr.bf16.mxu0 %v6612_v7 }
 0xcbc   :  { %5813 = vmatpush3.bf16.msra.mxu0 %v6209_v35  ;;  %v2535_v35 = vpop.permute.xlu1 %2534 }
 0xcbd   :  { %5814 = vmatprep.subr.bf16.mxu0 %v6612_v7 }
 0xcc0   :  { %5815 = vmatpush3.bf16.msra.mxu0 %v6210_v36 }
 0xcc1   :  { %5844 = vmatprep.subr.bf16.mxu0 %v6612_v7 }
 0xd42   :  { %v2102_v38 = vpop.f32.mrf.mxu0 }
 0xd44   :  { %v5758_v39 = vpop.f32.mrf.mxu0 }
 0xd46   :  { %v2105_v40 = vpop.f32.mrf.mxu0 }
 0xd48   :  { %v5759_v41 = vpop.f32.mrf.mxu0 }
 0xd49   :  { %v2191_v42 = vpop.f32.mrf.mxu1 }
 0xd4a   :  { %v7249_v44 = vadd.f32 %v2191_v42, %v2102_v38 }
 0xd4b   :  { %v5778_v11 = vpop.f32.mrf.mxu1 }
 0xd4d   :  { %v2194_v45 = vpop.f32.mrf.mxu1 }
 0xd4e   :  { %v7251_v46 = vadd.f32 %v2194_v45, %v2105_v40 }
 0xd4f   :  { %v5779_v9 = vpop.f32.mrf.mxu1 }
 0xd52   :  { %v2281_v47 = vpop.f32.mrf.mxu0 }
 0xd53   :  { %v5291_v49 = vmul.f32 -1.442695, %v2281_v47 }
 0xd54   :  { %v2283_v51 = vpop.f32.mrf.mxu0 }
 0xd55   :  { %6367 = vpow2.f32 %v5291_v49 }
 0xd56   :  { %v2285_v37 = vpop.f32.mrf.mxu0 }
 0xd57   :  { %v5292_v27 = vmul.f32 -1.442695, %v2285_v37 }
 0xd58   :  { %v2287_v43 = vpop.f32.mrf.mxu0 }
 0xd59   :  { %6369 = vpow2.f32 %v5292_v27 }
 0xd62   :  { %v6368_v52 = vpop.eup %6367  ;;  %v2508_v50 = vpop.f32.mrf.mxu0 }
 0xd63   :  { %v2296_v53 = vadd.f32 1.0, %v6368_v52  ;;  %v5310_v54 = vmul.f32 -1.442695, %v2508_v50 }
 0xd64   :  { %v2510_v55 = vpop.f32.mrf.mxu0 }
 0xd65   :  { %6371 = vrcp.f32 %v2296_v53 }
 0xd66   :  { %v6370_v56 = vpop.eup %6369  ;;  %6373 = vpow2.f32 %v5310_v54  ;;  %v2512_v57 = vpop.f32.mrf.mxu0 }
 0xd67   :  { %v2297_v58 = vadd.f32 1.0, %v6370_v56  ;;  %v5311_v59 = vmul.f32 -1.442695, %v2512_v57  ;;  %v6213_v56 = vld [vmem:[#allocation2 + $0x28] sm:$0xff]  }
 0xd68   :  { %v2514_v24 = vpop.f32.mrf.mxu0 }
 0xd69   :  { %6375 = vrcp.f32 %v2297_v58 }
 0xd6a   :  { %6377 = vpow2.f32 %v5311_v59 }
 0xd72   :  { %v6372_v61 = vpop.eup %6371 }
 0xd73   :  { %v6374_v60 = vpop.eup %6373  ;;  %v2302_v63 = vmul.f32 %v6372_v61, %v2281_v47 }
 0xd74   :  { %v2523_v0 = vadd.f32 1.0, %v6374_v60 }
 0xd75   :  { %v2304_v6 = vmul.f32 %v2302_v63, %v2283_v51 }
 0xd76   :  { %v6376_v1 = vpop.eup %6375  ;;  %6379 = vrcp.f32 %v2523_v0 }
 0xd77   :  { %v6378_v4 = vpop.eup %6377  ;;  %v2303_v8 = vmul.f32 %v6376_v1, %v2285_v37  ;;  %v2314_v17 = vmul.f32 %v2308_v25, %v2304_v6 }
 0xd78   :  { %v2524_v10 = vadd.f32 1.0, %v6378_v4 }
 0xd79   :  { %v2305_v12 = vmul.f32 %v2303_v8, %v2287_v43 }
 0xd7a   :  { %6381 = vrcp.f32 %v2524_v10 }
 0xd7b   :  { %v2315_v48 = vmul.f32 %v2312_v15, %v2305_v12 }
 0xd7d   :  { %v2316_v18 = vpack.c.bf16 %v2315_v48, %v2314_v17 }
 0xd7f   :  { %5797 = vmatmul.mubr.bf16.vlgmr.msra.gmra.mxu1 %v2316_v18 }
 0xd80   :  { %5828 = vmatprep.mubr.msk.bf16.mxu1 %vm7809_vm4, %v6612_v7 }
 0xd83   :  { %v6380_v19 = vpop.eup %6379 }
 0xd84   :  { %v2529_v20 = vmul.f32 %v6380_v19, %v2508_v50 }
 0xd86   :  { %v2531_v28 = vmul.f32 %v2529_v20, %v2510_v55  ;;  %v6212_v55 = vld [vmem:[#allocation2 + $0x30] sm:$0xff]  }
 0xd87   :  { %v6382_v23 = vpop.eup %6381 }
 0xd88   :  { %v2530_v30 = vmul.f32 %v6382_v23, %v2512_v57  ;;  %v2541_v36 = vmul.f32 %v2535_v35, %v2531_v28  ;;  %v7332_v23 = vld [vmem:[%s7770_s2] sm:$0xff] }
 0xd8a   :  { %v2532_v29 = vmul.f32 %v2530_v30, %v2514_v24 }
 0xd8c   :  { %v2542_v38 = vmul.f32 %v2539_v34, %v2532_v29 }
 0xd8e   :  { %v2543_v39 = vpack.c.bf16 %v2542_v38, %v2541_v36 }
 0xd90   :  { %5817 = vmatmul.mubr.bf16.vlgmr.msra.gmra.mxu0 %v2543_v39 }
 0xd91   :  { %5846 = vmatprep.mubr.msk.bf16.mxu0 %vm7809_vm4, %v6612_v7 }
 0xe3f   :  { %v2416_v40 = vpop.f32.mrf.mxu1 }
 0xe40   :  { %v2423_v45 = vadd.f32 %v2416_v40, %v7249_v44 }
 0xe41   :  { %v5798_v41 = vpop.f32.mrf.mxu1 }
 0xe43   :  { %v2419_v42 = vpop.f32.mrf.mxu1 }
 0xe44   :  { %v2424_v51 = vadd.f32 %v2419_v42, %v7251_v46 }
 0xe45   :  { %v5799_v11 = vpop.f32.mrf.mxu1 }
 0xe50   :  { %v2643_v9 = vpop.f32.mrf.mxu0 }
 0xe51   :  { %v2650_v47 = vadd.f32 %v2643_v9, %v2423_v45 }
 0xe52   :  { %v5818_v49 = vpop.f32.mrf.mxu0 }
 0xe53   :  { %v7260_v37 = vadd.f32 %v2650_v47, %v7052_v62  ;;  %v6211_v62 = vld [vmem:[#allocation2 + $0x38] sm:$0xff]  }
 0xe54   :  { %v2646_v27 = vpop.f32.mrf.mxu0  ;;  %5821 = vmatpush3.bf16.msra.mxu1 %v6211_v62 }
 0xe55   :  { %v2651_v43 = vadd.f32 %v2646_v27, %v2424_v51  ;;  %v2654_v52 = vmul.f32 %v7260_v37, %v7260_v37  ;;  %5822 = vmatprep.subr.bf16.mxu1 %v6612_v7 }
 0xe56   :  { %v5819_v50 = vpop.f32.mrf.mxu0 }
 0xe57   :  { %v7265_v53 = vadd.f32 %v2651_v43, %v7059_v22  ;;  %v2656_v54 = vsel %vm7812_vm15, %v2654_v52, 0.0  ;;  %v6214_v22 = vld [vmem:[#allocation2 + $0x20] sm:$0xff]   ;;  %vm7825_vm15 = vcmask 130048  }
 0xe58   :  { %2657 = vadd.xlane.f32.xlu1 %v2656_v54  ;;  %5823 = vmatpush3.bf16.msra.mxu1 %v6212_v55 }
 0xe59   :  { %v2655_v44 = vmul.f32 %v7265_v53, %v7265_v53  ;;  %5824 = vmatprep.subr.bf16.mxu1 %v6612_v7 }
 0xe5b   :  { %v2659_v46 = vsel %vm7813_vm14, %v2655_v44, 0.0  ;;  %vm7826_vm14 = vmmov %vm7821_vm0 }
 0xe5c   :  { %2660 = vadd.xlane.f32.xlu0 %v2659_v46  ;;  %5825 = vmatpush3.bf16.msra.mxu1 %v6213_v56 }
 0xe5d   :  { %5826 = vmatprep.subr.bf16.mxu1 %v6612_v7 }
 0xe60   :  { %5827 = vmatpush3.bf16.msra.mxu1 %v6214_v22 }
 0xe61   :  { %5832 = vmatprep.subr.bf16.mxu1 %v6612_v7 }
 0xee1   :  { %v2658_v57 = vpop.xlane.xlu1 %2657 }
 0xee2   :  { %v2662_v58 = vmul.f32 0.015625, %v2658_v57 }
 0xee4   :  { %v2664_v59 = vadd.f32 1e-05, %v2662_v58 }
 0xee5   :  { %v2661_v61 = vpop.xlane.xlu0 %2660 }
 0xee6   :  { %v2663_v60 = vmul.f32 0.015625, %v2661_v61  ;;  %6383 = vrsqrt.f32 %v2664_v59 }
 0xee8   :  { %v2665_v63 = vadd.f32 1e-05, %v2663_v60 }
 0xeea   :  { %6385 = vrsqrt.f32 %v2665_v63 }
 0xef3   :  { %v6384_v0 = vpop.eup %6383 }
 0xef4   :  { %v2668_v4 = vmul.f32 %v6384_v0, %v7260_v37 }
 0xef7   :  { %v6386_v1 = vpop.eup %6385 }
 0xef8   :  { %v2669_v6 = vmul.f32 %v6386_v1, %v7265_v53 }
 0xefa   :  { %v2670_v8 = vpack.c.bf16 %v2669_v6, %v2668_v4 }
 0xefc   :  { %5829 = vmatmul.mubr.msk.bf16.vlgmr.msra.gmra.mxu1 %vm7814_vm10, %v2670_v8  ;;  %vm7827_vm10 = vmmov %vm7825_vm15 }
 0xefd   :  { %5834 = vmatprep.mubr.msk.bf16.mxu1 %vm7809_vm4, %v6612_v7 }
 0xfbc   :  { %v7280_v10 = vpop.f32.mrf.mxu1 }
 0xfbd   :  { %2754 = vrot.lane.b32.xlu0 %v7280_v10, %s6617_s20  ;;  %v7285_v12 = vsub.f32 0.0, %v7280_v10  ;;  %v2758_v60 = vmul.f32 %v7280_v10, %v6831_v2 }
 0xfbe   :  { %v5830_v25 = vpop.f32.mrf.mxu1 }
 0xfbf   :  { %2750 = vrot.lane.b32.xlu1 %v7285_v12, %s6615_s13 }
 0xfc0   :  { %v7289_v15 = vpop.f32.mrf.mxu1 }
 0xfc1   :  { %3008 = vrot.lane.b32.xlu0 %v7285_v12, %s6619_s24  ;;  %v7304_v48 = vsub.f32 0.0, %v7289_v15 }
 0xfc2   :  { %v5831_v17 = vpop.f32.mrf.mxu1 }
 0xfc3   :  { %2893 = vrot.lane.b32.xlu1 %v7280_v10, %s6618_s23  ;;  %v2897_v17 = vmul.f32 %v7280_v10, %v6835_v5 }
 0xfc5   :  { %3023 = vrot.lane.b32.xlu0 %v7285_v12, %s6616_s19 }
 0xfc7   :  { %2890 = vrot.lane.b32.xlu1 %v7285_v12, %s6614_s7 }
 0xfc9   :  { %3152 = vrot.lane.b32.xlu0 %v7285_v12, %s6617_s20 }
 0xfcb   :  { %3011 = vrot.lane.b32.xlu1 %v7280_v10, %s6615_s13 }
 0xfcd   :  { %3287 = vrot.lane.b32.xlu0 %v7304_v48, %s6615_s13 }
 0xfcf   :  { %3026 = vrot.lane.b32.xlu1 %v7280_v10, %s6614_s7 }
 0xfd1   :  { %3427 = vrot.lane.b32.xlu0 %v7304_v48, %s6614_s7 }
 0xfd3   :  { %3155 = vrot.lane.b32.xlu1 %v7280_v10, %s6616_s19 }
 0xfd5   :  { %3545 = vrot.lane.b32.xlu0 %v7304_v48, %s6619_s24 }
 0xfd7   :  { %3291 = vrot.lane.b32.xlu1 %v7289_v15, %s6617_s20 }
 0xfd9   :  { %3560 = vrot.lane.b32.xlu0 %v7304_v48, %s6616_s19 }
 0xfdb   :  { %3430 = vrot.lane.b32.xlu1 %v7289_v15, %s6618_s23 }
 0xfdf   :  { %3548 = vrot.lane.b32.xlu1 %v7289_v15, %s6615_s13 }
 0xfe3   :  { %3563 = vrot.lane.b32.xlu1 %v7289_v15, %s6614_s7  ;;  %s5202_s7 = sshll.u32 %s6630_s18, 4  ;;  %s5203_s7 = int_to_ptr.vmem [resolvable:$true] %s5202_s7 }
 0xfe4   :  { %s6575_s13 = scalar_lea.vmem %s5203_s7, 256  ;;  %p6580_p12 = scmp.lt.s32.totalorder %s5203_s7, %s5203_s7 }
 0xfe5   :  { %p6576_p11 = scmp.ne.s32.totalorder %s5203_s7, %s6575_s13  ;;  %p6581_p13 = scmp.lt.s32.totalorder %s6575_s13, %s6575_s13 }
 0xfe7   :  { %3689 = vrot.lane.b32.xlu1 %v7304_v48, %s6617_s20  ;;  %p6582_p0 = por %p6581_p13, %p6580_p12 }
 0xfe9   :  { %p6583_p1 = pnand %p6582_p0, %p6576_p11 }
0x102f   :  { %v2755_v18 = vpop.permute.xlu0 %2754 }
0x1031   :  { %v2751_v19 = vpop.permute.xlu1 %2750 }
0x1032   :  { %v2757_v20 = vsel %vm7815_vm13, %v2751_v19, %v2755_v18  ;;  %vm7828_vm13 = vmmov %vm7827_vm10 }
0x1033   :  { %v2759_v28 = vmul.f32 %v7332_v23, %v2757_v20  ;;  %v3009_v30 = vpop.permute.xlu0 %3008  ;;  %v3015_v20 = vmul.f32 %v7280_v10, %v6842_v16 }
0x1035   :  { %v2894_v24 = vpop.permute.xlu1 %2893  ;;  %2761 = vrot.lane.b32.xlu0 %v2759_v28, %s6604_s12 }
0x1037   :  { %v3024_v29 = vpop.permute.xlu0 %3023 }
0x1039   :  { %v2891_v34 = vpop.permute.xlu1 %2890  ;;  %3692 = vrot.lane.b32.xlu0 %v7289_v15, %s6616_s19 }
0x103a   :  { %v2896_v35 = vsel %vm7816_vm3, %v2891_v34, %v2894_v24  ;;  %vm7829_vm3 = vmmov %vm7827_vm10 }
0x103b   :  { %v2898_v36 = vmul.f32 %v7332_v23, %v2896_v35  ;;  %v3153_v38 = vpop.permute.xlu0 %3152 }
0x103d   :  { %v3012_v39 = vpop.permute.xlu1 %3011  ;;  %2900 = vrot.lane.b32.xlu1 %v2898_v36, %s6620_s26 }
0x103e   :  { %v3014_v40 = vsel %vm7817_vm5, %v3009_v30, %v3012_v39  ;;  %vm7830_vm5 = vmmov %vm7829_vm3 }
0x103f   :  { %v3016_v41 = vmul.f32 %v7332_v23, %v3014_v40  ;;  %v3288_v45 = vpop.permute.xlu0 %3287 }
0x1041   :  { %v3027_v42 = vpop.permute.xlu1 %3026  ;;  %3018 = vrot.lane.b32.xlu0 %v3016_v41, %s6621_s29 }
0x1042   :  { %v3029_v11 = vsel %vm7818_vm6, %v3024_v29, %v3027_v42  ;;  %v3030_v29 = vmul.f32 %v7280_v10, %v6850_v21  ;;  %v3295_v42 = vmul.f32 %v7289_v15, %v6831_v2  ;;  %vm7831_vm6 = vmmov %vm7829_vm3 }
0x1043   :  { %v3031_v9 = vmul.f32 %v7332_v23, %v3029_v11  ;;  %v3428_v27 = vpop.permute.xlu0 %3427 }
0x1045   :  { %v3156_v47 = vpop.permute.xlu1 %3155  ;;  %3033 = vrot.lane.b32.xlu1 %v3031_v9, %s6622_s6 }
0x1046   :  { %v3158_v49 = vsel %vm7819_vm11, %v3153_v38, %v3156_v47  ;;  %v3159_v38 = vmul.f32 %v7280_v10, %v6855_v26  ;;  %v3434_v47 = vmul.f32 %v7289_v15, %v6835_v5  ;;  %v3567_v5 = vmul.f32 %v7289_v15, %v6850_v21  ;;  %vm7832_vm11 = vmmov %vm7821_vm0 }
0x1047   :  { %v3160_v51 = vmul.f32 %v7332_v23, %v3158_v49  ;;  %v3546_v46 = vpop.permute.xlu0 %3545 }
0x1049   :  { %v3292_v43 = vpop.permute.xlu1 %3291  ;;  %3162 = vrot.lane.b32.xlu0 %v3160_v51, %s6623_s30 }
0x104a   :  { %v3294_v52 = vsel %vm7820_vm7, %v3288_v45, %v3292_v43  ;;  %v3552_v43 = vmul.f32 %v7289_v15, %v6842_v16  ;;  %vm7833_vm7 = vmmov %vm7829_vm3 }
0x104b   :  { %v3296_v50 = vmul.f32 %v7332_v23, %v3294_v52  ;;  %v3561_v57 = vpop.permute.xlu0 %3560 }
0x104d   :  { %v3431_v54 = vpop.permute.xlu1 %3430  ;;  %3298 = vrot.lane.b32.xlu1 %v3296_v50, %s6604_s12 }
0x104e   :  { %v3433_v44 = vsel %vm7821_vm0, %v3428_v27, %v3431_v54  ;;  %vm7834_vm0 = vmmov %vm7829_vm3 }
0x104f   :  { %v3435_v62 = vmul.f32 %v7332_v23, %v3433_v44 }
0x1051   :  { %v3549_v55 = vpop.permute.xlu1 %3548  ;;  %3437 = vrot.lane.b32.xlu0 %v3435_v62, %s6620_s26 }
0x1052   :  { %v3551_v56 = vsel %vm7822_vm2, %v3546_v46, %v3549_v55  ;;  %v3696_v55 = vmul.f32 %v7289_v15, %v6855_v26  ;;  %vm7835_vm2 = vmmov %vm7834_vm0 }
0x1053   :  { %v3553_v22 = vmul.f32 %v7332_v23, %v3551_v56 }
0x1055   :  { %v3564_v58 = vpop.permute.xlu1 %3563  ;;  %3555 = vrot.lane.b32.xlu1 %v3553_v22, %s6621_s29 }
0x1056   :  { %v3566_v59 = vsel %vm7823_vm8, %v3561_v57, %v3564_v58  ;;  %vm7836_vm8 = vmmov %vm7834_vm0 }
0x1057   :  { %v3568_v61 = vmul.f32 %v7332_v23, %v3566_v59  ;;  %v6474_v59 = vld [vmem:[%s7769_s1] sm:$0xff] }
0x1059   :  { %3570 = vrot.lane.b32.xlu0 %v3568_v61, %s6622_s6  ;;  %v3690_v4 = vpop.permute.xlu1 %3689  ;;  %v2774_v61 = vmul.f32 %v6474_v59, %v7280_v10 }
0x105d   :  { %2767 = vrot.lane.b32.xlu0 %v7285_v12, %s6618_s23 }
0x10a7   :  { %v2762_v63 = vpop.permute.xlu0 %2761 }
0x10a8   :  { %v2764_v0 = vadd.f32 %v2762_v63, %v2758_v60 }
0x10aa   :  { %v2765_v1 = vpack.c.bf16 %v2764_v0, %v2764_v0 }
0x10ab   :  { %v3693_v6 = vpop.permute.xlu0 %3692 }
0x10ac   :  { %v3695_v8 = vsel %vm7824_vm9, %v3690_v4, %v3693_v6  ;;  %2779 = vrot.lane.b32.xlu1 %v2765_v1, %s6604_s12  ;;  %vm7837_vm9 = vmmov %vm7834_vm0 }
0x10ad   :  { %v3697_v25 = vmul.f32 %v7332_v23, %v3695_v8 }
0x10af   :  { %v2901_v18 = vpop.permute.xlu1 %2900  ;;  %3699 = vrot.lane.b32.xlu0 %v3697_v25, %s6623_s30 }
0x10b0   :  { %v2903_v12 = vadd.f32 %v2901_v18, %v2897_v17  ;;  %2770 = vrot.lane.b32.xlu1 %v7280_v10, %s6609_s22 }
0x10b2   :  { %v2904_v19 = vpack.c.bf16 %v2903_v12, %v2903_v12 }
0x10b3   :  { %v3019_v28 = vpop.permute.xlu0 %3018 }
0x10b4   :  { %v3021_v30 = vadd.f32 %v3019_v28, %v3015_v20  ;;  %2906 = vrot.lane.b32.xlu1 %v2904_v19, %s6624_s10  ;;  %v3311_v20 = vmul.f32 %v6474_v59, %v7289_v15 }
0x10b6   :  { %v3022_v24 = vpack.c.bf16 %v3021_v30, %v3021_v30 }
0x10b7   :  { %v3034_v34 = vpop.permute.xlu1 %3033 }
0x10b8   :  { %v3036_v35 = vadd.f32 %v3034_v34, %v3030_v29  ;;  %3042 = vrot.lane.b32.xlu0 %v3022_v24, %s6623_s30 }
0x10ba   :  { %v3037_v36 = vpack.c.bf16 %v3036_v35, %v3036_v35 }
0x10bb   :  { %v3163_v39 = vpop.permute.xlu0 %3162 }
0x10bc   :  { %v3165_v40 = vadd.f32 %v3163_v39, %v3159_v38  ;;  %3039 = vrot.lane.b32.xlu1 %v3037_v36, %s6625_s11 }
0x10be   :  { %v3166_v41 = vpack.c.bf16 %v3165_v40, %v3165_v40 }
0x10bf   :  { %v3299_v11 = vpop.permute.xlu1 %3298 }
0x10c0   :  { %v3301_v45 = vadd.f32 %v3299_v11, %v3295_v42  ;;  %3168 = vrot.lane.b32.xlu0 %v3166_v41, %s6621_s29 }
0x10c2   :  { %v3302_v9 = vpack.c.bf16 %v3301_v45, %v3301_v45 }
0x10c3   :  { %v3438_v49 = vpop.permute.xlu0 %3437 }
0x10c4   :  { %v3440_v51 = vadd.f32 %v3438_v49, %v3434_v47  ;;  %3316 = vrot.lane.b32.xlu1 %v3302_v9, %s6604_s12  ;;  %3304 = vrot.lane.b32.xlu0 %v7304_v48, %s6618_s23 }
0x10c6   :  { %v3441_v27 = vpack.c.bf16 %v3440_v51, %v3440_v51 }
0x10c7   :  { %v3556_v2 = vpop.permute.xlu1 %3555 }
0x10c8   :  { %v3558_v52 = vadd.f32 %v3556_v2, %v3552_v43  ;;  %3307 = vrot.lane.b32.xlu1 %v7289_v15, %s6609_s22  ;;  %3443 = vrot.lane.b32.xlu0 %v3441_v27, %s6624_s10 }
0x10ca   :  { %v3559_v50 = vpack.c.bf16 %v3558_v52, %v3558_v52 }
0x10cb   :  { %v3571_v54 = vpop.permute.xlu0 %3570 }
0x10cc   :  { %v3573_v44 = vadd.f32 %v3571_v54, %v3567_v5  ;;  %3579 = vrot.lane.b32.xlu1 %v3559_v50, %s6623_s30 }
0x10ce   :  { %v3574_v48 = vpack.c.bf16 %v3573_v44, %v3573_v44 }
0x10cf   :  { %v2768_v46 = vpop.permute.xlu0 %2767 }
0x10d0   :  { %3576 = vrot.lane.b32.xlu0 %v3574_v48, %s6625_s11 }
0x111e   :  { %v2780_v16 = vpop.permute.xlu1 %2779 }
0x111f   :  { %v2785_v62 = vsel %vm7825_vm15, %v2780_v16, 0  ;;  %vm7838_vm15 = vmmov %vm7834_vm0 }
0x1120   :  { %5833 = vmatpush3.bf16.xpose.msra.mxu1 %v2785_v62  ;;  %5845 = vmatpush3.bf16.xpose.msra.mxu0 %v2785_v62 }
0x1121   :  { %v3700_v56 = vpop.permute.xlu0 %3699  ;;  %5856 = vmatprep.subr.bf16.mxu0 %v6612_v7  ;;  %5838 = vmatprep.subr.bf16.mxu1 %v6612_v7 }
0x1122   :  { %v3702_v21 = vadd.f32 %v3700_v56, %v3696_v55  ;;  %v2771_v22 = vpop.permute.xlu1 %2770 }
0x1123   :  { %v2773_v57 = vsel %vm7826_vm14, %v2768_v46, %v2771_v22  ;;  %vm7839_vm14 = vnez %v7798_v33 }
0x1124   :  { %v3703_v58 = vpack.c.bf16 %v3702_v21, %v3702_v21  ;;  %v2775_v60 = vmul.f32 %v7332_v23, %v2773_v57 }
0x1126   :  { %v2776_v63 = vadd.f32 %v2775_v60, %v2774_v61  ;;  %v2907_v26 = vpop.permute.xlu1 %2906  ;;  %3705 = vrot.lane.b32.xlu1 %v3703_v58, %s6621_s29 }
0x1127   :  { %5847 = vmatmul.mubr.msk.bf16.vlgmr.msra.gmra.mxu0 %vm7827_vm10, %v2907_v26  ;;  %vm7840_vm10 = vmmov %vm7832_vm11 }
0x1128   :  { %v2777_v0 = vpack.c.bf16 %v2776_v63, %v2776_v63  ;;  %5858 = vmatprep.mubr.msk.bf16.mxu0 %vm7809_vm4, %v6612_v7 }
0x112a   :  { %5835 = vmatmul.mubr.msk.bf16.vlgmr.msra.gmra.mxu1 %vm7828_vm13, %v2777_v0  ;;  %v3043_v1 = vpop.permute.xlu0 %3042  ;;  %vm7841_vm13 = vmmov %vm7840_vm10 }
0x112b   :  { %v3048_v4 = vsel %vm7829_vm3, %v3043_v1, 0  ;;  %5840 = vmatprep.mubr.msk.bf16.mxu1 %vm7809_vm4, %v6612_v7  ;;  %vm7842_vm3 = vmmov %vm7840_vm10 }
0x112c   :  { %5857 = vmatpush3.bf16.xpose.msra.mxu0 %v3048_v4 }
0x112d   :  { %5868 = vmatprep.subr.bf16.mxu0 %v6612_v7 }
0x112e   :  { %v3040_v6 = vpop.permute.xlu1 %3039 }
0x1132   :  { %v3169_v8 = vpop.permute.xlu0 %3168 }
0x1133   :  { %5859 = vmatmul.mubr.msk.bf16.vlgmr.msra.gmra.mxu0 %vm7830_vm5, %v3040_v6  ;;  %vm7843_vm5 = vmmov %vm7842_vm3 }
0x1134   :  { %5869 = vmatpush3.bf16.xpose.msra.mxu0 %v3048_v4  ;;  %5870 = vmatprep.mubr.msk.bf16.mxu0 %vm7809_vm4, %v6612_v7 }
0x1135   :  { %5880 = vmatprep.subr.bf16.mxu0 %v6612_v7 }
0x1136   :  { %v3317_v25 = vpop.permute.xlu1 %3316  ;;  %v3305_v17 = vpop.permute.xlu0 %3304 }
0x1137   :  { %v3322_v12 = vsel %vm7831_vm6, %v3317_v25, 0  ;;  %vm7844_vm6 = vmmov %vm7842_vm3 }
0x113a   :  { %v3308_v18 = vpop.permute.xlu1 %3307  ;;  %v3444_v34 = vpop.permute.xlu0 %3443 }
0x113b   :  { %v3310_v19 = vsel %vm7832_vm11, %v3305_v17, %v3308_v18  ;;  %5871 = vmatmul.mubr.msk.bf16.vlgmr.msra.gmra.mxu0 %vm7833_vm7, %v3169_v8  ;;  %vm7845_vm11 = vmmov %vm7842_vm3 }
0x113c   :  { %v3312_v28 = vmul.f32 %v7332_v23, %v3310_v19  ;;  %5881 = vmatpush3.bf16.xpose.msra.mxu0 %v3322_v12  ;;  %5882 = vmatprep.mubr.msk.bf16.mxu0 %vm7809_vm4, %v6612_v7  ;;  %vm7846_vm7 = vmmov %vm7842_vm3 }
0x113d   :  { %5892 = vmatprep.subr.bf16.mxu0 %v6612_v7 }
0x113e   :  { %v3313_v30 = vadd.f32 %v3312_v28, %v3311_v20  ;;  %v3580_v29 = vpop.permute.xlu1 %3579 }
0x113f   :  { %v3585_v23 = vsel %vm7835_vm2, %v3580_v29, 0 }
0x1140   :  { %v3314_v24 = vpack.c.bf16 %v3313_v30, %v3313_v30 }
0x1142   :  { %v3577_v35 = vpop.permute.xlu0 %3576 }
0x1143   :  { %5883 = vmatmul.mubr.msk.bf16.vlgmr.msra.gmra.mxu0 %vm7834_vm0, %v3314_v24  ;;  %vm7847_vm0 = vmmov %vm7842_vm3 }
0x1144   :  { %5893 = vmatpush3.bf16.xpose.msra.mxu0 %v3322_v12  ;;  %5894 = vmatprep.mubr.msk.bf16.mxu0 %vm7809_vm4, %v6612_v7  ;;  %vm7848_vm2 = vmmov %vm7847_vm0 }
0x1145   :  { %5904 = vmatprep.subr.bf16.mxu0 %v6612_v7 }
0x114b   :  { %5895 = vmatmul.mubr.msk.bf16.vlgmr.msra.gmra.mxu0 %vm7836_vm8, %v3444_v34  ;;  %vm7849_vm8 = vmmov %vm7847_vm0 }
0x114c   :  { %5905 = vmatpush3.bf16.xpose.msra.mxu0 %v3585_v23  ;;  %5906 = vmatprep.mubr.msk.bf16.mxu0 %vm7809_vm4, %v6612_v7 }
0x114d   :  { %5916 = vmatprep.subr.bf16.mxu0 %v6612_v7 }
0x1153   :  { %5907 = vmatmul.mubr.msk.bf16.vlgmr.msra.gmra.mxu0 %vm7837_vm9, %v3577_v35  ;;  %vm7850_vm9 = vmmov %vm7847_vm0 }
0x1154   :  { %5917 = vmatpush3.bf16.xpose.msra.mxu0 %v3585_v23  ;;  %5918 = vmatprep.mubr.msk.bf16.mxu0 %vm7809_vm4, %v6612_v7 }
0x1155   :  { %5928 = vmatprep.subr.bf16.mxu0 %v6612_v7 }
0x1198   :  { %v3706_v36 = vpop.permute.xlu1 %3705 }
0x1199   :  { %5919 = vmatmul.mubr.msk.bf16.vlgmr.msra.gmra.mxu0 %vm7838_vm15, %v3706_v36  ;;  %vm7851_vm15 = vmmov %vm7847_vm0 }
0x119a   :  { %5936 = vmatprep.mubr.msk.bf16.mxu0 %vm7809_vm4, %v6612_v7 }
0x11e7   :  { %v2945_v38 = vpop.f32.mrf.mxu0 }
0x11e8   :  { %v2951_v39 = vmul.f32 0.25, %v2945_v38 }
0x11e9   :  { %v5848_v40 = vpop.f32.mrf.mxu0 }
0x11ea   :  { %v7450_v41 = vsel %vm7839_vm14, %v2951_v39, -1e+30  ;;  %v2821_v42 = vpop.f32.mrf.mxu1 }
0x11eb   :  { %v2827_v11 = vmul.f32 0.25, %v2821_v42  ;;  %v2948_v45 = vpop.f32.mrf.mxu0  ;;  %v2953_v9 = vsel %vm7840_vm10, %v7450_v41, -inf  ;;  %vm7853_vm10 = vmmov %vm7847_vm0 }
0x11ec   :  { %v5836_v47 = vpop.f32.mrf.mxu1  ;;  %2954 = vmax.xlane.f32.xlu1 %v2953_v9 }
0x11ed   :  { %v2828_v49 = vsel %vm7839_vm14, %v2827_v11, -1e+30  ;;  %v5849_v51 = vpop.f32.mrf.mxu0 }
0x11ee   :  { %v2824_v27 = vpop.f32.mrf.mxu1  ;;  %v2829_v43 = vsel %vm7841_vm13, %v2828_v49, -inf  ;;  %vm7854_vm13 = vmmov %vm7847_vm0 }
0x11ef   :  { %2830 = vmax.xlane.f32.xlu0 %v2829_v43 }
0x11f0   :  { %v5837_v2 = vpop.f32.mrf.mxu1 }
0x11f3   :  { %v3084_v52 = vpop.f32.mrf.mxu0 }
0x11f4   :  { %v3090_v50 = vmul.f32 0.25, %v3084_v52 }
0x11f5   :  { %v5860_v5 = vpop.f32.mrf.mxu0 }
0x11f6   :  { %v3091_v54 = vsel %vm7839_vm14, %v3090_v50, -1e+30 }
0x11f7   :  { %v3087_v44 = vpop.f32.mrf.mxu0  ;;  %v3092_v48 = vsel %vm7842_vm3, %v3091_v54, -inf  ;;  %vm7855_vm3 = vmmov %vm7847_vm0 }
0x11f8   :  { %3093 = vmax.xlane.f32.xlu0 %v3092_v48 }
0x11f9   :  { %v5861_v46 = vpop.f32.mrf.mxu0 }
0x11fb   :  { %v3207_v16 = vpop.f32.mrf.mxu0 }
0x11fc   :  { %v3213_v62 = vmul.f32 0.25, %v3207_v16 }
0x11fd   :  { %v5872_v55 = vpop.f32.mrf.mxu0 }
0x11fe   :  { %v3214_v56 = vsel %vm7839_vm14, %v3213_v62, -1e+30 }
0x11ff   :  { %v3210_v21 = vpop.f32.mrf.mxu0  ;;  %v3215_v22 = vsel %vm7843_vm5, %v3214_v56, -inf  ;;  %vm7856_vm5 = vcmask 1043456  }
0x1200   :  { %3216 = vmax.xlane.f32.xlu0 %v3215_v22 }
0x1201   :  { %v5873_v57 = vpop.f32.mrf.mxu0 }
0x1202   :  { %v2766_v57 = vpack.c.bf16 %v7280_v10, %v7280_v10 }
0x1203   :  { %v3358_v58 = vpop.f32.mrf.mxu0 }
0x1204   :  { %v3364_v59 = vmul.f32 0.25, %v3358_v58 }
0x1205   :  { %v5884_v61 = vpop.f32.mrf.mxu0 }
0x1206   :  { %v3365_v60 = vsel %vm7839_vm14, %v3364_v59, -1e+30 }
0x1207   :  { %v3361_v63 = vpop.f32.mrf.mxu0  ;;  %v3366_v26 = vsel %vm7844_vm6, %v3365_v60, -inf  ;;  %vm7857_vm6 = vmmov %vm7847_vm0 }
0x1208   :  { %3367 = vmax.xlane.f32.xlu1 %v3366_v26 }
0x1209   :  { %v5885_v0 = vpop.f32.mrf.mxu0 }
0x120b   :  { %v3482_v1 = vpop.f32.mrf.mxu0 }
0x120c   :  { %v3488_v4 = vmul.f32 0.25, %v3482_v1 }
0x120d   :  { %v5896_v6 = vpop.f32.mrf.mxu0 }
0x120e   :  { %v7468_v8 = vsel %vm7839_vm14, %v3488_v4, -1e+30  ;;  %v3303_v6 = vpack.c.bf16 %v7289_v15, %v7289_v15 }
0x120f   :  { %v3485_v25 = vpop.f32.mrf.mxu0  ;;  %v3490_v17 = vsel %vm7845_vm11, %v7468_v8, -inf  ;;  %vm7858_vm11 = vmmov %vm7847_vm0 }
0x1210   :  { %3491 = vmax.xlane.f32.xlu0 %v3490_v17 }
0x1211   :  { %v5897_v18 = vpop.f32.mrf.mxu0 }
0x1213   :  { %v3621_v12 = vpop.f32.mrf.mxu0 }
0x1214   :  { %v3627_v19 = vmul.f32 0.25, %v3621_v12 }
0x1215   :  { %v5908_v20 = vpop.f32.mrf.mxu0 }
0x1216   :  { %v3628_v28 = vsel %vm7839_vm14, %v3627_v19, -1e+30 }
0x1217   :  { %v3624_v30 = vpop.f32.mrf.mxu0  ;;  %v3629_v24 = vsel %vm7846_vm7, %v3628_v28, -inf  ;;  %vm7859_vm7 = vmmov %vm7856_vm5 }
0x1218   :  { %3630 = vmax.xlane.f32.xlu1 %v3629_v24 }
0x1219   :  { %v5909_v29 = vpop.f32.mrf.mxu0 }
0x1259   :  { %v3744_v34 = vpop.f32.mrf.mxu0 }
0x125a   :  { %v3750_v23 = vmul.f32 0.25, %v3744_v34 }
0x125b   :  { %v5920_v35 = vpop.f32.mrf.mxu0 }
0x125c   :  { %v3751_v36 = vsel %vm7839_vm14, %v3750_v23, -1e+30  ;;  %vm7852_vm14 = vmmov %vm7847_vm0 }
0x125d   :  { %v3747_v38 = vpop.f32.mrf.mxu0  ;;  %v3752_v39 = vsel %vm7847_vm0, %v3751_v36, -inf }
0x125e   :  { %3753 = vmax.xlane.f32.xlu0 %v3752_v39 }
0x125f   :  { %v5921_v40 = vpop.f32.mrf.mxu0 }
0x1275   :  { %v2955_v42 = vpop.xlane.xlu1 %2954 }
0x1276   :  { %v2956_v11 = vsub.f32 %v7450_v41, %v2955_v42 }
0x1278   :  { %v2957_v45 = vmul.f32 1.442695, %v2956_v11  ;;  %v2831_v9 = vpop.xlane.xlu0 %2830 }
0x1279   :  { %v2832_v47 = vsub.f32 %v2828_v49, %v2831_v9 }
0x127a   :  { %6387 = vpow2.f32 %v2957_v45 }
0x127b   :  { %v2833_v51 = vmul.f32 1.442695, %v2832_v47 }
0x127d   :  { %6389 = vpow2.f32 %v2833_v51 }
0x1281   :  { %v3094_v27 = vpop.xlane.xlu0 %3093 }
0x1282   :  { %v3095_v43 = vsub.f32 %v3091_v54, %v3094_v27 }
0x1284   :  { %v3096_v2 = vmul.f32 1.442695, %v3095_v43 }
0x1286   :  { %6391 = vpow2.f32 %v3096_v2 }
0x1287   :  { %v7479_v33 = vpop.eup %6387 }
0x1288   :  { %v2959_v52 = vsel %vm7848_vm2, %v7479_v33, 0.0  ;;  %vm7860_vm2 = vmmov %vm7847_vm0 }
0x1289   :  { %v3217_v50 = vpop.xlane.xlu0 %3216  ;;  %2960 = vadd.xlane.f32.xlu0 %v2959_v52 }
0x128a   :  { %v6390_v5 = vpop.eup %6389  ;;  %v3218_v44 = vsub.f32 %v3214_v56, %v3217_v50 }
0x128b   :  { %v2835_v41 = vsel %vm7849_vm8, %v6390_v5, 0.0  ;;  %vm7861_vm8 = vmmov %vm7856_vm5 }
0x128c   :  { %v3219_v48 = vmul.f32 1.442695, %v3218_v44  ;;  %2836 = vadd.xlane.f32.xlu1 %v2835_v41 }
0x128e   :  { %6393 = vpow2.f32 %v3219_v48 }
0x1291   :  { %v3368_v49 = vpop.xlane.xlu1 %3367 }
0x1292   :  { %v3369_v46 = vsub.f32 %v3365_v60, %v3368_v49 }
0x1293   :  { %v7484_v16 = vpop.eup %6391 }
0x1294   :  { %v3370_v54 = vmul.f32 1.442695, %v3369_v46  ;;  %v3098_v62 = vsel %vm7850_vm9, %v7484_v16, 0.0  ;;  %vm7862_vm9 = vmmov %vm7847_vm0 }
0x1295   :  { %3099 = vadd.xlane.f32.xlu1 %v3098_v62 }
0x1296   :  { %6395 = vpow2.f32 %v3370_v54 }
0x1299   :  { %v3492_v60 = vpop.xlane.xlu0 %3491 }
0x129a   :  { %v3493_v63 = vsub.f32 %v7468_v8, %v3492_v60 }
0x129b   :  { %v7488_v55 = vpop.eup %6393 }
0x129c   :  { %v3221_v56 = vsel %vm7851_vm15, %v7488_v55, 0.0  ;;  %v3494_v26 = vmul.f32 1.442695, %v3493_v63  ;;  %vm7863_vm15 = vmmov %vm7847_vm0 }
0x129d   :  { %3222 = vadd.xlane.f32.xlu0 %v3221_v56 }
0x12a1   :  { %v3631_v58 = vpop.xlane.xlu1 %3630 }
0x12a2   :  { %v3632_v59 = vsub.f32 %v3628_v28, %v3631_v58 }
0x12a3   :  { %v7492_v21 = vpop.eup %6395 }
0x12a4   :  { %v3372_v22 = vsel %vm7852_vm14, %v7492_v21, 0.0  ;;  %v3633_v61 = vmul.f32 1.442695, %v3632_v59  ;;  %vm7864_vm14 = vmmov %vm7856_vm5 }
0x12a5   :  { %3373 = vadd.xlane.f32.xlu0 %v3372_v22 }
0x12a6   :  { %2842 = vrot.lane.b32.xlu1 %v2766_v57, %s6622_s6  ;;  %6397 = vpow2.f32 %v3633_v61 }
0x12a7   :  { %6399 = vpow2.f32 %v3494_v26 }
0x12b3   :  { %v7501_v0 = vpop.eup %6397 }
0x12b4   :  { %v3635_v1 = vsel %vm7853_vm10, %v7501_v0, 0.0  ;;  %v7505_v10 = vpop.eup %6399  ;;  %vm7865_vm10 = vmmov %vm7847_vm0 }
0x12b5   :  { %v3496_v4 = vsel %vm7854_vm13, %v7505_v10, 0.0  ;;  %vm7866_vm13 = vmmov %vm7847_vm0 }
0x12bb   :  { %3104 = vrot.lane.b32.xlu0 %v2766_v57, %s6620_s26 }
0x12ca   :  { %3636 = vadd.xlane.f32.xlu1 %v3635_v1 }
0x12da   :  { %3497 = vadd.xlane.f32.xlu0 %v3496_v4 }
0x12db   :  { %3379 = vrot.lane.b32.xlu1 %v3303_v6, %s6622_s6 }
0x12e7   :  { %v3754_v8 = vpop.xlane.xlu0 %3753 }
0x12e8   :  { %v3755_v25 = vsub.f32 %v3751_v36, %v3754_v8 }
0x12ea   :  { %v3756_v17 = vmul.f32 1.442695, %v3755_v25 }
0x12ec   :  { %6401 = vpow2.f32 %v3756_v17 }
0x12f9   :  { %v7512_v18 = vpop.eup %6401 }
0x12fa   :  { %v3758_v12 = vsel %vm7855_vm3, %v7512_v18, 0.0  ;;  %vm7867_vm3 = vcmask 130048  }
0x12fb   :  { %3759 = vadd.xlane.f32.xlu0 %v3758_v12 }
0x1311   :  { %3641 = vrot.lane.b32.xlu0 %v3303_v6, %s6620_s26 }
0x1312   :  { %v2961_v20 = vpop.xlane.xlu0 %2960 }
0x1315   :  { %v2837_v19 = vpop.xlane.xlu1 %2836 }
0x1316   :  { %6403 = vrcp.f32 %v2837_v19 }
0x1317   :  { %6405 = vrcp.f32 %v2961_v20 }
0x131e   :  { %v3100_v15 = vpop.xlane.xlu1 %3099 }
0x131f   :  { %6407 = vrcp.f32 %v3100_v15 }
0x1322   :  { %v2843_v28 = vpop.permute.xlu1 %2842 }
0x1323   :  { %v6404_v30 = vpop.eup %6403  ;;  %v2848_v24 = vsel %vm7856_vm5, %v2843_v28, 0  ;;  %vm7868_vm5 = vmmov %vm7867_vm3 }
0x1324   :  { %5839 = vmatpush3.bf16.msra.mxu1 %v2848_v24  ;;  %v2839_v29 = vmul.f32 %v6404_v30, %v6390_v5  ;;  %v6406_v23 = vpop.eup %6405 }
0x1325   :  { %5850 = vmatprep.subr.bf16.mxu1 %v6612_v7  ;;  %v2963_v36 = vmul.f32 %v6406_v23, %v7479_v33 }
0x1326   :  { %v2840_v34 = vpack.c.bf16 %v2839_v29, %v2839_v29  ;;  %v3223_v35 = vpop.xlane.xlu0 %3222 }
0x1327   :  { %6409 = vrcp.f32 %v3223_v35  ;;  %v2964_v39 = vpack.c.bf16 %v2963_v36, %v2963_v36  ;;  %v6215_v35 = vld [vmem:[#allocation5 + $0x38] sm:$0xff]   ;;  %v6216_v36 = vld [vmem:[#allocation5 + $0x30] sm:$0xff]  }
0x1328   :  { %5841 = vmatmul.mubr.msk.bf16.vlgmr.msra.gmra.mxu1 %vm7857_vm6, %v2840_v34  ;;  %5929 = vmatpush3.bf16.msra.mxu0 %v6215_v35  ;;  %vm7869_vm6 = vcmask 261120  }
0x1329   :  { %5851 = vmatpush3.bf16.msra.mxu1 %v2848_v24  ;;  %5852 = vmatprep.mubr.msk.bf16.mxu1 %vm7809_vm4, %v6612_v7 }
0x132a   :  { %5862 = vmatprep.subr.bf16.mxu1 %v6612_v7  ;;  %5930 = vmatprep.subr.bf16.mxu0 %v6612_v7 }
0x132c   :  { %v6408_v40 = vpop.eup %6407  ;;  %5931 = vmatpush3.bf16.msra.mxu0 %v6216_v36 }
0x132d   :  { %v3102_v11 = vmul.f32 %v6408_v40, %v7484_v16  ;;  %5932 = vmatprep.subr.bf16.mxu0 %v6612_v7 }
0x132e   :  { %v3374_v38 = vpop.xlane.xlu0 %3373 }
0x132f   :  { %v3103_v9 = vpack.c.bf16 %v3102_v11, %v3102_v11  ;;  %6411 = vrcp.f32 %v3374_v38  ;;  %v6217_v38 = vld [vmem:[#allocation5 + $0x28] sm:$0xff]  }
0x1330   :  { %5853 = vmatmul.mubr.msk.bf16.vlgmr.msra.gmra.mxu1 %vm7858_vm11, %v2964_v39  ;;  %5933 = vmatpush3.bf16.msra.mxu0 %v6217_v38  ;;  %vm7870_vm11 = vmmov %vm7869_vm6 }
0x1331   :  { %5864 = vmatprep.mubr.msk.bf16.mxu1 %vm7809_vm4, %v6612_v7  ;;  %5934 = vmatprep.subr.bf16.mxu0 %v6612_v7 }
0x1332   :  { %v3105_v42 = vpop.permute.xlu0 %3104 }
0x1333   :  { %v3110_v45 = vsel %vm7859_vm7, %v3105_v42, 0  ;;  %v6218_v42 = vld [vmem:[#allocation5 + $0x20] sm:$0xff]   ;;  %vm7871_vm7 = vcmask 392192  }
0x1334   :  { %5863 = vmatpush3.bf16.msra.mxu1 %v3110_v45  ;;  %v6410_v47 = vpop.eup %6409  ;;  %5935 = vmatpush3.bf16.msra.mxu0 %v6218_v42 }
0x1335   :  { %5874 = vmatprep.subr.bf16.mxu1 %v6612_v7  ;;  %v3225_v51 = vmul.f32 %v6410_v47, %v7488_v55 }
0x1337   :  { %v3226_v27 = vpack.c.bf16 %v3225_v51, %v3225_v51 }
0x1338   :  { %5865 = vmatmul.mubr.msk.bf16.vlgmr.msra.gmra.mxu1 %vm7847_vm0, %v3103_v9  ;;  %vm7872_vm0 = vmmov %vm7871_vm7 }
0x1339   :  { %5875 = vmatpush3.bf16.msra.mxu1 %v3110_v45  ;;  %5876 = vmatprep.mubr.msk.bf16.mxu1 %vm7809_vm4, %v6612_v7 }
0x133a   :  { %5886 = vmatprep.subr.bf16.mxu1 %v6612_v7 }
0x133c   :  { %v6412_v43 = vpop.eup %6411 }
0x133d   :  { %v3376_v33 = vmul.f32 %v6412_v43, %v7492_v21 }
0x133f   :  { %v3377_v5 = vpack.c.bf16 %v3376_v33, %v3376_v33 }
0x1340   :  { %5877 = vmatmul.mubr.msk.bf16.vlgmr.msra.gmra.mxu1 %vm7860_vm2, %v3226_v27  ;;  %vm7873_vm2 = vcmask 523264  }
0x1341   :  { %5888 = vmatprep.mubr.msk.bf16.mxu1 %vm7809_vm4, %v6612_v7 }
0x1353   :  { %v3637_v2 = vpop.xlane.xlu1 %3636 }
0x1357   :  { %v3380_v52 = vpop.permute.xlu1 %3379 }
0x1358   :  { %v3385_v50 = vsel %vm7861_vm8, %v3380_v52, 0  ;;  %vm7874_vm8 = vmmov %vm7873_vm2 }
0x1359   :  { %5887 = vmatpush3.bf16.msra.mxu1 %v3385_v50 }
0x135a   :  { %5898 = vmatprep.subr.bf16.mxu1 %v6612_v7 }
0x135c   :  { %5889 = vmatmul.mubr.msk.bf16.vlgmr.msra.gmra.mxu1 %vm7862_vm9, %v3377_v5  ;;  %vm7875_vm9 = vmmov %vm7873_vm2 }
0x135d   :  { %5899 = vmatpush3.bf16.msra.mxu1 %v3385_v50  ;;  %5900 = vmatprep.mubr.msk.bf16.mxu1 %vm7809_vm4, %v6612_v7 }
0x135e   :  { %5910 = vmatprep.subr.bf16.mxu1 %v6612_v7 }
0x1363   :  { %v3498_v44 = vpop.xlane.xlu0 %3497 }
0x1364   :  { %6413 = vrcp.f32 %v3498_v44 }
0x1365   :  { %6415 = vrcp.f32 %v3637_v2 }
0x1371   :  { %v6414_v41 = vpop.eup %6413 }
0x1372   :  { %v3500_v48 = vmul.f32 %v6414_v41, %v7505_v10  ;;  %v6416_v46 = vpop.eup %6415 }
0x1373   :  { %v3639_v54 = vmul.f32 %v6416_v46, %v7501_v0 }
0x1374   :  { %v3501_v49 = vpack.c.bf16 %v3500_v48, %v3500_v48 }
0x1375   :  { %v3640_v56 = vpack.c.bf16 %v3639_v54, %v3639_v54 }
0x1376   :  { %5901 = vmatmul.mubr.msk.bf16.vlgmr.msra.gmra.mxu1 %vm7863_vm15, %v3501_v49  ;;  %vm7876_vm15 = vmmov %vm7873_vm2 }
0x1377   :  { %5912 = vmatprep.mubr.msk.bf16.mxu1 %vm7809_vm4, %v6612_v7 }
0x1384   :  { %v3760_v16 = vpop.xlane.xlu0 %3759 }
0x1385   :  { %6417 = vrcp.f32 %v3760_v16 }
0x1388   :  { %v3642_v62 = vpop.permute.xlu0 %3641 }
0x1389   :  { %v3647_v55 = vsel %vm7864_vm14, %v3642_v62, 0  ;;  %vm7877_vm14 = vmmov %vm7873_vm2 }
0x138a   :  { %5911 = vmatpush3.bf16.msra.mxu1 %v3647_v55 }
0x138b   :  { %5922 = vmatprep.subr.bf16.mxu1 %v6612_v7 }
0x138d   :  { %5913 = vmatmul.mubr.msk.bf16.vlgmr.msra.gmra.mxu1 %vm7865_vm10, %v3640_v56  ;;  %vm7878_vm10 = vmmov %vm7873_vm2 }
0x138e   :  { %5923 = vmatpush3.bf16.msra.mxu1 %v3647_v55  ;;  %5924 = vmatprep.mubr.msk.bf16.mxu1 %vm7809_vm4, %v6612_v7 }
0x1392   :  { %v6418_v21 = vpop.eup %6417 }
0x1393   :  { %v3762_v22 = vmul.f32 %v6418_v21, %v7512_v18 }
0x1395   :  { %v3763_v57 = vpack.c.bf16 %v3762_v22, %v3762_v22 }
0x1397   :  { %5925 = vmatmul.mubr.msk.bf16.vlgmr.msra.gmra.mxu1 %vm7866_vm13, %v3763_v57  ;;  %vm7879_vm13 = vmmov %vm7873_vm2 }
0x13e8   :  { %v2884_v58 = vpop.f32.mrf.mxu1 }
0x13ea   :  { %v5842_v59 = vpop.f32.mrf.mxu1 }
0x13ec   :  { %v2887_v61 = vpop.f32.mrf.mxu1 }
0x13ee   :  { %v5843_v60 = vpop.f32.mrf.mxu1 }
0x13f0   :  { %v3002_v63 = vpop.f32.mrf.mxu1 }
0x13f2   :  { %v5854_v26 = vpop.f32.mrf.mxu1 }
0x13f4   :  { %v3005_v0 = vpop.f32.mrf.mxu1 }
0x13f6   :  { %v5855_v1 = vpop.f32.mrf.mxu1 }
0x13f8   :  { %v3146_v10 = vpop.f32.mrf.mxu1 }
0x13fa   :  { %v5866_v4 = vpop.f32.mrf.mxu1 }
0x13fb   :  { %v3926_v4 = vld [vmem:[#allocation7 + $0x70] sm:$0xff] }
0x13fc   :  { %v3149_v6 = vpop.f32.mrf.mxu1 }
0x13fd   :  { %v6219_v6 = vld [vmem:[#allocation8 + $0x130] ss:$8 sps:$4 sm:$0xff]  }
0x13fe   :  { %v5867_v8 = vpop.f32.mrf.mxu1 }
0x13ff   :  { %v6221_v8 = vld [vmem:[#allocation8 + $0x134] ss:$8 sps:$4 sm:$0xff]  }
0x1400   :  { %v3264_v25 = vpop.f32.mrf.mxu1  ;;  %4319 = vmatprep.subr.bf16.mxu0 %v6221_v8 }
0x1402   :  { %v5878_v17 = vpop.f32.mrf.mxu1 }
0x1403   :  { %v3924_v17 = vld [vmem:[#allocation7 + $0x60] sm:$0xff] }
0x1404   :  { %v3267_v12 = vpop.f32.mrf.mxu1 }
0x1405   :  { %v6222_v12 = vld [vmem:[#allocation8 + $0x120] ss:$8 sps:$4 sm:$0xff]  }
0x1406   :  { %v5879_v19 = vpop.f32.mrf.mxu1 }
0x1407   :  { %v6227_v19 = vld [vmem:[#allocation8 + $0x114] ss:$8 sps:$4 sm:$0xff]  }
0x141c   :  { %v3421_v18 = vpop.f32.mrf.mxu1 }
0x141e   :  { %v5890_v20 = vpop.f32.mrf.mxu1 }
0x141f   :  { %v3922_v20 = vld [vmem:[#allocation7 + $0x50] sm:$0xff] }
0x1420   :  { %v3424_v15 = vpop.f32.mrf.mxu1 }
0x1421   :  { %v6225_v15 = vld [vmem:[#allocation8 + $0x110] ss:$8 sps:$4 sm:$0xff]  }
0x1422   :  { %v5891_v28 = vpop.f32.mrf.mxu1 }
0x1423   :  { %v3921_v28 = vld [vmem:[#allocation7 + $0x48] sm:$0xff] }
0x1436   :  { %v3539_v30 = vpop.f32.mrf.mxu1 }
0x1437   :  { %v6095_v24 = vpack.i.bf16 %v3539_v30, %v3002_v63  ;;  %v3920_v30 = vld [vmem:[#allocation7 + $0x40] sm:$0xff] }
0x1438   :  { %v5902_v29 = vpop.f32.mrf.mxu1 }
0x1439   :  { %6096 = vrot.lane.b32.xlu1 %v6095_v24, %s6620_s26  ;;  %v6230_v24 = vld [vmem:[#allocation8 + $0x104] ss:$8 sps:$4 sm:$0xff]   ;;  %v6228_v29 = vld [vmem:[#allocation8 + $0x100] ss:$8 sps:$4 sm:$0xff]  }
0x143a   :  { %v3542_v34 = vpop.f32.mrf.mxu1 }
0x143b   :  { %v6233_v34 = vld [vmem:[#allocation8 + $0x174] ss:$8 sps:$4 sm:$0xff]  }
0x143c   :  { %v5903_v23 = vpop.f32.mrf.mxu1 }
0x144d   :  { %v3683_v39 = vpop.f32.mrf.mxu1 }
0x144e   :  { %v6100_v40 = vpack.i.bf16 %v3683_v39, %v3146_v10 }
0x144f   :  { %v5914_v11 = vpop.f32.mrf.mxu1 }
0x1450   :  { %6101 = vrot.lane.b32.xlu1 %v6100_v40, %s6622_s6 }
0x1451   :  { %v3686_v45 = vpop.f32.mrf.mxu1 }
0x1453   :  { %v5915_v9 = vpop.f32.mrf.mxu1 }
0x1454   :  { %v6231_v9 = vld [vmem:[#allocation8 + $0x170] ss:$8 sps:$4 sm:$0xff]  }
0x1457   :  { %v3801_v47 = vpop.f32.mrf.mxu1 }
0x1458   :  { %v6105_v51 = vpack.i.bf16 %v3801_v47, %v3264_v25  ;;  %v3925_v25 = vld [vmem:[#allocation7 + $0x68] sm:$0xff] }
0x1459   :  { %v5926_v27 = vpop.f32.mrf.mxu1 }
0x145a   :  { %6106 = vrot.lane.b32.xlu1 %v6105_v51, %s6623_s30  ;;  %v6236_v51 = vld [vmem:[#allocation8 + $0x164] ss:$8 sps:$4 sm:$0xff]  }
0x145b   :  { %v3804_v43 = vpop.f32.mrf.mxu1 }
0x145c   :  { %v6234_v43 = vld [vmem:[#allocation8 + $0x160] ss:$8 sps:$4 sm:$0xff]  }
0x145d   :  { %v5927_v2 = vpop.f32.mrf.mxu1 }
0x145e   :  { %v6239_v2 = vld [vmem:[#allocation8 + $0x154] ss:$8 sps:$4 sm:$0xff]  }
0x14ab   :  { %v6097_v33 = vpop.permute.xlu1 %6096 }
0x14ac   :  { %v6099_v50 = vunpack.i.h.bf16 %v6097_v33  ;;  %v6098_v5 = vunpack.i.l.bf16 %v6097_v33  ;;  %v6237_v33 = vld [vmem:[#allocation8 + $0x150] ss:$8 sps:$4 sm:$0xff]  }
0x14ae   :  { %v3819_v49 = vsel %vm7867_vm3, %v3421_v18, %v6099_v50  ;;  %v3282_v46 = vsel %vm7868_vm5, %v2884_v58, %v6098_v5  ;;  %v3923_v18 = vld [vmem:[#allocation7 + $0x58] sm:$0xff]  ;;  %v6240_v50 = vld [vmem:[#allocation8 + $0x140] ss:$8 sps:$4 sm:$0xff]   ;;  %vm7880_vm3 = vcmask 31744  }
0x14af   :  { %vm7881_vm5 = vmmov %vm7880_vm3 }
0x14c2   :  { %v6102_v52 = vpop.permute.xlu1 %6101 }
0x14c3   :  { %v6104_v44 = vunpack.i.h.bf16 %v6102_v52  ;;  %v6103_v41 = vunpack.i.l.bf16 %v6102_v52  ;;  %v6242_v52 = vld [vmem:[#allocation8 + $0x144] ss:$8 sps:$4 sm:$0xff]  }
0x14c5   :  { %v3820_v62 = vsel %vm7869_vm6, %v3819_v49, %v6104_v44  ;;  %v3283_v55 = vsel %vm7870_vm11, %v3282_v46, %v6103_v41  ;;  %vm7882_vm6 = vmmov %vm7880_vm3 }
0x14c6   :  { %vm7883_vm11 = vmmov %vm7880_vm3 }
0x14cc   :  { %v6107_v48 = vpop.permute.xlu1 %6106 }
0x14cd   :  { %v6109_v16 = vunpack.i.h.bf16 %v6107_v48  ;;  %v6108_v54 = vunpack.i.l.bf16 %v6107_v48 }
0x14cf   :  { %v3821_v56 = vsel %vm7871_vm7, %v3820_v62, %v6109_v16  ;;  %v3284_v21 = vsel %vm7872_vm0, %v3283_v55, %v6108_v54 }
0x14d0   :  { %v3822_v22 = vpack.c.bf16 %v3821_v56, %v3284_v21 }
0x14d2   :  { %5937 = vmatmul.mubr.msk.bf16.vlgmr.msra.gmra.mxu0 %vm7873_vm2, %v3822_v22 }
0x14d3   :  { %4343 = vmatprep.mubr.bf16.mxu0 %v6626_v32  ;;  %4320 = vmatpush1.bf16.msra.mxu0 %v6219_v6 }
0x1592   :  { %v3893_v57 = vpop.f32.mrf.mxu0 }
0x1593   :  { %v7572_v59 = vadd.f32 %v3893_v57, %v7260_v37  ;;  %v3927_v37 = vld [vmem:[#allocation7 + $0x78] sm:$0xff] }
0x1594   :  { %v5938_v58 = vpop.f32.mrf.mxu0  ;;  %5940 = vmatprep.subr.mxu1 %v3927_v37 }
0x1595   :  { %v3902_v61 = vmul.f32 %v7572_v59, %v7572_v59  ;;  %5941 = vmatpush3.msra.mxu1 %v3927_v37 }
0x1596   :  { %v3896_v60 = vpop.f32.mrf.mxu0  ;;  %5942 = vmatprep.subr.mxu1 %v3926_v4 }
0x1597   :  { %v7577_v63 = vadd.f32 %v3896_v60, %v7265_v53  ;;  %v3904_v26 = vsel %vm7874_vm8, %v3902_v61, 0.0  ;;  %v6224_v53 = vld [vmem:[#allocation8 + $0x124] ss:$8 sps:$4 sm:$0xff]   ;;  %5943 = vmatpush3.msra.mxu1 %v3926_v4 }
0x1598   :  { %3905 = vadd.xlane.f32.xlu1 %v3904_v26  ;;  %v5939_v0 = vpop.f32.mrf.mxu0  ;;  %5944 = vmatprep.subr.mxu1 %v3925_v25 }
0x1599   :  { %v3903_v1 = vmul.f32 %v7577_v63, %v7577_v63  ;;  %4321 = vmatprep.subr.bf16.mxu0 %v6224_v53  ;;  %5945 = vmatpush3.msra.mxu1 %v3925_v25 }
0x159a   :  { %5946 = vmatprep.subr.mxu1 %v3924_v17  ;;  %4322 = vmatpush1.bf16.msra.mxu0 %v6222_v12 }
0x159b   :  { %v3907_v10 = vsel %vm7875_vm9, %v3903_v1, 0.0  ;;  %5947 = vmatpush3.msra.mxu1 %v3924_v17  ;;  %4323 = vmatprep.subr.bf16.mxu0 %v6227_v19  ;;  %vm7884_vm9 = vcmp.lt.s32.totalorder %v6924_v31, 1 }
0x159c   :  { %3908 = vadd.xlane.f32.xlu0 %v3907_v10  ;;  %5948 = vmatprep.subr.mxu1 %v3923_v18 }
0x159d   :  { %5949 = vmatpush3.msra.mxu1 %v3923_v18 }
0x159e   :  { %5950 = vmatprep.subr.mxu1 %v3922_v20  ;;  %4324 = vmatpush1.bf16.msra.mxu0 %v6225_v15 }
0x159f   :  { %5951 = vmatpush3.msra.mxu1 %v3922_v20  ;;  %4325 = vmatprep.subr.bf16.mxu0 %v6230_v24 }
0x15a0   :  { %5952 = vmatprep.subr.mxu1 %v3921_v28 }
0x15a1   :  { %5953 = vmatpush3.msra.mxu1 %v3921_v28 }
0x15a2   :  { %5954 = vmatprep.subr.mxu1 %v3920_v30  ;;  %4326 = vmatpush1.bf16.msra.mxu0 %v6228_v29 }
0x15a3   :  { %5955 = vmatpush3.msra.mxu1 %v3920_v30  ;;  %5959 = vmatprep.subr.bf16.mxu0 %v6612_v7 }
0x15a4   :  { %4457 = vmatprep.subr.bf16.mxu1 %v6233_v34 }
0x1621   :  { %v3906_v23 = vpop.xlane.xlu1 %3905 }
0x1622   :  { %v3910_v35 = vmul.f32 0.015625, %v3906_v23 }
0x1624   :  { %v3912_v36 = vadd.f32 1e-05, %v3910_v35 }
0x1625   :  { %v3909_v38 = vpop.xlane.xlu0 %3908 }
0x1626   :  { %6419 = vrsqrt.f32 %v3912_v36  ;;  %v3911_v39 = vmul.f32 0.015625, %v3909_v38 }
0x1628   :  { %v3913_v40 = vadd.f32 1e-05, %v3911_v39 }
0x162a   :  { %6421 = vrsqrt.f32 %v3913_v40 }
0x1633   :  { %v6420_v42 = vpop.eup %6419 }
0x1634   :  { %v3916_v11 = vmul.f32 %v6420_v42, %v7572_v59 }
0x1636   :  { %5956 = vmatprep.mubr.msk.f32.mxu1 %vm7876_vm15, %v3916_v11 }
0x1637   :  { %v6422_v45 = vpop.eup %6421 }
0x1638   :  { %v3917_v47 = vmul.f32 %v6422_v45, %v7577_v63 }
0x163a   :  { %v7587_v27 = vpack.c.bf16 %v3917_v47, %v3916_v11  ;;  %5957 = vmatmul.mubr.msk.f32.vlgmr.msra.gmra.mxu1 %vm7877_vm14, %v3917_v47 }
0x163b   :  { %4458 = vmatpush1.bf16.msra.mxu1 %v6231_v9  ;;  %4481 = vmatprep.mubr.bf16.mxu1 %v6626_v32 }
0x163c   :  { %5356 = vmatmul.mubr.msk.bf16.vlgmr.msra.gmra.mxu0 %vm7878_vm10, %v7587_v27  ;;  %4459 = vmatprep.subr.bf16.mxu1 %v6236_v51  ;;  %vm7885_vm10 = vmmov %vm7884_vm9 }
0x163d   :  { %5975 = vmatprep.mubr.msk.bf16.mxu0 %vm7809_vm4, %v6612_v7 }
0x163f   :  { %4460 = vmatpush1.bf16.msra.mxu1 %v6234_v43 }
0x1640   :  { %4461 = vmatprep.subr.bf16.mxu1 %v6239_v2 }
0x1643   :  { %4462 = vmatpush1.bf16.msra.mxu1 %v6237_v33 }
0x1644   :  { %4463 = vmatprep.subr.bf16.mxu1 %v6242_v52 }
0x1647   :  { %4464 = vmatpush1.bf16.msra.mxu1 %v6240_v50 }
0x1648   :  { %5979 = vmatprep.subr.bf16.mxu1 %v6612_v7 }
0x164a   :  { %5367 = vmatmul.mubr.msk.bf16.vlgmr.msra.gmra.mxu1 %vm7879_vm13, %v7587_v27 }
0x164b   :  { %5995 = vmatprep.mubr.msk.bf16.mxu1 %vm7809_vm4, %v6612_v7 }
0x16fa   :  { %v5958_v5 = vpop.f32.mrf.mxu1 }
0x16fb   :  { %v4012_v44 = vsel %vm7880_vm3, %v5958_v5, -inf }
0x16fc   :  { %4013 = vmax.xlane.f32.xlu1 %v4012_v44  ;;  %v4000_v41 = vpop.f32.mrf.mxu1 }
0x16fd   :  { %v4009_v48 = vsel %vm7881_vm5, %v4000_v41, -inf }
0x16fe   :  { %4010 = vmax.xlane.f32.xlu0 %v4009_v48 }
0x1785   :  { %v4014_v49 = vpop.xlane.xlu1 %4013 }
0x1786   :  { %v4016_v46 = vsub.f32 %v5958_v5, %v4014_v49 }
0x1787   :  { %v4011_v16 = vpop.xlane.xlu0 %4010 }
0x1788   :  { %v4019_v54 = vmul.f32 1.442695, %v4016_v46  ;;  %v4015_v62 = vsub.f32 %v4000_v41, %v4011_v16 }
0x178a   :  { %6423 = vpow2.f32 %v4019_v54  ;;  %v4017_v55 = vmul.f32 1.442695, %v4015_v62 }
0x178c   :  { %6425 = vpow2.f32 %v4017_v55 }
0x1797   :  { %v6424_v56 = vpop.eup %6423 }
0x1798   :  { %v4024_v21 = vsel %vm7882_vm6, %v6424_v56, 0.0 }
0x1799   :  { %v6426_v22 = vpop.eup %6425  ;;  %4025 = vadd.xlane.f32.xlu1 %v4024_v21 }
0x179a   :  { %v4021_v57 = vsel %vm7883_vm11, %v6426_v22, 0.0 }
0x179b   :  { %4022 = vadd.xlane.f32.xlu0 %v4021_v57 }
0x1822   :  { %v4026_v58 = vpop.xlane.xlu1 %4025 }
0x1823   :  { %6427 = vrcp.f32 %v4026_v58 }
0x1824   :  { %v4023_v61 = vpop.xlane.xlu0 %4022 }
0x1825   :  { %6429 = vrcp.f32 %v4023_v61 }
0x1830   :  { %v6428_v60 = vpop.eup %6427 }
0x1831   :  { %v7604_v26 = vmul.f32 %v6428_v60, %v6424_v56 }
0x1832   :  { %v6430_v0 = vpop.eup %6429 }
0x1833   :  { %v7606_v1 = vmul.f32 %v6430_v0, %v6426_v22  ;;  %4090 = vperm.xlu1 %6111, %v7604_v26  }
0x1835   :  { %4086 = vperm.xlu0 %6110, %v7606_v1  }
0x1837   :  { %6112 = vset.pattern.permute.xlu1 %v6628_v13 }
0x1838   :  { %4144 = vperm.xlu1 %6112, %v7604_v26  }
0x183c   :  { %6113 = vset.pattern.permute.xlu1 %v6626_v32 }
0x183d   :  { %4038 = vperm.xlu1 %6113, %v7604_v26  }
0x1841   :  { %6114 = vset.pattern.permute.xlu1 %v6628_v13 }
0x1842   :  { %4140 = vperm.xlu1 %6114, %v7606_v1  }
0x1846   :  { %6115 = vset.pattern.permute.xlu1 %v6626_v32 }
0x1847   :  { %4033 = vperm.xlu1 %6115, %v7606_v1  }
0x184b   :  { %6116 = vset.pattern.permute.xlu1 %v6629_v14 }
0x184c   :  { %4194 = vperm.xlu1 %6116, %v7606_v1  }
0x1850   :  { %4198 = vperm.xlu1 %6116, %v7604_v26  }
0x1854   :  { %6117 = vset.pattern.permute.xlu1 %v6627_v3 }
0x18ae   :  { %v4091_v10 = vpop.permute.xlu1 %4090 }
0x18af   :  { %vm4096_vm7 = vcmp.eq.f32.partialorder %v7604_v26, %v4091_v10  ;;  %vm4094_vm8 = vcmp.gt.f32.partialorder %v7604_v26, %v4091_v10 }
0x18b0   :  { %v4087_v4 = vpop.permute.xlu0 %4086  ;;  %vm4098_vm15 = vmand %vm4096_vm7, %vm7884_vm9 }
0x18b1   :  { %vm4095_vm0 = vcmp.eq.f32.partialorder %v7606_v1, %v4087_v4  ;;  %vm4093_vm14 = vcmp.gt.f32.partialorder %v7606_v1, %v4087_v4  ;;  %vm4100_vm6 = vmor %vm4094_vm8, %vm4098_vm15 }
0x18b2   :  { %vm4097_vm13 = vmand %vm4095_vm0, %vm7885_vm10  ;;  %v4102_v18 = vsel %vm4100_vm6, 1, %v6626_v32 }
0x18b3   :  { %v4145_v37 = vpop.permute.xlu1 %4144  ;;  %vm4099_vm11 = vmor %vm4093_vm14, %vm4097_vm13  ;;  %vm7888_vm13 = vcmask 31744  }
0x18b4   :  { %vm4150_vm5 = vcmp.eq.f32.partialorder %v7604_v26, %v4145_v37  ;;  %vm4148_vm7 = vcmp.gt.f32.partialorder %v7604_v26, %v4145_v37  ;;  %v4101_v20 = vsel %vm4099_vm11, 1, %v6626_v32  ;;  %v4116_v28 = vsel %vm7888_vm13, %v4102_v18, 0  ;;  %vm7889_vm12 = vmmov %vm7888_vm13 }
0x18b5   :  { %v4103_v30 = vsel %vm7889_vm12, %v4101_v20, 0  ;;  %v4118_v39 = vshrl.u32 %v4116_v28, 16  ;;  %v4117_v41 = vand.u32 65535, %v4116_v28 }
0x18b6   :  { %v4105_v40 = vshrl.u32 %v4103_v30, 16  ;;  %v4104_v48 = vand.u32 65535, %v4103_v30 }
0x18b7   :  { %v4120_v51 = vcvt.s32.f32 %v4118_v39  ;;  %v4119_v16 = vcvt.s32.f32 %v4117_v41 }
0x18b8   :  { %v4039_v6 = vpop.permute.xlu1 %4038  ;;  %v4107_v43 = vcvt.s32.f32 %v4105_v40  ;;  %v4106_v54 = vcvt.s32.f32 %v4104_v48 }
0x18b9   :  { %vm4042_vm2 = vcmp.gt.f32.partialorder %v7604_v26, %v4039_v6 }
0x18ba   :  { %v4050_v8 = vsel %vm4042_vm2, 1, %v6626_v32  ;;  %vm7886_vm2 = vcmp.lt.s32.totalorder %v6924_v31, 2 }
0x18bb   :  { %v4064_v3 = vsel %vm7880_vm3, %v4050_v8, 0  ;;  %vm4152_vm9 = vmand %vm4150_vm5, %vm7886_vm2 }
0x18bc   :  { %v4065_v25 = vand.u32 65535, %v4064_v3  ;;  %v4066_v53 = vshrl.u32 %v4064_v3, 16  ;;  %vm7887_vm10 = vmmov %vm7886_vm2 }
0x18bd   :  { %v4141_v17 = vpop.permute.xlu1 %4140  ;;  %vm4154_vm8 = vmor %vm4148_vm7, %vm4152_vm9  ;;  %vm7893_vm7 = vcmp.lt.s32.totalorder %v6924_v31, 3 }
0x18be   :  { %vm4149_vm1 = vcmp.eq.f32.partialorder %v7606_v1, %v4141_v17  ;;  %v4067_v12 = vcvt.s32.f32 %v4065_v25  ;;  %v4068_v19 = vcvt.s32.f32 %v4066_v53  ;;  %vm4147_vm0 = vcmp.gt.f32.partialorder %v7606_v1, %v4141_v17  ;;  %vm7890_vm5 = vmmov %vm7889_vm12 }
0x18bf   :  { %vm4151_vm3 = vmand %vm4149_vm1, %vm7887_vm10  ;;  %v4156_v34 = vsel %vm4154_vm8, 1, %v6626_v32 }
0x18c0   :  { %4069 = vadd.xlane.f32.xlu1 %v4067_v12  ;;  %4071 = vadd.xlane.f32.xlu0 %v4068_v19  ;;  %vm4153_vm15 = vmor %vm4147_vm0, %vm4151_vm3 }
0x18c1   :  { %v4155_v23 = vsel %vm4153_vm15, 1, %v6626_v32  ;;  %vm7891_vm12 = vmmov %vm7890_vm5 }
0x18c2   :  { %v4034_v15 = vpop.permute.xlu1 %4033  ;;  %v4170_v45 = vsel %vm7891_vm12, %v4156_v34, 0  ;;  %vm7892_vm11 = vmmov %vm7890_vm5  ;;  %vm7897_vm12 = vcmp.eq.s32.totalorder %v6924_v31, 0 }
0x18c3   :  { %vm4041_vm14 = vcmp.gt.f32.partialorder %v7606_v1, %v4034_v15  ;;  %v4157_v9 = vsel %vm7892_vm11, %v4155_v23, 0  ;;  %v4172_v2 = vshrl.u32 %v4170_v45, 16  ;;  %vm7894_vm3 = vmmov %vm7893_vm7  ;;  %v4171_v22 = vand.u32 65535, %v4170_v45 }
0x18c4   :  { %v4049_v24 = vsel %vm4041_vm14, 1, %v6626_v32  ;;  %v4159_v33 = vshrl.u32 %v4157_v9, 16  ;;  %vm7895_vm14 = vmmov %vm7890_vm5  ;;  %v4158_v57 = vand.u32 65535, %v4157_v9 }
0x18c5   :  { %v4051_v29 = vsel %vm7890_vm5, %v4049_v24, 0  ;;  %v4174_v5 = vcvt.s32.f32 %v4172_v2  ;;  %vm7896_vm13 = vmmov %vm7890_vm5  ;;  %v4173_v58 = vcvt.s32.f32 %v4171_v22 }
0x18c6   :  { %v4052_v35 = vand.u32 65535, %v4051_v29  ;;  %v4053_v36 = vshrl.u32 %v4051_v29, 16  ;;  %v4161_v44 = vcvt.s32.f32 %v4159_v33  ;;  %v4160_v61 = vcvt.s32.f32 %v4158_v57 }
0x18c7   :  { %v4195_v38 = vpop.permute.xlu1 %4194 }
0x18c8   :  { %vm4201_vm1 = vcmp.gt.f32.partialorder %v7606_v1, %v4195_v38  ;;  %vm4203_vm6 = vcmp.eq.f32.partialorder %v7606_v1, %v4195_v38  ;;  %v4055_v42 = vcvt.s32.f32 %v4053_v36  ;;  %v4054_v11 = vcvt.s32.f32 %v4052_v35 }
0x18c9   :  { %vm4205_vm2 = vmand %vm4203_vm6, %vm7893_vm7 }
0x18ca   :  { %4058 = vadd.xlane.f32.xlu1 %v4055_v42  ;;  %4056 = vadd.xlane.f32.xlu0 %v4054_v11  ;;  %vm4207_vm9 = vmor %vm4201_vm1, %vm4205_vm2  ;;  %vm7900_vm2 = vcmp.eq.s32.totalorder %v6924_v31, 1 }
0x18cb   :  { %v4199_v47 = vpop.permute.xlu1 %4198  ;;  %v4209_v52 = vsel %vm4207_vm9, 1, %v6626_v32 }
0x18cc   :  { %vm4202_vm0 = vcmp.gt.f32.partialorder %v7604_v26, %v4199_v47  ;;  %vm4204_vm10 = vcmp.eq.f32.partialorder %v7604_v26, %v4199_v47  ;;  %v4211_v49 = vsel %vm7895_vm14, %v4209_v52, 0 }
0x18cd   :  { %vm4206_vm8 = vmand %vm4204_vm10, %vm7894_vm3  ;;  %v4213_v55 = vshrl.u32 %v4211_v49, 16  ;;  %v4212_v0 = vand.u32 65535, %v4211_v49 }
0x18ce   :  { %vm4208_vm15 = vmor %vm4202_vm0, %vm4206_vm8  ;;  %4123 = vadd.xlane.f32.xlu1 %v4120_v51  ;;  %4110 = vadd.xlane.f32.xlu0 %v4107_v43 }
0x18cf   :  { %v4210_v50 = vsel %vm4208_vm15, 1, %v6626_v32  ;;  %v4215_v21 = vcvt.s32.f32 %v4213_v55  ;;  %v4214_v37 = vcvt.s32.f32 %v4212_v0  ;;  %vm7903_vm0 = vmmov %vm7900_vm2 }
0x18d0   :  { %v4224_v46 = vsel %vm7896_vm13, %v4210_v50, 0  ;;  %vm7906_vm3 = vmmov %vm7897_vm12 }
0x18d1   :  { %v4226_v62 = vshrl.u32 %v4224_v46, 16  ;;  %v4225_v60 = vand.u32 65535, %v4224_v46 }
0x18d2   :  { %4177 = vadd.xlane.f32.xlu1 %v4174_v5  ;;  %4164 = vadd.xlane.f32.xlu0 %v4161_v44 }
0x18d3   :  { %v4228_v56 = vcvt.s32.f32 %v4226_v62  ;;  %v4227_v10 = vcvt.s32.f32 %v4225_v60 }
0x18d6   :  { %4121 = vadd.xlane.f32.xlu1 %v4119_v16  ;;  %4108 = vadd.xlane.f32.xlu0 %v4106_v54 }
0x18da   :  { %4231 = vadd.xlane.f32.xlu1 %v4228_v56  ;;  %4218 = vadd.xlane.f32.xlu0 %v4215_v21 }
0x18de   :  { %4175 = vadd.xlane.f32.xlu1 %v4173_v58  ;;  %4162 = vadd.xlane.f32.xlu0 %v4160_v61 }
0x18e2   :  { %4229 = vadd.xlane.f32.xlu1 %v4227_v10  ;;  %4216 = vadd.xlane.f32.xlu0 %v4214_v37 }
0x1949   :  { %v4070_v4 = vpop.xlane.xlu1 %4069  ;;  %v4072_v6 = vpop.xlane.xlu0 %4071 }
0x194a   :  { %v4074_v25 = vcvt.f32.s32 %v4072_v6  ;;  %v4073_v30 = vcvt.f32.s32 %v4070_v4 }
0x194c   :  { %v4075_v12 = vshll.u32 %v4074_v25, 16  ;;  %v6244_v25 = vld [vmem:[#allocation10 + $0x170] sm:$0xff]  }
0x194e   :  { %v4076_v24 = vadd.s32 %v4075_v12, %v4073_v30  ;;  %v6250_v12 = vld [vmem:[#allocation10 + $0x158] sm:$0xff]  }
0x1950   :  { %vm4078_vm5 = vcmp.lt.s32.totalorder %v4076_v24, 2  ;;  %v6256_v24 = vld [vmem:[#allocation10 + $0x140] sm:$0xff]  }
0x1951   :  { %vm7666_vm11 = vmand %vm4078_vm5, %vm7897_vm12 }
0x1953   :  { %v4059_v8 = vpop.xlane.xlu1 %4058  ;;  %v4057_v3 = vpop.xlane.xlu0 %4056 }
0x1954   :  { %v4061_v19 = vcvt.f32.s32 %v4059_v8  ;;  %v4060_v40 = vcvt.f32.s32 %v4057_v3  ;;  %v6243_v8 = vld [vmem:[#allocation10 + $0x178] sm:$0xff]  }
0x1955   :  { %v6245_v3 = vld [vmem:[#allocation10 + $0x138] sm:$0xff]   ;;  %5960 = vmatpush3.bf16.msra.mxu0 %v6243_v8 }
0x1956   :  { %v4062_v29 = vshll.u32 %v4061_v19, 16  ;;  %5980 = vmatpush3.bf16.msra.mxu1 %v6245_v3  ;;  %5961 = vmatprep.subr.bf16.mxu0 %v6612_v7  ;;  %v6253_v19 = vld [vmem:[#allocation10 + $0x118] sm:$0xff]   ;;  %v6264_v3 = vld [vmem:[#allocation8 + $0x1a4] ss:$8 sps:$4 sm:$0xff]  }
0x1957   :  { %v4124_v53 = vpop.xlane.xlu1 %4123  ;;  %v4111_v17 = vpop.xlane.xlu0 %4110  ;;  %5981 = vmatprep.subr.bf16.mxu1 %v6612_v7 }
0x1958   :  { %v4126_v15 = vcvt.f32.s32 %v4124_v53  ;;  %v4113_v28 = vcvt.f32.s32 %v4111_v17  ;;  %v4063_v45 = vadd.s32 %v4062_v29, %v4060_v40  ;;  %v6247_v53 = vld [vmem:[#allocation10 + $0x130] sm:$0xff]   ;;  %v6251_v17 = vld [vmem:[#allocation10 + $0x120] sm:$0xff]   ;;  %v4483_v40 = vpop.f32.mrf.mxu1 }
0x1959   :  { %5962 = vmatpush3.bf16.msra.mxu0 %v6244_v25 }
0x195a   :  { %v4127_v35 = vshll.u32 %v4126_v15, 16  ;;  %v4114_v36 = vshll.u32 %v4113_v28, 16  ;;  %vm4077_vm7 = vcmp.lt.s32.totalorder %v4063_v45, 2  ;;  %5982 = vmatpush3.bf16.msra.mxu1 %v6247_v53  ;;  %5963 = vmatprep.subr.bf16.mxu0 %v6612_v7  ;;  %v6254_v15 = vld [vmem:[#allocation10 + $0x148] sm:$0xff]  }
0x195b   :  { %v4178_v18 = vpop.xlane.xlu1 %4177  ;;  %v4165_v20 = vpop.xlane.xlu0 %4164  ;;  %vm7684_vm8 = vmand %vm4077_vm7, %vm7906_vm3  ;;  %vm7911_vm3 = vcmp.eq.s32.totalorder %v6924_v31, 3  ;;  %5983 = vmatprep.subr.bf16.mxu1 %v6612_v7 }
0x195c   :  { %v4180_v51 = vcvt.f32.s32 %v4178_v18  ;;  %v4167_v43 = vcvt.f32.s32 %v4165_v20  ;;  %v6252_v18 = vld [vmem:[#allocation10 + $0x150] sm:$0xff]  }
0x195d   :  { %v6255_v20 = vld [vmem:[#allocation10 + $0x110] sm:$0xff]  }
0x195e   :  { %v4181_v44 = vshll.u32 %v4180_v51, 16  ;;  %v4168_v41 = vshll.u32 %v4167_v43, 16  ;;  %v5368_v51 = vmul.f32 -1.442695, %v4483_v40 }
0x195f   :  { %v4122_v34 = vpop.xlane.xlu1 %4121  ;;  %v4109_v23 = vpop.xlane.xlu0 %4108 }
0x1960   :  { %v4125_v38 = vcvt.f32.s32 %v4122_v34  ;;  %v4112_v39 = vcvt.f32.s32 %v4109_v23  ;;  %v6257_v34 = vld [vmem:[#allocation10 + $0x108] sm:$0xff]  }
0x1962   :  { %v4128_v42 = vadd.s32 %v4127_v35, %v4125_v38  ;;  %v4115_v11 = vadd.s32 %v4114_v36, %v4112_v39  ;;  %v6260_v36 = vld [vmem:[#allocation8 + $0x1b4] ss:$8 sps:$4 sm:$0xff]   ;;  %v6261_v39 = vld [vmem:[#allocation10 + $0x100] sm:$0xff]  }
0x1963   :  { %v4232_v9 = vpop.xlane.xlu1 %4231  ;;  %v4219_v47 = vpop.xlane.xlu0 %4218 }
0x1964   :  { %vm4130_vm1 = vcmp.lt.s32.totalorder %v4128_v42, 2  ;;  %vm4129_vm6 = vcmp.lt.s32.totalorder %v4115_v11, 2  ;;  %v4234_v33 = vcvt.f32.s32 %v4232_v9  ;;  %v4221_v52 = vcvt.f32.s32 %v4219_v47  ;;  %v4485_v42 = vpop.f32.mrf.mxu1  ;;  %v4345_v11 = vpop.f32.mrf.mxu0 }
0x1965   :  { %vm7672_vm9 = vmand %vm4130_vm1, %vm7900_vm2  ;;  %vm7909_vm1 = vcmp.eq.s32.totalorder %v6924_v31, 2  ;;  %v6246_v31 = vld [vmem:[#allocation10 + $0x168] sm:$0xff]   ;;  %v5357_v2 = vmul.f32 -1.442695, %v4345_v11 }
0x1966   :  { %vm7678_vm10 = vmand %vm4129_vm6, %vm7903_vm0  ;;  %v4235_v56 = vshll.u32 %v4234_v33, 16  ;;  %v4222_v21 = vshll.u32 %v4221_v52, 16  ;;  %5964 = vmatpush3.bf16.msra.mxu0 %v6246_v31  ;;  %v4487_v45 = vpop.f32.mrf.mxu1  ;;  %v4347_v9 = vpop.f32.mrf.mxu0 }
0x1967   :  { %v4176_v50 = vpop.xlane.xlu1 %4175  ;;  %v4163_v5 = vpop.xlane.xlu0 %4162  ;;  %vm4138_vm15 = vmor %vm7666_vm11, %vm7672_vm9  ;;  %5965 = vmatprep.subr.bf16.mxu0 %v6612_v7  ;;  %v5369_v47 = vmul.f32 -1.442695, %v4487_v45 }
0x1968   :  { %v4179_v49 = vcvt.f32.s32 %v4176_v50  ;;  %v4166_v46 = vcvt.f32.s32 %v4163_v5  ;;  %vm4137_vm14 = vmor %vm7684_vm8, %vm7678_vm10  ;;  %v4349_v43 = vpop.f32.mrf.mxu0 }
0x1969   :  { %vm7910_vm12 = vmmov %vm7909_vm1 }
0x196a   :  { %v4182_v62 = vadd.s32 %v4181_v44, %v4179_v49  ;;  %v4169_v55 = vadd.s32 %v4168_v41, %v4166_v46  ;;  %vm7912_vm10 = vmmov %vm7911_vm3 }
0x196b   :  { %v4230_v22 = vpop.xlane.xlu1 %4229  ;;  %v4217_v57 = vpop.xlane.xlu0 %4216 }
0x196c   :  { %vm4184_vm13 = vcmp.lt.s32.totalorder %v4182_v62, 2  ;;  %vm4183_vm5 = vcmp.lt.s32.totalorder %v4169_v55, 2  ;;  %v4233_v58 = vcvt.f32.s32 %v4230_v22  ;;  %v4220_v61 = vcvt.f32.s32 %v4217_v57 }
0x196d   :  { %vm4190_vm6 = vmand %vm4184_vm13, %vm7909_vm1 }
0x196e   :  { %vm4189_vm7 = vmand %vm4183_vm5, %vm7910_vm12  ;;  %v4236_v60 = vadd.s32 %v4235_v56, %v4233_v58  ;;  %v4223_v0 = vadd.s32 %v4222_v21, %v4220_v61  ;;  %vm7913_vm5 = vcmask 31744   ;;  %v4489_v56 = vpop.f32.mrf.mxu1 }
0x196f   :  { %vm4192_vm11 = vmor %vm4138_vm15, %vm4190_vm6  ;;  %vm7916_vm15 = vcmask 523264  }
0x1970   :  { %vm4238_vm2 = vcmp.lt.s32.totalorder %v4236_v60, 2  ;;  %vm4237_vm9 = vcmp.lt.s32.totalorder %v4223_v0, 2  ;;  %vm4191_vm0 = vmor %vm4137_vm14, %vm4189_vm7 }
0x1971   :  { %vm4244_vm4 = vmand %vm4238_vm2, %vm7911_vm3 }
0x1972   :  { %vm4243_vm8 = vmand %vm4237_vm9, %vm7912_vm10 }
0x1973   :  { %vm4246_vm1 = vmor %vm4192_vm11, %vm4244_vm4  ;;  %vm7915_vm4 = vmmov 0  }
0x1974   :  { %v4248_v10 = vsel %vm4246_vm1, %v7604_v26, 0.0  ;;  %vm4245_vm13 = vmor %vm4191_vm0, %vm4243_vm8  ;;  %v6249_v26 = vld [vmem:[#allocation10 + $0x128] sm:$0xff]  }
0x1975   :  { %v4252_v37 = vsel %vm7913_vm5, %v4248_v10, 0.0  ;;  %v4247_v4 = vsel %vm4245_vm13, %v7606_v1, 0.0  ;;  %vm7914_vm12 = vmmov %vm7913_vm5  ;;  %v6248_v1 = vld [vmem:[#allocation10 + $0x160] sm:$0xff]   ;;  %5984 = vmatpush3.bf16.msra.mxu1 %v6249_v26 }
0x1976   :  { %4253 = vadd.xlane.f32.xlu1 %v4252_v37  ;;  %v4249_v6 = vsel %vm7914_vm12, %v4247_v4, 0.0  ;;  %5985 = vmatprep.subr.bf16.mxu1 %v6612_v7  ;;  %v6258_v37 = vld [vmem:[#allocation8 + $0x1b0] ss:$8 sps:$4 sm:$0xff]   ;;  %vm7917_vm14 = vmmov %vm7916_vm15 }
0x1977   :  { %4250 = vadd.xlane.f32.xlu0 %v4249_v6  ;;  %5966 = vmatpush3.bf16.msra.mxu0 %v6248_v1  ;;  %v4351_v6 = vpop.f32.mrf.mxu0  ;;  %vm7918_vm6 = vmmov %vm7917_vm14 }
0x1978   :  { %5967 = vmatprep.subr.bf16.mxu0 %v6612_v7  ;;  %vm7919_vm7 = vmmov %vm7918_vm6 }
0x1979   :  { %5986 = vmatpush3.bf16.msra.mxu1 %v6251_v17  ;;  %v6262_v17 = vld [vmem:[#allocation8 + $0x1a0] ss:$8 sps:$4 sm:$0xff]   ;;  %vm7920_vm11 = vmmov %vm7918_vm6 }
0x197a   :  { %5987 = vmatprep.subr.bf16.mxu1 %v6612_v7  ;;  %vm7921_vm2 = vmmov %vm7918_vm6 }
0x197b   :  { %5968 = vmatpush3.bf16.msra.mxu0 %v6250_v12  ;;  %v6267_v12 = vld [vmem:[#allocation8 + $0x194] ss:$8 sps:$4 sm:$0xff]  }
0x197c   :  { %5969 = vmatprep.subr.bf16.mxu0 %v6612_v7 }
0x197d   :  { %5988 = vmatpush3.bf16.msra.mxu1 %v6253_v19 }
0x197e   :  { %5989 = vmatprep.subr.bf16.mxu1 %v6612_v7 }
0x197f   :  { %5970 = vmatpush3.bf16.msra.mxu0 %v6252_v18  ;;  %v6265_v18 = vld [vmem:[#allocation8 + $0x190] ss:$8 sps:$4 sm:$0xff]  }
0x1980   :  { %5971 = vmatprep.subr.bf16.mxu0 %v6612_v7 }
0x1981   :  { %5990 = vmatpush3.bf16.msra.mxu1 %v6255_v20  ;;  %v6270_v20 = vld [vmem:[#allocation8 + $0x184] ss:$8 sps:$4 sm:$0xff]  }
0x1982   :  { %5991 = vmatprep.subr.bf16.mxu1 %v6612_v7 }
0x1983   :  { %5972 = vmatpush3.bf16.msra.mxu0 %v6254_v15  ;;  %v6268_v15 = vld [vmem:[#allocation8 + $0x180] ss:$8 sps:$4 sm:$0xff]  }
0x1984   :  { %5973 = vmatprep.subr.bf16.mxu0 %v6612_v7 }
0x1985   :  { %5992 = vmatpush3.bf16.msra.mxu1 %v6257_v34  ;;  %v6279_v34 = vld [vmem:[#allocation8 + $0x1d4] ss:$8 sps:$4 sm:$0xff]  }
0x1986   :  { %5993 = vmatprep.subr.bf16.mxu1 %v6612_v7 }
0x1987   :  { %5974 = vmatpush3.bf16.msra.mxu0 %v6256_v24  ;;  %v6276_v24 = vld [vmem:[#allocation8 + $0x1e4] ss:$8 sps:$4 sm:$0xff]  }
0x1988   :  { %4771 = vmatprep.subr.bf16.mxu0 %v6260_v36  ;;  %v6280_v36 = vld [vmem:[#allocation8 + $0x1c0] ss:$8 sps:$4 sm:$0xff]  }
0x1989   :  { %5994 = vmatpush3.bf16.msra.mxu1 %v6261_v39  ;;  %v6285_v39 = vld [vmem:[#allocation10 + $0x1a8] sm:$0xff]  }
0x198a   :  { %5999 = vmatprep.subr.bf16.mxu1 %v6612_v7 }
0x19ff   :  { %v4254_v28 = vpop.xlane.xlu1 %4253 }
0x1a00   :  { %6431 = vrcp.f32 %v4254_v28  ;;  %v4251_v30 = vpop.xlane.xlu0 %4250  ;;  %v6273_v28 = vld [vmem:[#allocation8 + $0x1f4] ss:$8 sps:$4 sm:$0xff]  }
0x1a01   :  { %6433 = vrcp.f32 %v4251_v30  ;;  %v6271_v30 = vld [vmem:[#allocation8 + $0x1f0] ss:$8 sps:$4 sm:$0xff]  }
0x1a02   :  { %6435 = vpow2.f32 %v5369_v47  ;;  %v6292_v47 = vld [vmem:[#allocation10 + $0x1e8] sm:$0xff]  }
0x1a03   :  { %6437 = vpow2.f32 %v5368_v51  ;;  %v6293_v51 = vld [vmem:[#allocation10 + $0x180] sm:$0xff]  }
0x1a04   :  { %6439 = vpow2.f32 %v5357_v2  ;;  %v6295_v2 = vld [vmem:[#allocation10 + $0x1d8] sm:$0xff]  }
0x1a0d   :  { %v6432_v29 = vpop.eup %6431 }
0x1a0e   :  { %v6434_v23 = vpop.eup %6433  ;;  %v4258_v35 = vmul.f32 %v6432_v29, %v4248_v10  ;;  %v6274_v29 = vld [vmem:[#allocation8 + $0x1e0] ss:$8 sps:$4 sm:$0xff]  }
0x1a0f   :  { %v4256_v38 = vmul.f32 %v6434_v23, %v4247_v4  ;;  %v6436_v33 = vpop.eup %6435  ;;  %v6277_v23 = vld [vmem:[#allocation8 + $0x1d0] ss:$8 sps:$4 sm:$0xff]  }
0x1a10   :  { %4513 = vperm.xlu1 %6117, %v4258_v35   ;;  %v6438_v52 = vpop.eup %6437  ;;  %v4499_v50 = vadd.f32 1.0, %v6436_v33  ;;  %v6297_v33 = vld [vmem:[#allocation10 + $0x1c8] sm:$0xff]  }
0x1a11   :  { %4509 = vperm.xlu0 %6110, %v4256_v38   ;;  %v4498_v5 = vadd.f32 1.0, %v6438_v52  ;;  %v6298_v52 = vld [vmem:[#allocation10 + $0x1c0] sm:$0xff]  }
0x1a14   :  { %6118 = vset.pattern.permute.xlu1 %v6626_v32 }
0x1a15   :  { %6119 = vset.pattern.permute.xlu0 %v6626_v32  ;;  %4372 = vperm.xlu1 %6118, %v4256_v38  }
0x1a16   :  { %4377 = vperm.xlu0 %6119, %v4258_v35  }
0x1a19   :  { %6120 = vset.pattern.permute.xlu1 %v6628_v13  ;;  %v5358_v13 = vmul.f32 -1.442695, %v4349_v43 }
0x1a1a   :  { %6121 = vset.pattern.permute.xlu0 %v6629_v14  ;;  %4827 = vperm.xlu1 %6120, %v4258_v35  }
0x1a1b   :  { %5050 = vperm.xlu0 %6121, %v4256_v38   ;;  %6441 = vpow2.f32 %v5358_v13  ;;  %v6296_v13 = vld [vmem:[#allocation10 + $0x1d0] sm:$0xff]  }
0x1a1c   :  { %6443 = vrcp.f32 %v4499_v50 }
0x1a1d   :  { %6445 = vrcp.f32 %v4498_v5 }
0x1a1e   :  { %4823 = vperm.xlu1 %6120, %v4256_v38   ;;  %v6283_v38 = vld [vmem:[#allocation10 + $0x1b8] sm:$0xff]  }
0x1a22   :  { %6122 = vset.pattern.permute.xlu1 %v6629_v14  ;;  %v6440_v14 = vpop.eup %6439 }
0x1a23   :  { %5054 = vperm.xlu1 %6122, %v4258_v35   ;;  %v4360_v41 = vadd.f32 1.0, %v6440_v14  ;;  %v6282_v35 = vld [vmem:[#allocation8 + $0x1c4] ss:$8 sps:$4 sm:$0xff]  }
0x1a25   :  { %6447 = vrcp.f32 %v4360_v41 }
0x1a28   :  { %v6442_v44 = vpop.eup %6441 }
0x1a29   :  { %v4361_v48 = vadd.f32 1.0, %v6442_v44  ;;  %v6444_v49 = vpop.eup %6443 }
0x1a2a   :  { %v6446_v46 = vpop.eup %6445  ;;  %v4505_v16 = vmul.f32 %v6444_v49, %v4487_v45  ;;  %v6290_v45 = vld [vmem:[#allocation10 + $0x1f0] sm:$0xff]  }
0x1a2b   :  { %6449 = vrcp.f32 %v4361_v48  ;;  %v4504_v54 = vmul.f32 %v6446_v46, %v4483_v40  ;;  %v6286_v40 = vld [vmem:[#allocation10 + $0x1a0] sm:$0xff]  }
0x1a2c   :  { %v4507_v21 = vmul.f32 %v4505_v16, %v4489_v56 }
0x1a2d   :  { %v4506_v57 = vmul.f32 %v4504_v54, %v4485_v42  ;;  %v6288_v42 = vld [vmem:[#allocation10 + $0x1f8] sm:$0xff]  }
0x1a32   :  { %v6448_v62 = vpop.eup %6447 }
0x1a33   :  { %v4366_v22 = vmul.f32 %v6448_v62, %v4345_v11  ;;  %v6289_v11 = vld [vmem:[#allocation10 + $0x190] sm:$0xff]  }
0x1a35   :  { %v4368_v4 = vmul.f32 %v4366_v22, %v4347_v9  ;;  %v6291_v9 = vld [vmem:[#allocation10 + $0x188] sm:$0xff]  }
0x1a38   :  { %v6450_v55 = vpop.eup %6449 }
0x1a39   :  { %v4367_v61 = vmul.f32 %v6450_v55, %v4349_v43  ;;  %v6294_v43 = vld [vmem:[#allocation10 + $0x1e0] sm:$0xff]  }
0x1a3b   :  { %v4369_v25 = vmul.f32 %v4367_v61, %v4351_v6 }
0x1a8b   :  { %v4514_v58 = vpop.permute.xlu1 %4513 }
0x1a8c   :  { %v4517_v60 = vmul.f32 %v4514_v58, %v4507_v21  ;;  %v4510_v0 = vpop.permute.xlu0 %4509 }
0x1a8d   :  { %v4516_v10 = vmul.f32 %v4510_v0, %v4506_v57 }
0x1a8f   :  { %v4518_v8 = vpack.c.bf16 %v4517_v60, %v4516_v10 }
0x1a90   :  { %v4373_v53 = vpop.permute.xlu1 %4372 }
0x1a91   :  { %v4380_v31 = vmul.f32 %v4373_v53, %v4368_v4  ;;  %v4378_v26 = vpop.permute.xlu0 %4377  ;;  %5976 = vmatmul.mubr.bf16.vlgmr.msra.gmra.mxu0 %v4518_v8 }
0x1a92   :  { %v4381_v1 = vmul.f32 %v4378_v26, %v4369_v25  ;;  %4772 = vmatpush1.bf16.msra.mxu0 %v6258_v37  ;;  %4795 = vmatprep.mubr.bf16.mxu0 %v6626_v32 }
0x1a93   :  { %4773 = vmatprep.subr.bf16.mxu0 %v6264_v3 }
0x1a94   :  { %v4382_v19 = vpack.c.bf16 %v4381_v1, %v4380_v31 }
0x1a95   :  { %v4828_v53 = vpop.permute.xlu1 %4827 }
0x1a96   :  { %4774 = vmatpush1.bf16.msra.mxu0 %v6262_v17  ;;  %5996 = vmatmul.mubr.bf16.vlgmr.msra.gmra.mxu1 %v4382_v19 }
0x1a97   :  { %4775 = vmatprep.subr.bf16.mxu0 %v6267_v12  ;;  %6015 = vmatprep.mubr.msk.bf16.mxu1 %vm7915_vm4, %v6612_v7 }
0x1a98   :  { %6000 = vmatpush3.bf16.msra.mxu1 %v6283_v38 }
0x1a99   :  { %6001 = vmatprep.subr.bf16.mxu1 %v6612_v7 }
0x1a9a   :  { %4776 = vmatpush1.bf16.msra.mxu0 %v6265_v18 }
0x1a9b   :  { %4777 = vmatprep.subr.bf16.mxu0 %v6270_v20  ;;  %v4824_v20 = vpop.permute.xlu1 %4823 }
0x1a9e   :  { %4778 = vmatpush1.bf16.msra.mxu0 %v6268_v15 }
0x1a9f   :  { %4998 = vmatprep.subr.bf16.mxu0 %v6273_v28 }
0x1aa1   :  { %5394 = vmatmul.mubr.msk.bf16.vlgmr.msra.gmra.mxu0 %vm7916_vm15, %v7587_v27 }
0x1aa2   :  { %4999 = vmatpush1.bf16.msra.mxu0 %v6271_v30  ;;  %5022 = vmatprep.mubr.bf16.mxu0 %v6626_v32  ;;  %v6284_v32 = vld [vmem:[#allocation10 + $0x1b0] sm:$0xff]  }
0x1aa3   :  { %5000 = vmatprep.subr.bf16.mxu0 %v6276_v24  ;;  %6002 = vmatpush3.bf16.msra.mxu1 %v6284_v32  ;;  %v5051_v32 = vpop.permute.xlu0 %5050 }
0x1aa4   :  { %6003 = vmatprep.subr.bf16.mxu1 %v6612_v7 }
0x1aa6   :  { %5001 = vmatpush1.bf16.msra.mxu0 %v6274_v29 }
0x1aa7   :  { %5002 = vmatprep.subr.bf16.mxu0 %v6279_v34  ;;  %6004 = vmatpush3.bf16.msra.mxu1 %v6285_v39  ;;  %v5055_v39 = vpop.permute.xlu1 %5054 }
0x1aa8   :  { %6005 = vmatprep.subr.bf16.mxu1 %v6612_v7 }
0x1aaa   :  { %5003 = vmatpush1.bf16.msra.mxu0 %v6277_v23 }
0x1aab   :  { %5004 = vmatprep.subr.bf16.mxu0 %v6282_v35  ;;  %6006 = vmatpush3.bf16.msra.mxu1 %v6286_v40 }
0x1aac   :  { %6007 = vmatprep.subr.bf16.mxu1 %v6612_v7 }
0x1aae   :  { %5005 = vmatpush1.bf16.msra.mxu0 %v6280_v36 }
0x1aaf   :  { %6019 = vmatprep.subr.bf16.mxu0 %v6612_v7 }
0x1ab1   :  { %5413 = vmatmul.mubr.msk.bf16.vlgmr.msra.gmra.mxu0 %vm7917_vm14, %v7587_v27  ;;  %v6287_v27 = vld [vmem:[#allocation10 + $0x198] sm:$0xff]  }
0x1ab2   :  { %6035 = vmatprep.mubr.msk.bf16.mxu0 %vm7915_vm4, %v6612_v7  ;;  %6008 = vmatpush3.bf16.msra.mxu1 %v6287_v27 }
0x1ab3   :  { %6020 = vmatpush3.bf16.msra.mxu0 %v6288_v42  ;;  %6009 = vmatprep.subr.bf16.mxu1 %v6612_v7 }
0x1ab4   :  { %6021 = vmatprep.subr.bf16.mxu0 %v6612_v7 }
0x1ab6   :  { %6010 = vmatpush3.bf16.msra.mxu1 %v6289_v11 }
0x1ab7   :  { %6022 = vmatpush3.bf16.msra.mxu0 %v6290_v45  ;;  %6011 = vmatprep.subr.bf16.mxu1 %v6612_v7 }
0x1ab8   :  { %6023 = vmatprep.subr.bf16.mxu0 %v6612_v7 }
0x1aba   :  { %6012 = vmatpush3.bf16.msra.mxu1 %v6291_v9 }
0x1abb   :  { %6024 = vmatpush3.bf16.msra.mxu0 %v6292_v47  ;;  %6013 = vmatprep.subr.bf16.mxu1 %v6612_v7 }
0x1abc   :  { %6025 = vmatprep.subr.bf16.mxu0 %v6612_v7 }
0x1abe   :  { %6014 = vmatpush3.bf16.msra.mxu1 %v6293_v51 }
0x1abf   :  { %6026 = vmatpush3.bf16.msra.mxu0 %v6294_v43 }
0x1ac0   :  { %6027 = vmatprep.subr.bf16.mxu0 %v6612_v7 }
0x1ac3   :  { %6028 = vmatpush3.bf16.msra.mxu0 %v6295_v2 }
0x1ac4   :  { %6029 = vmatprep.subr.bf16.mxu0 %v6612_v7 }
0x1ac7   :  { %6030 = vmatpush3.bf16.msra.mxu0 %v6296_v13 }
0x1ac8   :  { %6031 = vmatprep.subr.bf16.mxu0 %v6612_v7 }
0x1acb   :  { %6032 = vmatpush3.bf16.msra.mxu0 %v6297_v33 }
0x1acc   :  { %6033 = vmatprep.subr.bf16.mxu0 %v6612_v7 }
0x1acf   :  { %6034 = vmatpush3.bf16.msra.mxu0 %v6298_v52 }
0x1b51   :  { %v4618_v50 = vpop.f32.mrf.mxu0 }
0x1b53   :  { %v5977_v5 = vpop.f32.mrf.mxu0 }
0x1b55   :  { %v4621_v14 = vpop.f32.mrf.mxu0 }
0x1b56   :  { %v4707_v44 = vpop.f32.mrf.mxu1 }
0x1b57   :  { %v4708_v41 = vadd.f32 %v4707_v44, %v4618_v50  ;;  %v5978_v48 = vpop.f32.mrf.mxu0 }
0x1b58   :  { %v5997_v49 = vpop.f32.mrf.mxu1 }
0x1b5a   :  { %v4710_v46 = vpop.f32.mrf.mxu1 }
0x1b5b   :  { %v4711_v16 = vadd.f32 %v4710_v46, %v4621_v14 }
0x1b5c   :  { %v5998_v54 = vpop.f32.mrf.mxu1 }
0x1b61   :  { %v4797_v62 = vpop.f32.mrf.mxu0 }
0x1b62   :  { %v5395_v55 = vmul.f32 -1.442695, %v4797_v62 }
0x1b63   :  { %v4799_v56 = vpop.f32.mrf.mxu0 }
0x1b64   :  { %6451 = vpow2.f32 %v5395_v55 }
0x1b65   :  { %v4801_v21 = vpop.f32.mrf.mxu0 }
0x1b66   :  { %v5396_v22 = vmul.f32 -1.442695, %v4801_v21 }
0x1b67   :  { %v4803_v7 = vpop.f32.mrf.mxu0 }
0x1b68   :  { %6453 = vpow2.f32 %v5396_v22 }
0x1b71   :  { %v6452_v57 = vpop.eup %6451  ;;  %v5024_v58 = vpop.f32.mrf.mxu0 }
0x1b72   :  { %v4812_v61 = vadd.f32 1.0, %v6452_v57  ;;  %v5414_v60 = vmul.f32 -1.442695, %v5024_v58 }
0x1b73   :  { %v5026_v0 = vpop.f32.mrf.mxu0 }
0x1b74   :  { %6455 = vrcp.f32 %v4812_v61 }
0x1b75   :  { %v6454_v10 = vpop.eup %6453  ;;  %6457 = vpow2.f32 %v5414_v60  ;;  %v5028_v37 = vpop.f32.mrf.mxu0 }
0x1b76   :  { %v4813_v4 = vadd.f32 1.0, %v6454_v10  ;;  %v5415_v6 = vmul.f32 -1.442695, %v5028_v37 }
0x1b77   :  { %v5030_v36 = vpop.f32.mrf.mxu0 }
0x1b78   :  { %6459 = vrcp.f32 %v4813_v4 }
0x1b79   :  { %6461 = vpow2.f32 %v5415_v6 }
0x1b81   :  { %v6456_v8 = vpop.eup %6455 }
0x1b82   :  { %v6458_v3 = vpop.eup %6457  ;;  %v4818_v25 = vmul.f32 %v6456_v8, %v4797_v62 }
0x1b83   :  { %v5039_v31 = vadd.f32 1.0, %v6458_v3 }
0x1b84   :  { %v4820_v17 = vmul.f32 %v4818_v25, %v4799_v56 }
0x1b85   :  { %v6460_v26 = vpop.eup %6459  ;;  %6463 = vrcp.f32 %v5039_v31 }
0x1b86   :  { %v6462_v1 = vpop.eup %6461  ;;  %v4819_v12 = vmul.f32 %v6460_v26, %v4801_v21  ;;  %v4830_v15 = vmul.f32 %v4824_v20, %v4820_v17 }
0x1b87   :  { %v5040_v19 = vadd.f32 1.0, %v6462_v1 }
0x1b88   :  { %v4821_v18 = vmul.f32 %v4819_v12, %v4803_v7 }
0x1b89   :  { %6465 = vrcp.f32 %v5040_v19 }
0x1b8a   :  { %v4831_v28 = vmul.f32 %v4828_v53, %v4821_v18 }
0x1b8c   :  { %v4832_v30 = vpack.c.bf16 %v4831_v28, %v4830_v15 }
0x1b8e   :  { %6016 = vmatmul.mubr.bf16.vlgmr.msra.gmra.mxu1 %v4832_v30 }
0x1b92   :  { %v6464_v24 = vpop.eup %6463 }
0x1b93   :  { %v5045_v29 = vmul.f32 %v6464_v24, %v5024_v58 }
0x1b95   :  { %v5047_v23 = vmul.f32 %v5045_v29, %v5026_v0 }
0x1b96   :  { %v6466_v34 = vpop.eup %6465 }
0x1b97   :  { %v5046_v35 = vmul.f32 %v6466_v34, %v5028_v37  ;;  %v5057_v40 = vmul.f32 %v5051_v32, %v5047_v23 }
0x1b99   :  { %v5048_v38 = vmul.f32 %v5046_v35, %v5030_v36 }
0x1b9b   :  { %v5058_v27 = vmul.f32 %v5055_v39, %v5048_v38 }
0x1b9d   :  { %v5059_v42 = vpack.c.bf16 %v5058_v27, %v5057_v40 }
0x1b9f   :  { %6036 = vmatmul.mubr.bf16.vlgmr.msra.gmra.mxu0 %v5059_v42 }
0x1c4e   :  { %v4932_v11 = vpop.f32.mrf.mxu1 }
0x1c4f   :  { %v4939_v51 = vadd.f32 %v4932_v11, %v4708_v41 }
0x1c50   :  { %v6017_v45 = vpop.f32.mrf.mxu1 }
0x1c52   :  { %v4935_v9 = vpop.f32.mrf.mxu1 }
0x1c53   :  { %v4940_v33 = vadd.f32 %v4935_v9, %v4711_v16 }
0x1c54   :  { %v6018_v47 = vpop.f32.mrf.mxu1 }
0x1c5f   :  { %v5159_v43 = vpop.f32.mrf.mxu0 }
0x1c60   :  { %v5166_v2 = vadd.f32 %v5159_v43, %v4939_v51 }
0x1c61   :  { %v6037_v13 = vpop.f32.mrf.mxu0 }
0x1c62   :  { %v5168_v52 = vadd.f32 %v5166_v2, %v7572_v59 }
0x1c63   :  { %v5162_v50 = vpop.f32.mrf.mxu0 }
0x1c64   :  { %v5167_v5 = vadd.f32 %v5162_v50, %v4940_v33  ;;  %v5170_v14 = vmul.f32 %v5168_v52, %v5168_v52 }
0x1c65   :  { %v6038_v44 = vpop.f32.mrf.mxu0 }
0x1c66   :  { %v5169_v48 = vadd.f32 %v5167_v5, %v7577_v63  ;;  %v5172_v49 = vsel %vm7918_vm6, %v5170_v14, 0.0  ;;  %v5424_v63 = vld [vmem:[%s7776_s8] ss:$0 sm:$0xff] }
0x1c67   :  { %5173 = vadd.xlane.f32.xlu1 %v5172_v49 }
0x1c68   :  { %v5171_v46 = vmul.f32 %v5169_v48, %v5169_v48 }
0x1c6a   :  { %v5175_v54 = vsel %vm7919_vm7, %v5171_v46, 0.0 }
0x1c6b   :  { %5176 = vadd.xlane.f32.xlu0 %v5175_v54 }
0x1cf0   :  { %v5174_v41 = vpop.xlane.xlu1 %5173 }
0x1cf1   :  { %v5178_v62 = vmul.f32 0.015625, %v5174_v41 }
0x1cf3   :  { %v5180_v55 = vadd.f32 1e-05, %v5178_v62 }
0x1cf4   :  { %v5177_v56 = vpop.xlane.xlu0 %5176 }
0x1cf5   :  { %6467 = vrsqrt.f32 %v5180_v55  ;;  %v5179_v16 = vmul.f32 0.015625, %v5177_v56 }
0x1cf7   :  { %v5181_v59 = vadd.f32 1e-05, %v5179_v16 }
0x1cf9   :  { %6469 = vrsqrt.f32 %v5181_v59 }
0x1d02   :  { %v6468_v21 = vpop.eup %6467 }
0x1d03   :  { %v5184_v22 = vmul.f32 %v6468_v21, %v5168_v52 }
0x1d05   :  { %v5193_v7 = vmul.f32 %v5424_v63, %v5184_v22 }
0x1d06   :  { %v6470_v57 = vpop.eup %6469 }
0x1d07   :  { %v5185_v58 = vmul.f32 %v6470_v57, %v5169_v48  ;;  %5195 = vst.msk [vmem:[#allocation11] sm:$0xff] %vm7920_vm11, %v5193_v7 }
0x1d09   :  { %v5194_v61 = vmul.f32 %v5424_v63, %v5185_v58 }
0x1d0b   :  { %5196 = vst.msk [vmem:[#allocation11 + $0x8] sm:$0xff] %vm7921_vm2, %v5194_v61 }
0x1d0c   :  { %6586 = shalt.err (!%p6583_p1)
}
0x1d0d   :  { %5208 = dma.vmem_to_hbm [thread:$0]  %s5203_s7, 256, %s7777_s9, [#allocation4], %s6608_s21, %s6608_s21, %s6609_s22  }
0x1d0e   :  { %6601 = dma.done.wait [#allocation4], 256  }
0x1d0f   :  { %6602 = vsyncadd [#allocation4], 4294967040 }
0x1d10   :  { %5212 = vsyncpa [#allocation3], 1 }
0x1d11   :  { %5213 = vsyncpa [#allocation6], 1 }
0x1d12   :  { %5214 = vsyncpa [#allocation9], 1 }
0x1d13   :  { %5215 = vsyncpa [#allocation4], 1 }

</bundles_post_ra>
